<compile_context>
chip_gen: v7x
topology: tpu7x:2x2x1
jax: 0.10.0
libtpu: 0.0.40
codegen_flags: <defaults>
</compile_context>

<pallas_src>
import jax
import jax.numpy as jnp
from jax.experimental import pallas as pl
from jax.experimental.pallas import tpu as pltpu


def _vq_kernel(z_ref, et_ref, e_ref, esq_ref, zq_ref, idx_ref, err_ref):
    z = z_ref[...].astype(jnp.float32)            # (tm, D)
    e_t = et_ref[...].astype(jnp.float32)         # (D, N)  pre-transposed codebook
    e = e_ref[...].astype(jnp.float32)            # (N, D)
    e_sq = esq_ref[...]                           # (1, N)  precomputed ||e||^2

    # Reduced squared-L2 distances: ||e||^2 - 2 z.e   (||z||^2 dropped; it is
    # constant per row so the argmin over the codebook axis is unchanged).
    scores = jnp.dot(z, e_t, preferred_element_type=jnp.float32)      # (tm, N)
    d = e_sq - 2.0 * scores                                           # (tm, N)

    # argmin along the codebook axis (first-occurrence tie-break, like torch).
    n = d.shape[1]
    min_val = jnp.min(d, axis=1, keepdims=True)                       # (tm, 1)
    col_iota = jax.lax.broadcasted_iota(jnp.int32, d.shape, 1)        # (tm, N)
    idx = jnp.min(jnp.where(d == min_val, col_iota, n), axis=1)       # (tm,)

    # One-hot @ codebook (MXU) to gather quantized vectors.
    onehot = (col_iota == idx[:, None]).astype(jnp.float32)           # (tm, N)
    zq = jnp.dot(onehot, e, preferred_element_type=jnp.float32)       # (tm, D)

    zq_ref[...] = zq.astype(zq_ref.dtype)
    idx_ref[...] = idx[None, :].astype(jnp.int32)                     # (1, tm)
    # Per-row squared error partials (summed + masked in the wrapper).
    err_ref[...] = jnp.sum((z - zq) ** 2, axis=1)[None, :]            # (1, tm)


def vector_quantize(z, codebook, beta=0.25, *, tile_m=256):
    """z: (B, D, T) float32; codebook: (N, D) float32.

    Returns (z_q, vq_loss, aux) matching the PyTorch module's forward values:
      z_q: (B, D, T), vq_loss: scalar,
      aux = {'perplexity', 'encodings' (B,T,N), 'encoding_indices' (B,T)}.
    """
    B, D, T = z.shape
    N, D2 = codebook.shape
    assert D == D2
    M = B * T
    num_tiles = pl.cdiv(M, tile_m)
    M_pad = num_tiles * tile_m

    # 'b d t -> (b t) d'
    # TODO(synk): fuse this transpose into the kernel (read (B, D, t-tile)
    # blocks and transpose on the XLU) to remove the extra HBM round trip.
    z_flat = jnp.transpose(z, (0, 2, 1)).reshape(M, D)
    if M_pad != M:
        z_flat = jnp.pad(z_flat, ((0, M_pad - M), (0, 0)))

    e = codebook.astype(jnp.float32)                     # (N, D)
    e_t = jnp.transpose(e)                               # (D, N) — one-time transpose
    e_sq = jnp.sum(e * e, axis=1)[None, :]               # (1, N) — hoisted norm

    flops = 2 * M_pad * N * D * 2                        # two matmuls per row
    bytes_accessed = (2 * M_pad * D + 2 * M_pad) * 4 + 2 * N * D * 4 + N * 4
    cost = pl.CostEstimate(flops=flops, transcendentals=0,
                           bytes_accessed=bytes_accessed)

    zq_flat, idx_tiles, err_tiles = pl.pallas_call(
        _vq_kernel,
        out_shape=(
            jax.ShapeDtypeStruct((M_pad, D), jnp.float32),
            jax.ShapeDtypeStruct((num_tiles, tile_m), jnp.int32),
            jax.ShapeDtypeStruct((num_tiles, tile_m), jnp.float32),
        ),
        grid_spec=pltpu.PrefetchScalarGridSpec(
            num_scalar_prefetch=0,
            grid=(num_tiles,),
            in_specs=[
                pl.BlockSpec((tile_m, D), lambda i: (i, 0)),   # z tile
                pl.BlockSpec((D, N), lambda i: (0, 0)),        # codebook^T (resident)
                pl.BlockSpec((N, D), lambda i: (0, 0)),        # codebook (resident)
                pl.BlockSpec((1, N), lambda i: (0, 0)),        # ||e||^2 (resident)
            ],
            out_specs=[
                pl.BlockSpec((tile_m, D), lambda i: (i, 0)),   # z_q tile
                pl.BlockSpec((1, tile_m), lambda i: (i, 0)),   # indices (lane-dense)
                pl.BlockSpec((1, tile_m), lambda i: (i, 0)),   # per-row sq-err
            ],
        ),
        compiler_params=pltpu.CompilerParams(
            dimension_semantics=("parallel",),                 # independent tiles
            vmem_limit_bytes=48 * 1024 * 1024,                 # fits v7x 64 MiB
        ),
        cost_estimate=cost,
    )(z_flat, e_t, e, e_sq)

    # Strip padding, reassemble shapes, and compute scalars in plain JAX.
    zq_flat = zq_flat[:M]
    idx_flat = idx_tiles.reshape(M_pad)[:M]
    err_flat = err_tiles.reshape(M_pad)[:M]

    z_q = jnp.transpose(zq_flat.reshape(B, T, D), (0, 2, 1))          # (B, D, T)
    encoding_indices = idx_flat.reshape(B, T)                          # (B, T)

    # codebook_loss == commitment_loss as forward values (detach affects grads only).
    mse = jnp.sum(err_flat) / jnp.float32(B * D * T)
    vq_loss = mse + beta * mse

    # One-hot encodings reconstructed here (no (M, N) f32 writeback in the kernel).
    min_encodings = jax.nn.one_hot(encoding_indices, N, dtype=jnp.float32)  # (B,T,N)

    # Perplexity exactly as in the module: mean over dim 0 (batch) only,
    # then sum over the remaining (T, N) elements.
    avg_probs = jnp.mean(min_encodings, axis=0)                        # (T, N)
    perplexity = jnp.exp(-jnp.sum(avg_probs * jnp.log(avg_probs + 1e-10)))

    aux = {
        "perplexity": perplexity,
        "encodings": min_encodings,
        "encoding_indices": encoding_indices,
    }
    return z_q, vq_loss, aux


def _reference(z, codebook, beta=0.25):
    """Pure-JAX reference matching the PyTorch forward."""
    B, D, T = z.shape
    N = codebook.shape[0]
    zf = jnp.transpose(z, (0, 2, 1))                                   # (B, T, D)
    d = (jnp.sum(zf**2, axis=2, keepdims=True)
         + jnp.sum(codebook**2, axis=1)
         - 2.0 * zf @ codebook.T)                                      # (B, T, N)
    idx = jnp.argmin(d, axis=2)                                        # (B, T)
    enc = jax.nn.one_hot(idx, N, dtype=jnp.float32)                    # (B, T, N)
    zq = codebook[idx]                                                 # (B, T, D)
    zq = jnp.transpose(zq, (0, 2, 1))                                  # (B, D, T)
    mse = jnp.mean((z - zq) ** 2)
    loss = mse + beta * mse
    avg_probs = jnp.mean(enc, axis=0)
    perp = jnp.exp(-jnp.sum(avg_probs * jnp.log(avg_probs + 1e-10)))
    return zq, loss, idx, enc, perp


if __name__ == "__main__":
    # Small shapes consistent with the module: z is (B, embedding_dim, T).
    B, D, T, N = 2, 32, 16, 128
    beta = 0.25

    key = jax.random.PRNGKey(0)
    k_z, k_e = jax.random.split(key)
    z = jax.random.normal(k_z, (B, D, T), dtype=jnp.float32)
    # Deterministic codebook init mirroring uniform_(-1/N, 1/N).
    codebook = jax.random.uniform(
        k_e, (N, D), minval=-1.0 / N, maxval=1.0 / N, dtype=jnp.float32
    )

    z_q, vq_loss, aux = vector_quantize(z, codebook, beta)
    jax.block_until_ready((z_q, vq_loss, aux["perplexity"]))

    # Sanity check vs pure-JAX reference.
    zq_ref, loss_ref, idx_ref, enc_ref, perp_ref = _reference(z, codebook, beta)
    assert jnp.allclose(z_q, zq_ref, atol=1e-5), "z_q mismatch"
    assert jnp.allclose(vq_loss, loss_ref, atol=1e-5), "loss mismatch"
    assert jnp.array_equal(aux["encoding_indices"], idx_ref), "indices mismatch"
    assert jnp.allclose(aux["encodings"], enc_ref), "encodings mismatch"
    assert jnp.allclose(aux["perplexity"], perp_ref, atol=1e-4), "perplexity mismatch"

    print("KERNEL_OK")
</pallas_src>

<mosaic_0001>
module attributes {stable_mosaic.version = 11 : i64} {
  func.func @_vq_kernel(%arg0: i32, %arg1: memref<256x32xf32, #tpu.memory_space<vmem>>, %arg2: memref<32x128xf32, #tpu.memory_space<vmem>>, %arg3: memref<128x32xf32, #tpu.memory_space<vmem>>, %arg4: memref<1x128xf32, #tpu.memory_space<vmem>>, %arg5: memref<256x32xf32, #tpu.memory_space<vmem>>, %arg6: memref<1x256xi32, #tpu.memory_space<vmem>>, %arg7: memref<1x256xf32, #tpu.memory_space<vmem>>) attributes {dimension_semantics = [#tpu.dimension_semantics<parallel>], iteration_bounds = array<i64: 1>, scalar_prefetch = 0 : i64, scratch_operands = 0 : i64, tpu.core_type = #tpu.core_type<tc>, window_params = [{transform_indices = @transform_0, window_bounds = array<i64: 256, 32>}, {pipeline_mode = #tpu.pipeline_mode<synchronous>, transform_indices = @transform_1, window_bounds = array<i64: 32, 128>}, {pipeline_mode = #tpu.pipeline_mode<synchronous>, transform_indices = @transform_2, window_bounds = array<i64: 128, 32>}, {pipeline_mode = #tpu.pipeline_mode<synchronous>, transform_indices = @transform_3, window_bounds = array<i64: 1, 128>}, {transform_indices = @transform_4, window_bounds = array<i64: 256, 32>}, {transform_indices = @transform_5, window_bounds = array<i64: 1, 256>}, {transform_indices = @transform_6, window_bounds = array<i64: 1, 256>}]} {
    %c0 = arith.constant 0 : index
    %c0_0 = arith.constant 0 : index
    %0 = vector.load %arg1[%c0, %c0_0] : memref<256x32xf32, #tpu.memory_space<vmem>>, vector<256x32xf32>
    %c0_1 = arith.constant 0 : index
    %c0_2 = arith.constant 0 : index
    %1 = vector.load %arg2[%c0_1, %c0_2] : memref<32x128xf32, #tpu.memory_space<vmem>>, vector<32x128xf32>
    %c0_3 = arith.constant 0 : index
    %c0_4 = arith.constant 0 : index
    %2 = vector.load %arg3[%c0_3, %c0_4] : memref<128x32xf32, #tpu.memory_space<vmem>>, vector<128x32xf32>
    %c0_5 = arith.constant 0 : index
    %c0_6 = arith.constant 0 : index
    %3 = vector.load %arg4[%c0_5, %c0_6] : memref<1x128xf32, #tpu.memory_space<vmem>>, vector<1x128xf32>
    %cst = arith.constant dense<0.000000e+00> : vector<256x128xf32>
    %4 = tpu.matmul %0, %1, %cst {dimension_numbers = #tpu.dot_dimension_numbers<[1], [0], [0], [1], [0, 0, 1, 1], [], []>} : vector<256x32xf32>, vector<32x128xf32>, vector<256x128xf32> -> vector<256x128xf32>
    %cst_7 = arith.constant 2.000000e+00 : f32
    %5 = vector.broadcast %cst_7 : f32 to vector<256x128xf32>
    %6 = arith.mulf %5, %4 : vector<256x128xf32>
    %7 = vector.broadcast %3 : vector<1x128xf32> to vector<256x128xf32>
    %8 = arith.subf %7, %6 : vector<256x128xf32>
    %cst_8 = arith.constant dense<0x7F800000> : vector<256xf32>
    %9 = vector.multi_reduction <minimumf>, %8, %cst_8 [1] : vector<256x128xf32> to vector<256xf32>
    %10 = vector.shape_cast %9 : vector<256xf32> to vector<256x1xf32>
    %11 = tpu.iota {dimensions = array<i32: 1>} : vector<256x128xi32>
    %12 = vector.broadcast %10 : vector<256x1xf32> to vector<256x128xf32>
    %13 = arith.cmpf oeq, %8, %12 : vector<256x128xf32>
    %c128_i32 = arith.constant 128 : i32
    %14 = vector.broadcast %c128_i32 : i32 to vector<256x128xi32>
    %15 = arith.select %13, %11, %14 : vector<256x128xi1>, vector<256x128xi32>
    %cst_9 = arith.constant dense<2147483647> : vector<256xi32>
    %16 = vector.multi_reduction <minsi>, %15, %cst_9 [1] : vector<256x128xi32> to vector<256xi32>
    %17 = vector.shape_cast %16 : vector<256xi32> to vector<256x1xi32>
    %18 = vector.broadcast %17 : vector<256x1xi32> to vector<256x128xi32>
    %19 = arith.cmpi eq, %11, %18 : vector<256x128xi32>
    %20 = arith.extui %19 : vector<256x128xi1> to vector<256x128xi32>
    %21 = arith.sitofp %20 : vector<256x128xi32> to vector<256x128xf32>
    %cst_10 = arith.constant dense<0.000000e+00> : vector<256x32xf32>
    %22 = tpu.matmul %21, %2, %cst_10 {dimension_numbers = #tpu.dot_dimension_numbers<[1], [0], [0], [1], [0, 0, 1, 1], [], []>} : vector<256x128xf32>, vector<128x32xf32>, vector<256x32xf32> -> vector<256x32xf32>
    %c0_11 = arith.constant 0 : index
    %c0_12 = arith.constant 0 : index
    %23 = vector.load %arg5[%c0_11, %c0_12] : memref<256x32xf32, #tpu.memory_space<vmem>>, vector<256x32xf32>
    tpu.vector_store %arg5[%c0_11, %c0_12], %22 {strides = array<i32>} : memref<256x32xf32, #tpu.memory_space<vmem>>, vector<256x32xf32>,
    %24 = vector.shape_cast %16 : vector<256xi32> to vector<1x256xi32>
    %c0_13 = arith.constant 0 : index
    %c0_14 = arith.constant 0 : index
    %25 = vector.load %arg6[%c0_13, %c0_14] : memref<1x256xi32, #tpu.memory_space<vmem>>, vector<1x256xi32>
    tpu.vector_store %arg6[%c0_13, %c0_14], %24 {strides = array<i32>} : memref<1x256xi32, #tpu.memory_space<vmem>>, vector<1x256xi32>,
    %26 = arith.subf %0, %22 : vector<256x32xf32>
    %27 = arith.mulf %26, %26 : vector<256x32xf32>
    %cst_15 = arith.constant dense<0.000000e+00> : vector<256xf32>
    %28 = vector.multi_reduction <add>, %27, %cst_15 [1] : vector<256x32xf32> to vector<256xf32>
    %29 = vector.shape_cast %28 : vector<256xf32> to vector<1x256xf32>
    %c0_16 = arith.constant 0 : index
    %c0_17 = arith.constant 0 : index
    %30 = vector.load %arg7[%c0_16, %c0_17] : memref<1x256xf32, #tpu.memory_space<vmem>>, vector<1x256xf32>
    tpu.vector_store %arg7[%c0_16, %c0_17], %29 {strides = array<i32>} : memref<1x256xf32, #tpu.memory_space<vmem>>, vector<1x256xf32>,
    return
  }
  func.func @transform_0(%arg0: i32) -> (i32, i32) {
    %c0_i32 = arith.constant 0 : i32
    %c0_i32_0 = arith.constant 0 : i32
    return %arg0, %c0_i32 : i32, i32
  }
  func.func @transform_1(%arg0: i32) -> (i32, i32) {
    %c0_i32 = arith.constant 0 : i32
    %c0_i32_0 = arith.constant 0 : i32
    %c0_i32_1 = arith.constant 0 : i32
    return %c0_i32, %c0_i32_0 : i32, i32
  }
  func.func @transform_2(%arg0: i32) -> (i32, i32) {
    %c0_i32 = arith.constant 0 : i32
    %c0_i32_0 = arith.constant 0 : i32
    %c0_i32_1 = arith.constant 0 : i32
    return %c0_i32, %c0_i32_0 : i32, i32
  }
  func.func @transform_3(%arg0: i32) -> (i32, i32) {
    %c0_i32 = arith.constant 0 : i32
    %c0_i32_0 = arith.constant 0 : i32
    %c0_i32_1 = arith.constant 0 : i32
    return %c0_i32, %c0_i32_0 : i32, i32
  }
  func.func @transform_4(%arg0: i32) -> (i32, i32) {
    %c0_i32 = arith.constant 0 : i32
    %c0_i32_0 = arith.constant 0 : i32
    return %arg0, %c0_i32 : i32, i32
  }
  func.func @transform_5(%arg0: i32) -> (i32, i32) {
    %c0_i32 = arith.constant 0 : i32
    %c0_i32_0 = arith.constant 0 : i32
    return %arg0, %c0_i32 : i32, i32
  }
  func.func @transform_6(%arg0: i32) -> (i32, i32) {
    %c0_i32 = arith.constant 0 : i32
    %c0_i32_0 = arith.constant 0 : i32
    return %arg0, %c0_i32 : i32, i32
  }
}

</mosaic_0001>

<bundles_post_ra>
// kernel: tpu_custom_call.1
= control target key start
LH: loop header
LB: loop body
LE: loop exit
PB: predicated region body
PF: predicated region fallthrough
CT: control target
= control target key end

     0   :  { %12 = vsyncpa [#allocation3], 0  ;;  %vm75_vm0 = vcmask 261120   ;;  %s10638_s0 = inlined_call_operand.vmem [shape: f32[256,32], index: 0, kind: input, shape index: {}]   ;;  %s10639_s1 = inlined_call_operand.vmem [shape: f32[32,128], index: 1, kind: input, shape index: {}]   ;;  %s10640_s2 = inlined_call_operand.vmem [shape: f32[128,32], index: 2, kind: input, shape index: {}]   ;;  %s10641_s3 = inlined_call_operand.vmem [shape: f32[1,128], index: 3, kind: input, shape index: {}]   ;;  %s10642_s4 = inlined_call_operand.vmem [shape: f32[256,32], index: 4, kind: output, shape index: {0}]   ;;  %s10643_s5 = inlined_call_operand.hbm [shape: s32[1,256], index: 5, kind: output, shape index: {1}]   ;;  %s10644_s6 = inlined_call_operand.hbm [shape: f32[1,256], index: 6, kind: output, shape index: {2}]  }
   0x1   :  { %v54_v0 = vld [vmem:[%s10639_s1] sm:$0xff]  ;;  %v55_v1 = vld [vmem:[%s10639_s1 + $0x8] sm:$0xff]  ;;  %v56_v2 = vld [vmem:[%s10639_s1 + $0x10] sm:$0xff] }
   0x2   :  { %v7698_v3 = vpack.c.bf16 %v55_v1, %v54_v0  ;;  %v57_v4 = vld [vmem:[%s10639_s1 + $0x18] sm:$0xff]  ;;  %v22_v5 = vld [vmem:[%s10638_s0] sm:$0xff]  ;;  %v23_v7 = vld [vmem:[%s10638_s0 + $0x8] sm:$0xff] }
   0x3   :  { %v7702_v6 = vpack.c.bf16 %v57_v4, %v56_v2  ;;  %7570 = vmatprep.mubr.msk.f32.mxu0 %vm75_vm0, %v22_v5  ;;  %v24_v8 = vld [vmem:[%s10638_s0 + $0x10] sm:$0xff]  ;;  %v25_v9 = vld [vmem:[%s10638_s0 + $0x18] sm:$0xff] }
   0x4   :  { %7699 = vmatprep.subr.bf16.mxu0 %v7698_v3 }
   0x5   :  { %7701 = vmatpush3.bf16.msra.mxu0 %v7698_v3 }
   0x6   :  { %7703 = vmatprep.subr.bf16.mxu0 %v7702_v6 }
   0x9   :  { %7705 = vmatpush3.bf16.msra.mxu0 %v7702_v6 }
   0xc   :  { %7571 = vmatmul.mubr.msk.f32.vlgmr.msra.gmra.mrb[0].mxu0 %vm75_vm0, %v23_v7 }
   0xd   :  { %7573 = vmatprep.mubr.msk.f32.mxu0 %vm75_vm0, %v24_v8 }
   0xe   :  { %13 = vsyncpa [#allocation5], 0  ;;  %v26_v10 = vld [vmem:[%s10638_s0 + $0x20] sm:$0xff]  ;;  %v27_v11 = vld [vmem:[%s10638_s0 + $0x28] sm:$0xff] }
   0xf   :  { %v28_v12 = vld [vmem:[%s10638_s0 + $0x30] sm:$0xff]  ;;  %v29_v13 = vld [vmem:[%s10638_s0 + $0x38] sm:$0xff]  ;;  %v30_v14 = vld [vmem:[%s10638_s0 + $0x40] sm:$0xff] }
  0x10   :  { %7574 = vmatmul.mubr.msk.f32.gmra.mrb[2].mxu0 %vm75_vm0, %v25_v9  ;;  %v31_v15 = vld [vmem:[%s10638_s0 + $0x48] sm:$0xff]  ;;  %v32_v16 = vld [vmem:[%s10638_s0 + $0x50] sm:$0xff]  ;;  %v33_v17 = vld [vmem:[%s10638_s0 + $0x58] sm:$0xff] }
  0x11   :  { %7576 = vmatprep.mubr.msk.f32.mxu0 %vm75_vm0, %v26_v10  ;;  %v34_v18 = vld [vmem:[%s10638_s0 + $0x60] sm:$0xff]  ;;  %v35_v19 = vld [vmem:[%s10638_s0 + $0x68] sm:$0xff]  ;;  %v36_v20 = vld [vmem:[%s10638_s0 + $0x70] sm:$0xff] }
  0x12   :  { %v37_v21 = vld [vmem:[%s10638_s0 + $0x78] sm:$0xff]  ;;  %v38_v22 = vld [vmem:[%s10638_s0 + $0x80] sm:$0xff]  ;;  %v39_v23 = vld [vmem:[%s10638_s0 + $0x88] sm:$0xff] }
  0x13   :  { %v40_v24 = vld [vmem:[%s10638_s0 + $0x90] sm:$0xff]  ;;  %v41_v25 = vld [vmem:[%s10638_s0 + $0x98] sm:$0xff]  ;;  %v42_v26 = vld [vmem:[%s10638_s0 + $0xa0] sm:$0xff] }
  0x14   :  { %7577 = vmatmul.mubr.msk.f32.gmra.mrb[4].mxu0 %vm75_vm0, %v27_v11  ;;  %v43_v27 = vld [vmem:[%s10638_s0 + $0xa8] sm:$0xff]  ;;  %v44_v28 = vld [vmem:[%s10638_s0 + $0xb0] sm:$0xff]  ;;  %v45_v29 = vld [vmem:[%s10638_s0 + $0xb8] sm:$0xff] }
  0x15   :  { %7579 = vmatprep.mubr.msk.f32.mxu0 %vm75_vm0, %v28_v12  ;;  %v46_v30 = vld [vmem:[%s10638_s0 + $0xc0] sm:$0xff]  ;;  %v47_v31 = vld [vmem:[%s10638_s0 + $0xc8] sm:$0xff]  ;;  %v48_v32 = vld [vmem:[%s10638_s0 + $0xd0] sm:$0xff] }
  0x16   :  { %v49_v33 = vld [vmem:[%s10638_s0 + $0xd8] sm:$0xff]  ;;  %v50_v34 = vld [vmem:[%s10638_s0 + $0xe0] sm:$0xff]  ;;  %v51_v35 = vld [vmem:[%s10638_s0 + $0xe8] sm:$0xff] }
  0x17   :  { %v52_v36 = vld [vmem:[%s10638_s0 + $0xf0] sm:$0xff]  ;;  %v53_v37 = vld [vmem:[%s10638_s0 + $0xf8] sm:$0xff]  ;;  %v8024_v39 = vld [vmem:[%s10641_s3] ss:$0 sm:$0xff] }
  0x18   :  { %7580 = vmatmul.mubr.msk.f32.gmra.mrb[6].mxu0 %vm75_vm0, %v29_v13 }
  0x19   :  { %7582 = vmatprep.mubr.msk.f32.mxu0 %vm75_vm0, %v30_v14 }
  0x1c   :  { %7583 = vmatmul.mubr.msk.f32.gmra.mrb[8].mxu0 %vm75_vm0, %v31_v15 }
  0x1d   :  { %7585 = vmatprep.mubr.msk.f32.mxu0 %vm75_vm0, %v32_v16 }
  0x20   :  { %7586 = vmatmul.mubr.msk.f32.gmra.mrb[10].mxu0 %vm75_vm0, %v33_v17 }
  0x21   :  { %7588 = vmatprep.mubr.msk.f32.mxu0 %vm75_vm0, %v34_v18 }
  0x24   :  { %7589 = vmatmul.mubr.msk.f32.gmra.mrb[12].mxu0 %vm75_vm0, %v35_v19 }
  0x25   :  { %7591 = vmatprep.mubr.msk.f32.mxu0 %vm75_vm0, %v36_v20 }
  0x28   :  { %7592 = vmatmul.mubr.msk.f32.gmra.mrb[14].mxu0 %vm75_vm0, %v37_v21 }
  0x29   :  { %7594 = vmatprep.mubr.msk.f32.mxu0 %vm75_vm0, %v38_v22 }
  0x2c   :  { %7595 = vmatmul.mubr.msk.f32.gmra.mrb[16].mxu0 %vm75_vm0, %v39_v23 }
  0x2d   :  { %7597 = vmatprep.mubr.msk.f32.mxu0 %vm75_vm0, %v40_v24 }
  0x30   :  { %7598 = vmatmul.mubr.msk.f32.gmra.mrb[18].mxu0 %vm75_vm0, %v41_v25 }
  0x31   :  { %7600 = vmatprep.mubr.msk.f32.mxu0 %vm75_vm0, %v42_v26 }
  0x34   :  { %7601 = vmatmul.mubr.msk.f32.gmra.mrb[20].mxu0 %vm75_vm0, %v43_v27 }
  0x35   :  { %7603 = vmatprep.mubr.msk.f32.mxu0 %vm75_vm0, %v44_v28 }
  0x38   :  { %7604 = vmatmul.mubr.msk.f32.gmra.mrb[22].mxu0 %vm75_vm0, %v45_v29 }
  0x39   :  { %7606 = vmatprep.mubr.msk.f32.mxu0 %vm75_vm0, %v46_v30 }
  0x3c   :  { %7607 = vmatmul.mubr.msk.f32.gmra.mrb[24].mxu0 %vm75_vm0, %v47_v31 }
  0x3d   :  { %7609 = vmatprep.mubr.msk.f32.mxu0 %vm75_vm0, %v48_v32 }
  0x40   :  { %7610 = vmatmul.mubr.msk.f32.gmra.mrb[26].mxu0 %vm75_vm0, %v49_v33 }
  0x41   :  { %7612 = vmatprep.mubr.msk.f32.mxu0 %vm75_vm0, %v50_v34 }
  0x44   :  { %7613 = vmatmul.mubr.msk.f32.gmra.mrb[28].mxu0 %vm75_vm0, %v51_v35 }
  0x45   :  { %7615 = vmatprep.mubr.msk.f32.mxu0 %vm75_vm0, %v52_v36 }
  0x48   :  { %7616 = vmatmul.mubr.msk.f32.gmra.mrb[30].mxu0 %vm75_vm0, %v53_v37 }
  0xdf   :  { %v7572_v38 = vpop.f32.mrb[0].mxu0 }
  0xe0   :  { %v398_v40 = vmul.f32 2.0, %v7572_v38  ;;  %v238_v41 = vpop.f32.mrb[1].mxu0 }
  0xe1   :  { %v397_v42 = vmul.f32 2.0, %v238_v41 }
  0xe2   :  { %v8027_v43 = vsub.f32 %v8024_v39, %v398_v40 }
  0xe3   :  { %v7575_v44 = vpop.f32.mrb[2].mxu0  ;;  %v8030_v45 = vsub.f32 %v8024_v39, %v397_v42 }
  0xe4   :  { %v400_v46 = vmul.f32 2.0, %v7575_v44  ;;  %469 = vmin.xlane.f32.xlu1 %v8027_v43  ;;  %v248_v47 = vpop.f32.mrb[3].mxu0 }
  0xe5   :  { %v399_v48 = vmul.f32 2.0, %v248_v47  ;;  %467 = vmin.xlane.f32.xlu0 %v8030_v45 }
  0xe6   :  { %v8035_v49 = vsub.f32 %v8024_v39, %v400_v46 }
  0xe7   :  { %v7578_v50 = vpop.f32.mrb[4].mxu0  ;;  %v8038_v51 = vsub.f32 %v8024_v39, %v399_v48 }
  0xe8   :  { %473 = vmin.xlane.f32.xlu1 %v8035_v49  ;;  %v258_v52 = vpop.f32.mrb[5].mxu0  ;;  %v402_v4 = vmul.f32 2.0, %v7578_v50 }
  0xe9   :  { %471 = vmin.xlane.f32.xlu0 %v8038_v51  ;;  %v401_v61 = vmul.f32 2.0, %v258_v52 }
  0xea   :  { %v8066_v12 = vsub.f32 %v8024_v39, %v402_v4 }
  0xeb   :  { %v7581_v53 = vpop.f32.mrb[6].mxu0  ;;  %v8055_v5 = vsub.f32 %v8024_v39, %v401_v61 }
  0xec   :  { %v404_v54 = vmul.f32 2.0, %v7581_v53  ;;  %v268_v55 = vpop.f32.mrb[7].mxu0 }
  0xed   :  { %v403_v56 = vmul.f32 2.0, %v268_v55 }
  0xee   :  { %v8043_v57 = vsub.f32 %v8024_v39, %v404_v54 }
  0xef   :  { %v7584_v58 = vpop.f32.mrb[8].mxu0  ;;  %v8047_v63 = vsub.f32 %v8024_v39, %v403_v56 }
  0xf0   :  { %v406_v59 = vmul.f32 2.0, %v7584_v58  ;;  %481 = vmin.xlane.f32.xlu0 %v8043_v57  ;;  %v278_v60 = vpop.f32.mrb[9].mxu0 }
  0xf1   :  { %v405_v62 = vmul.f32 2.0, %v278_v60 }
  0xf2   :  { %v8050_v0 = vsub.f32 %v8024_v39, %v406_v59 }
  0xf3   :  { %v7587_v1 = vpop.f32.mrb[10].mxu0  ;;  %v8058_v6 = vsub.f32 %v8024_v39, %v405_v62 }
  0xf4   :  { %479 = vmin.xlane.f32.xlu0 %v8047_v63  ;;  %485 = vmin.xlane.f32.xlu1 %v8050_v0  ;;  %v288_v2 = vpop.f32.mrb[11].mxu0  ;;  %v408_v8 = vmul.f32 2.0, %v7587_v1 }
  0xf5   :  { %v407_v3 = vmul.f32 2.0, %v288_v2 }
  0xf6   :  { %v8071_v16 = vsub.f32 %v8024_v39, %v408_v8 }
  0xf7   :  { %v7590_v7 = vpop.f32.mrb[12].mxu0  ;;  %v8063_v10 = vsub.f32 %v8024_v39, %v407_v3 }
  0xf8   :  { %475 = vmin.xlane.f32.xlu0 %v8055_v5  ;;  %483 = vmin.xlane.f32.xlu1 %v8058_v6  ;;  %v298_v9 = vpop.f32.mrb[13].mxu0  ;;  %v410_v14 = vmul.f32 2.0, %v7590_v7 }
  0xf9   :  { %v409_v11 = vmul.f32 2.0, %v298_v9 }
  0xfa   :  { %v8079_v22 = vsub.f32 %v8024_v39, %v410_v14 }
  0xfb   :  { %v7593_v13 = vpop.f32.mrb[14].mxu0  ;;  %v8074_v17 = vsub.f32 %v8024_v39, %v409_v11 }
  0xfc   :  { %477 = vmin.xlane.f32.xlu1 %v8066_v12  ;;  %487 = vmin.xlane.f32.xlu0 %v8063_v10  ;;  %v308_v15 = vpop.f32.mrb[15].mxu0  ;;  %v412_v20 = vmul.f32 2.0, %v7593_v13 }
  0xfd   :  { %v411_v18 = vmul.f32 2.0, %v308_v15 }
  0xfe   :  { %v8087_v28 = vsub.f32 %v8024_v39, %v412_v20 }
  0xff   :  { %v7596_v19 = vpop.f32.mrb[16].mxu0  ;;  %v8082_v23 = vsub.f32 %v8024_v39, %v411_v18 }
 0x100   :  { %489 = vmin.xlane.f32.xlu1 %v8071_v16  ;;  %491 = vmin.xlane.f32.xlu0 %v8074_v17  ;;  %v318_v21 = vpop.f32.mrb[17].mxu0  ;;  %v414_v26 = vmul.f32 2.0, %v7596_v19 }
 0x101   :  { %v413_v24 = vmul.f32 2.0, %v318_v21  ;;  %v10645_v21 = vlaneseq }
 0x102   :  { %v8095_v34 = vsub.f32 %v8024_v39, %v414_v26 }
 0x103   :  { %v7599_v25 = vpop.f32.mrb[18].mxu0  ;;  %v8090_v29 = vsub.f32 %v8024_v39, %v413_v24  ;;  %v8155_v24 = vand.u32 127, %v10645_v21 }
 0x104   :  { %493 = vmin.xlane.f32.xlu1 %v8079_v22  ;;  %495 = vmin.xlane.f32.xlu0 %v8082_v23  ;;  %v328_v27 = vpop.f32.mrb[19].mxu0  ;;  %v416_v32 = vmul.f32 2.0, %v7599_v25 }
 0x105   :  { %v415_v30 = vmul.f32 2.0, %v328_v27  ;;  %10665 = vst [vmem:[#allocation8_spill] sm:$0xff] %v8155_v24 }
 0x106   :  { %v8103_v41 = vsub.f32 %v8024_v39, %v416_v32 }
 0x107   :  { %v7602_v31 = vpop.f32.mrb[20].mxu0  ;;  %v8098_v35 = vsub.f32 %v8024_v39, %v415_v30 }
 0x108   :  { %497 = vmin.xlane.f32.xlu1 %v8087_v28  ;;  %499 = vmin.xlane.f32.xlu0 %v8090_v29  ;;  %v338_v33 = vpop.f32.mrb[21].mxu0  ;;  %v418_v38 = vmul.f32 2.0, %v7602_v31 }
 0x109   :  { %v417_v36 = vmul.f32 2.0, %v338_v33 }
 0x10a   :  { %v8111_v50 = vsub.f32 %v8024_v39, %v418_v38 }
 0x10b   :  { %v7605_v37 = vpop.f32.mrb[22].mxu0  ;;  %v8106_v42 = vsub.f32 %v8024_v39, %v417_v36 }
 0x10c   :  { %501 = vmin.xlane.f32.xlu1 %v8095_v34  ;;  %503 = vmin.xlane.f32.xlu0 %v8098_v35  ;;  %v348_v40 = vpop.f32.mrb[23].mxu0  ;;  %v420_v47 = vmul.f32 2.0, %v7605_v37 }
 0x10d   :  { %v419_v44 = vmul.f32 2.0, %v348_v40 }
 0x10e   :  { %v8119_v58 = vsub.f32 %v8024_v39, %v420_v47 }
 0x10f   :  { %v7608_v46 = vpop.f32.mrb[24].mxu0  ;;  %v8114_v52 = vsub.f32 %v8024_v39, %v419_v44 }
 0x110   :  { %505 = vmin.xlane.f32.xlu1 %v8103_v41  ;;  %507 = vmin.xlane.f32.xlu0 %v8106_v42  ;;  %v358_v48 = vpop.f32.mrb[25].mxu0  ;;  %v422_v55 = vmul.f32 2.0, %v7608_v46 }
 0x111   :  { %v421_v53 = vmul.f32 2.0, %v358_v48 }
 0x112   :  { %v8127_v3 = vsub.f32 %v8024_v39, %v422_v55 }
 0x113   :  { %v7611_v54 = vpop.f32.mrb[26].mxu0  ;;  %v8122_v59 = vsub.f32 %v8024_v39, %v421_v53 }
 0x114   :  { %509 = vmin.xlane.f32.xlu1 %v8111_v50  ;;  %511 = vmin.xlane.f32.xlu0 %v8114_v52  ;;  %v368_v56 = vpop.f32.mrb[27].mxu0  ;;  %v424_v62 = vmul.f32 2.0, %v7611_v54 }
 0x115   :  { %v423_v60 = vmul.f32 2.0, %v368_v56 }
 0x116   :  { %v8138_v14 = vsub.f32 %v8024_v39, %v424_v62 }
 0x117   :  { %v7614_v61 = vpop.f32.mrb[28].mxu0  ;;  %v8130_v4 = vsub.f32 %v8024_v39, %v423_v60 }
 0x118   :  { %513 = vmin.xlane.f32.xlu1 %v8119_v58  ;;  %515 = vmin.xlane.f32.xlu0 %v8122_v59  ;;  %v426_v1 = vmul.f32 2.0, %v7614_v61  ;;  %v378_v2 = vpop.f32.mrb[29].mxu0 }
 0x119   :  { %v425_v7 = vmul.f32 2.0, %v378_v2 }
 0x11a   :  { %v8133_v8 = vsub.f32 %v8024_v39, %v426_v1 }
 0x11b   :  { %v7617_v9 = vpop.f32.mrb[30].mxu0  ;;  %v8141_v15 = vsub.f32 %v8024_v39, %v425_v7 }
 0x11c   :  { %517 = vmin.xlane.f32.xlu1 %v8127_v3  ;;  %519 = vmin.xlane.f32.xlu0 %v8130_v4  ;;  %v428_v11 = vmul.f32 2.0, %v7617_v9  ;;  %v388_v13 = vpop.f32.mrb[31].mxu0 }
 0x11d   :  { %v427_v18 = vmul.f32 2.0, %v388_v13 }
 0x11e   :  { %v8144_v19 = vsub.f32 %v8024_v39, %v428_v11 }
 0x11f   :  { %v8147_v20 = vsub.f32 %v8024_v39, %v427_v18 }
 0x120   :  { %521 = vmin.xlane.f32.xlu1 %v8138_v14  ;;  %523 = vmin.xlane.f32.xlu0 %v8141_v15 }
 0x124   :  { %525 = vmin.xlane.f32.xlu1 %v8133_v8  ;;  %527 = vmin.xlane.f32.xlu0 %v8147_v20 }
 0x128   :  { %529 = vmin.xlane.f32.xlu1 %v8144_v19 }
 0x171   :  { %v470_v25 = vpop.xlane.xlu1 %469 }
 0x172   :  { %vm534_vm1 = vcmp.eq.f32.partialorder %v8027_v43, %v470_v25  ;;  %v468_v26 = vpop.xlane.xlu0 %467 }
 0x173   :  { %v8159_v39 = vsel %vm534_vm1, %v8155_v24, 128  ;;  %vm533_vm2 = vcmp.eq.f32.partialorder %v8030_v45, %v468_v26 }
 0x174   :  { %v8163_v27 = vsel %vm533_vm2, %v8155_v24, 128  ;;  %v612_v30 = vshra.s32 %v8159_v39, 16 }
 0x175   :  { %v474_v31 = vpop.xlane.xlu1 %473  ;;  %v598_v32 = vshra.s32 %v8163_v27, 16 }
 0x176   :  { %vm536_vm3 = vcmp.eq.f32.partialorder %v8035_v49, %v474_v31  ;;  %v472_v33 = vpop.xlane.xlu0 %471  ;;  %v8168_v36 = vcvt.s32.f32 %v612_v30 }
 0x177   :  { %v8171_v43 = vsel %vm536_vm3, %v8155_v24, 128  ;;  %vm535_vm4 = vcmp.eq.f32.partialorder %v8038_v51, %v472_v33  ;;  %v8174_v37 = vcvt.s32.f32 %v598_v32 }
 0x178   :  { %v8177_v45 = vsel %vm535_vm4, %v8155_v24, 128  ;;  %615 = vmin.xlane.f32.xlu1 %v8168_v36  ;;  %v640_v38 = vshra.s32 %v8171_v43, 16 }
 0x179   :  { %601 = vmin.xlane.f32.xlu0 %v8174_v37  ;;  %v626_v49 = vshra.s32 %v8177_v45, 16 }
 0x17a   :  { %v8183_v40 = vcvt.s32.f32 %v640_v38 }
 0x17b   :  { %v8185_v44 = vcvt.s32.f32 %v626_v49 }
 0x17c   :  { %643 = vmin.xlane.f32.xlu1 %v8183_v40 }
 0x17d   :  { %v482_v51 = vpop.xlane.xlu0 %481  ;;  %629 = vmin.xlane.f32.xlu0 %v8185_v44 }
 0x17e   :  { %vm540_vm7 = vcmp.eq.f32.partialorder %v8043_v57, %v482_v51 }
 0x17f   :  { %v8205_v62 = vsel %vm540_vm7, %v8155_v24, 128 }
 0x180   :  { %v696_v11 = vshra.s32 %v8205_v62, 16 }
 0x181   :  { %v480_v46 = vpop.xlane.xlu0 %479  ;;  %v486_v47 = vpop.xlane.xlu1 %485 }
 0x182   :  { %vm539_vm5 = vcmp.eq.f32.partialorder %v8047_v63, %v480_v46  ;;  %vm542_vm10 = vcmp.eq.f32.partialorder %v8050_v0, %v486_v47  ;;  %v8233_v26 = vcvt.s32.f32 %v696_v11 }
 0x183   :  { %v8192_v54 = vsel %vm539_vm5, %v8155_v24, 128  ;;  %v8224_v18 = vsel %vm542_vm10, %v8155_v24, 128 }
 0x184   :  { %v724_v31 = vshra.s32 %v8224_v18, 16 }
 0x185   :  { %v476_v48 = vpop.xlane.xlu0 %475  ;;  %v484_v53 = vpop.xlane.xlu1 %483 }
 0x186   :  { %vm537_vm6 = vcmp.eq.f32.partialorder %v8055_v5, %v476_v48  ;;  %vm541_vm8 = vcmp.eq.f32.partialorder %v8058_v6, %v484_v53  ;;  %v682_v5 = vshra.s32 %v8192_v54, 16  ;;  %v8249_v49 = vcvt.s32.f32 %v724_v31 }
 0x187   :  { %v8195_v55 = vsel %vm537_vm6, %v8155_v24, 128  ;;  %v8208_v1 = vsel %vm541_vm8, %v8155_v24, 128 }
 0x188   :  { %v654_v56 = vshra.s32 %v8195_v55, 16  ;;  %v8219_v9 = vcvt.s32.f32 %v682_v5  ;;  %v710_v13 = vshra.s32 %v8208_v1, 16 }
 0x189   :  { %v478_v60 = vpop.xlane.xlu1 %477  ;;  %v488_v61 = vpop.xlane.xlu0 %487 }
 0x18a   :  { %vm538_vm9 = vcmp.eq.f32.partialorder %v8066_v12, %v478_v60  ;;  %v8201_v63 = vcvt.s32.f32 %v654_v56  ;;  %vm543_vm11 = vcmp.eq.f32.partialorder %v8063_v10, %v488_v61  ;;  %v8235_v30 = vcvt.s32.f32 %v710_v13 }
 0x18b   :  { %v8211_v57 = vsel %vm538_vm9, %v8155_v24, 128  ;;  %v8227_v0 = vsel %vm543_vm11, %v8155_v24, 128 }
 0x18c   :  { %657 = vmin.xlane.f32.xlu0 %v8201_v63  ;;  %v668_v6 = vshra.s32 %v8211_v57, 16  ;;  %v738_v32 = vshra.s32 %v8227_v0, 16 }
 0x18d   :  { %v490_v12 = vpop.xlane.xlu1 %489  ;;  %v492_v2 = vpop.xlane.xlu0 %491 }
 0x18e   :  { %v8217_v7 = vcvt.s32.f32 %v668_v6  ;;  %vm544_vm12 = vcmp.eq.f32.partialorder %v8071_v16, %v490_v12  ;;  %vm545_vm13 = vcmp.eq.f32.partialorder %v8074_v17, %v492_v2  ;;  %v8251_v51 = vcvt.s32.f32 %v738_v32 }
 0x18f   :  { %v8240_v33 = vsel %vm544_vm12, %v8155_v24, 128  ;;  %v8243_v16 = vsel %vm545_vm13, %v8155_v24, 128 }
 0x190   :  { %671 = vmin.xlane.f32.xlu1 %v8217_v7  ;;  %685 = vmin.xlane.f32.xlu0 %v8219_v9  ;;  %v752_v46 = vshra.s32 %v8240_v33, 16  ;;  %v766_v47 = vshra.s32 %v8243_v16, 16 }
 0x191   :  { %v494_v10 = vpop.xlane.xlu1 %493  ;;  %v496_v25 = vpop.xlane.xlu0 %495 }
 0x192   :  { %vm546_vm14 = vcmp.eq.f32.partialorder %v8079_v22, %v494_v10  ;;  %vm547_vm15 = vcmp.eq.f32.partialorder %v8082_v23, %v496_v25  ;;  %v8265_v56 = vcvt.s32.f32 %v752_v46  ;;  %v8267_v60 = vcvt.s32.f32 %v766_v47 }
 0x193   :  { %v8256_v48 = vsel %vm546_vm14, %v8155_v24, 128  ;;  %v8259_v22 = vsel %vm547_vm15, %v8155_v24, 128 }
 0x194   :  { %699 = vmin.xlane.f32.xlu1 %v8233_v26  ;;  %713 = vmin.xlane.f32.xlu0 %v8235_v30  ;;  %v780_v61 = vshra.s32 %v8256_v48, 16  ;;  %v794_v5 = vshra.s32 %v8259_v22, 16 }
 0x195   :  { %v498_v17 = vpop.xlane.xlu1 %497  ;;  %v500_v38 = vpop.xlane.xlu0 %499 }
 0x196   :  { %vm548_vm1 = vcmp.eq.f32.partialorder %v8087_v28, %v498_v17  ;;  %vm549_vm2 = vcmp.eq.f32.partialorder %v8090_v29, %v500_v38  ;;  %v8281_v2 = vcvt.s32.f32 %v780_v61  ;;  %v8283_v11 = vcvt.s32.f32 %v794_v5 }
 0x197   :  { %v8272_v6 = vsel %vm548_vm1, %v8155_v24, 128  ;;  %v8275_v28 = vsel %vm549_vm2, %v8155_v24, 128 }
 0x198   :  { %727 = vmin.xlane.f32.xlu1 %v8249_v49  ;;  %741 = vmin.xlane.f32.xlu0 %v8251_v51  ;;  %v808_v13 = vshra.s32 %v8272_v6, 16  ;;  %v822_v10 = vshra.s32 %v8275_v28, 16 }
 0x199   :  { %v502_v23 = vpop.xlane.xlu1 %501  ;;  %v504_v53 = vpop.xlane.xlu0 %503 }
 0x19a   :  { %vm550_vm3 = vcmp.eq.f32.partialorder %v8095_v34, %v502_v23  ;;  %vm551_vm4 = vcmp.eq.f32.partialorder %v8098_v35, %v504_v53  ;;  %v8297_v32 = vcvt.s32.f32 %v808_v13  ;;  %v8299_v17 = vcvt.s32.f32 %v822_v10 }
 0x19b   :  { %v8288_v25 = vsel %vm550_vm3, %v8155_v24, 128  ;;  %v8291_v34 = vsel %vm551_vm4, %v8155_v24, 128 }
 0x19c   :  { %755 = vmin.xlane.f32.xlu1 %v8265_v56  ;;  %769 = vmin.xlane.f32.xlu0 %v8267_v60  ;;  %v836_v38 = vshra.s32 %v8288_v25, 16  ;;  %v850_v46 = vshra.s32 %v8291_v34, 16 }
 0x19d   :  { %v506_v29 = vpop.xlane.xlu1 %505  ;;  %v508_v12 = vpop.xlane.xlu0 %507 }
 0x19e   :  { %vm552_vm5 = vcmp.eq.f32.partialorder %v8103_v41, %v506_v29  ;;  %vm553_vm6 = vcmp.eq.f32.partialorder %v8106_v42, %v508_v12  ;;  %v8313_v53 = vcvt.s32.f32 %v836_v38  ;;  %v8315_v61 = vcvt.s32.f32 %v850_v46 }
 0x19f   :  { %v8304_v47 = vsel %vm552_vm5, %v8155_v24, 128  ;;  %v8307_v41 = vsel %vm553_vm6, %v8155_v24, 128 }
 0x1a0   :  { %783 = vmin.xlane.f32.xlu1 %v8281_v2  ;;  %797 = vmin.xlane.f32.xlu0 %v8283_v11  ;;  %v864_v5 = vshra.s32 %v8304_v47, 16  ;;  %v878_v29 = vshra.s32 %v8307_v41, 16 }
 0x1a1   :  { %v510_v35 = vpop.xlane.xlu1 %509  ;;  %v512_v31 = vpop.xlane.xlu0 %511 }
 0x1a2   :  { %vm554_vm7 = vcmp.eq.f32.partialorder %v8111_v50, %v510_v35  ;;  %vm555_vm8 = vcmp.eq.f32.partialorder %v8114_v52, %v512_v31  ;;  %v8329_v10 = vcvt.s32.f32 %v864_v5  ;;  %v8331_v35 = vcvt.s32.f32 %v878_v29 }
 0x1a3   :  { %v8320_v12 = vsel %vm554_vm7, %v8155_v24, 128  ;;  %v8323_v50 = vsel %vm555_vm8, %v8155_v24, 128 }
 0x1a4   :  { %811 = vmin.xlane.f32.xlu1 %v8297_v32  ;;  %825 = vmin.xlane.f32.xlu0 %v8299_v17  ;;  %10666 = vst [vmem:[#allocation9_spill] sm:$0xff] %v8323_v50  ;;  %v892_v31 = vshra.s32 %v8320_v12, 16  ;;  %v906_v38 = vshra.s32 %v8323_v50, 16 }
 0x1a5   :  { %v514_v42 = vpop.xlane.xlu1 %513  ;;  %v516_v23 = vpop.xlane.xlu0 %515 }
 0x1a6   :  { %vm556_vm9 = vcmp.eq.f32.partialorder %v8119_v58, %v514_v42  ;;  %vm557_vm10 = vcmp.eq.f32.partialorder %v8122_v59, %v516_v23  ;;  %v8345_v23 = vcvt.s32.f32 %v892_v31  ;;  %v8347_v5 = vcvt.s32.f32 %v906_v38 }
 0x1a7   :  { %v8336_v46 = vsel %vm556_vm9, %v8155_v24, 128  ;;  %v8339_v58 = vsel %vm557_vm10, %v8155_v24, 128 }
 0x1a8   :  { %839 = vmin.xlane.f32.xlu1 %v8313_v53  ;;  %853 = vmin.xlane.f32.xlu0 %v8315_v61  ;;  %10667 = vst [vmem:[#allocation10_spill] sm:$0xff] %v8336_v46  ;;  %10668 = vst [vmem:[#allocation11_spill] sm:$0xff] %v8339_v58  ;;  %v920_v29 = vshra.s32 %v8336_v46, 16  ;;  %v934_v21 = vshra.s32 %v8339_v58, 16 }
 0x1a9   :  { %v518_v52 = vpop.xlane.xlu1 %517  ;;  %v520_v13 = vpop.xlane.xlu0 %519 }
 0x1aa   :  { %vm558_vm11 = vcmp.eq.f32.partialorder %v8127_v3, %v518_v52  ;;  %vm559_vm12 = vcmp.eq.f32.partialorder %v8130_v4, %v520_v13  ;;  %v8361_v13 = vcvt.s32.f32 %v920_v29  ;;  %v8363_v31 = vcvt.s32.f32 %v934_v21 }
 0x1ab   :  { %v8352_v50 = vsel %vm558_vm11, %v8155_v24, 128  ;;  %v8355_v3 = vsel %vm559_vm12, %v8155_v24, 128 }
 0x1ac   :  { %867 = vmin.xlane.f32.xlu1 %v8329_v10  ;;  %881 = vmin.xlane.f32.xlu0 %v8331_v35  ;;  %10669 = vst [vmem:[#allocation12_spill] sm:$0xff] %v8355_v3  ;;  %v948_v38 = vshra.s32 %v8352_v50, 16  ;;  %v962_v58 = vshra.s32 %v8355_v3, 16 }
 0x1ad   :  { %v522_v59 = vpop.xlane.xlu1 %521  ;;  %v524_v42 = vpop.xlane.xlu0 %523 }
 0x1ae   :  { %vm560_vm13 = vcmp.eq.f32.partialorder %v8138_v14, %v522_v59  ;;  %vm561_vm14 = vcmp.eq.f32.partialorder %v8141_v15, %v524_v42  ;;  %v8377_v21 = vcvt.s32.f32 %v948_v38  ;;  %v8379_v59 = vcvt.s32.f32 %v962_v58 }
 0x1af   :  { %v8368_v46 = vsel %vm560_vm13, %v8155_v24, 128  ;;  %v8371_v14 = vsel %vm561_vm14, %v8155_v24, 128 }
 0x1b0   :  { %895 = vmin.xlane.f32.xlu1 %v8345_v23  ;;  %909 = vmin.xlane.f32.xlu0 %v8347_v5  ;;  %v976_v42 = vshra.s32 %v8368_v46, 16  ;;  %v990_v29 = vshra.s32 %v8371_v14, 16 }
 0x1b1   :  { %v526_v4 = vpop.xlane.xlu1 %525  ;;  %v528_v52 = vpop.xlane.xlu0 %527 }
 0x1b2   :  { %vm562_vm15 = vcmp.eq.f32.partialorder %v8133_v8, %v526_v4  ;;  %vm563_vm1 = vcmp.eq.f32.partialorder %v8147_v20, %v528_v52  ;;  %v8392_v20 = vcvt.s32.f32 %v976_v42  ;;  %v8394_v58 = vcvt.s32.f32 %v990_v29 }
 0x1b3   :  { %v8384_v3 = vsel %vm562_vm15, %v8155_v24, 128  ;;  %v8387_v8 = vsel %vm563_vm1, %v8155_v24, 128 }
 0x1b4   :  { %923 = vmin.xlane.f32.xlu1 %v8361_v13  ;;  %937 = vmin.xlane.f32.xlu0 %v8363_v31  ;;  %10670 = vst [vmem:[#allocation13_spill] sm:$0xff] %v8387_v8  ;;  %10671 = vst [vmem:[#allocation14_spill] sm:$0xff] %v8392_v20  ;;  %v1004_v4 = vshra.s32 %v8384_v3, 16  ;;  %v1018_v52 = vshra.s32 %v8387_v8, 16 }
 0x1b5   :  { %v530_v15 = vpop.xlane.xlu1 %529  ;;  %10672 = vst [vmem:[#allocation15_spill] sm:$0xff] %v8394_v58 }
 0x1b6   :  { %vm564_vm2 = vcmp.eq.f32.partialorder %v8144_v19, %v530_v15  ;;  %v8403_v19 = vcvt.s32.f32 %v1004_v4  ;;  %v8405_v15 = vcvt.s32.f32 %v1018_v52  ;;  %v59_v4 = vld [vmem:[%s10640_s2 + $0x8] sm:$0xff]  ;;  %v60_v52 = vld [vmem:[%s10640_s2 + $0x10] sm:$0xff] }
 0x1b7   :  { %v8399_v38 = vsel %vm564_vm2, %v8155_v24, 128  ;;  %v58_v24 = vld [vmem:[%s10640_s2] sm:$0xff] }
 0x1b8   :  { %951 = vmin.xlane.f32.xlu1 %v8377_v21  ;;  %965 = vmin.xlane.f32.xlu0 %v8379_v59  ;;  %10673 = vst [vmem:[#allocation16_spill] sm:$0xff] %v8399_v38  ;;  %10674 = vst [vmem:[#allocation17_spill] sm:$0xff] %v8403_v19  ;;  %v1032_v42 = vshra.s32 %v8399_v38, 16  ;;  %v7706_v38 = vpack.c.bf16 %v59_v4, %v58_v24  ;;  %v64_v24 = vld [vmem:[%s10640_s2 + $0x30] sm:$0xff]  ;;  %v65_v4 = vld [vmem:[%s10640_s2 + $0x38] sm:$0xff] }
 0x1b9   :  { %10675 = vst [vmem:[#allocation18_spill] sm:$0xff] %v8405_v15 }
 0x1ba   :  { %v8410_v29 = vcvt.s32.f32 %v1032_v42  ;;  %v61_v42 = vld [vmem:[%s10640_s2 + $0x18] sm:$0xff]  ;;  %7707 = vmatprep.subr.bf16.mxu0 %v7706_v38  ;;  %7738 = vmatprep.subr.bf16.mxu1 %v7706_v38 }
 0x1bb   :  { %7709 = vmatpush3.bf16.msra.mxu0 %v7706_v38  ;;  %7746 = vmatpush3.bf16.msra.mxu1 %v7706_v38  ;;  %v66_v38 = vld [vmem:[%s10640_s2 + $0x40] sm:$0xff] }
 0x1bc   :  { %979 = vmin.xlane.f32.xlu1 %v8392_v20  ;;  %993 = vmin.xlane.f32.xlu0 %v8394_v58  ;;  %10676 = vst [vmem:[#allocation19_spill] sm:$0xff] %v8410_v29  ;;  %v639_v20 = vand.u32 65535, %v8171_v43 }
 0x1c0   :  { %1007 = vmin.xlane.f32.xlu1 %v8403_v19  ;;  %1021 = vmin.xlane.f32.xlu0 %v8405_v15  ;;  %v7710_v15 = vpack.c.bf16 %v61_v42, %v60_v52  ;;  %v63_v19 = vld [vmem:[%s10640_s2 + $0x28] sm:$0xff]  ;;  %v7718_v52 = vpack.c.bf16 %v65_v4, %v64_v24  ;;  %v69_v42 = vld [vmem:[%s10640_s2 + $0x58] sm:$0xff] }
 0x1c1   :  { %v71_v4 = vld [vmem:[%s10640_s2 + $0x68] sm:$0xff] }
 0x1c2   :  { %7711 = vmatprep.subr.bf16.mxu0 %v7710_v15  ;;  %7739 = vmatprep.subr.bf16.mxu1 %v7710_v15 }
 0x1c3   :  { %7713 = vmatpush3.bf16.msra.mxu0 %v7710_v15  ;;  %7747 = vmatpush3.bf16.msra.mxu1 %v7710_v15  ;;  %v68_v15 = vld [vmem:[%s10640_s2 + $0x50] sm:$0xff] }
 0x1c4   :  { %1035 = vmin.xlane.f32.xlu1 %v8410_v29  ;;  %v62_v29 = vld [vmem:[%s10640_s2 + $0x20] sm:$0xff]  ;;  %v7726_v24 = vpack.c.bf16 %v69_v42, %v68_v15 }
 0x1c5   :  { %v7714_v58 = vpack.c.bf16 %v63_v19, %v62_v29  ;;  %v67_v19 = vld [vmem:[%s10640_s2 + $0x48] sm:$0xff] }
 0x1c6   :  { %v7722_v29 = vpack.c.bf16 %v67_v19, %v66_v38  ;;  %v597_v19 = vand.u32 65535, %v8163_v27 }
 0x1c7   :  { %7715 = vmatprep.subr.bf16.mxu0 %v7714_v58  ;;  %7740 = vmatprep.subr.bf16.mxu1 %v7714_v58 }
 0x1c8   :  { %7717 = vmatpush3.bf16.msra.mxu0 %v7714_v58  ;;  %7748 = vmatpush3.bf16.msra.mxu1 %v7714_v58  ;;  %v70_v58 = vld [vmem:[%s10640_s2 + $0x60] sm:$0xff] }
 0x1c9   :  { %7719 = vmatprep.subr.bf16.mxu0 %v7718_v52  ;;  %7741 = vmatprep.subr.bf16.mxu1 %v7718_v52  ;;  %v7730_v38 = vpack.c.bf16 %v71_v4, %v70_v58  ;;  %v641_v4 = vcvt.s32.f32 %v639_v20  ;;  %v73_v20 = vld [vmem:[%s10640_s2 + $0x78] sm:$0xff] }
 0x1cc   :  { %7721 = vmatpush3.bf16.msra.mxu0 %v7718_v52  ;;  %7749 = vmatpush3.bf16.msra.mxu1 %v7718_v52  ;;  %v611_v52 = vand.u32 65535, %v8159_v39 }
 0x1cd   :  { %7723 = vmatprep.subr.bf16.mxu0 %v7722_v29  ;;  %7742 = vmatprep.subr.bf16.mxu1 %v7722_v29 }
 0x1ce   :  { %v613_v42 = vcvt.s32.f32 %v611_v52  ;;  %v72_v52 = vld [vmem:[%s10640_s2 + $0x70] sm:$0xff] }
 0x1d0   :  { %7725 = vmatpush3.bf16.msra.mxu0 %v7722_v29  ;;  %7750 = vmatpush3.bf16.msra.mxu1 %v7722_v29  ;;  %v599_v29 = vcvt.s32.f32 %v597_v19  ;;  %v7734_v19 = vpack.c.bf16 %v73_v20, %v72_v52  ;;  %v723_v52 = vand.u32 65535, %v8224_v18 }
 0x1d1   :  { %7727 = vmatprep.subr.bf16.mxu0 %v7726_v24  ;;  %7743 = vmatprep.subr.bf16.mxu1 %v7726_v24 }
 0x1d2   :  { %v725_v18 = vcvt.s32.f32 %v723_v52 }
 0x1d4   :  { %7729 = vmatpush3.bf16.msra.mxu0 %v7726_v24  ;;  %7751 = vmatpush3.bf16.msra.mxu1 %v7726_v24  ;;  %v625_v24 = vand.u32 65535, %v8177_v45 }
 0x1d5   :  { %7731 = vmatprep.subr.bf16.mxu0 %v7730_v38  ;;  %7744 = vmatprep.subr.bf16.mxu1 %v7730_v38 }
 0x1d6   :  { %v627_v43 = vcvt.s32.f32 %v625_v24  ;;  %v695_v24 = vand.u32 65535, %v8205_v62 }
 0x1d8   :  { %7733 = vmatpush3.bf16.msra.mxu0 %v7730_v38  ;;  %7752 = vmatpush3.bf16.msra.mxu1 %v7730_v38 }
 0x1d9   :  { %7735 = vmatprep.subr.bf16.mxu0 %v7734_v19  ;;  %7745 = vmatprep.subr.bf16.mxu1 %v7734_v19 }
 0x1dc   :  { %7737 = vmatpush3.bf16.msra.mxu0 %v7734_v19  ;;  %7753 = vmatpush3.bf16.msra.mxu1 %v7734_v19 }
 0x205   :  { %v8457_v15 = vpop.xlane.xlu1 %615 }
 0x206   :  { %v8460_v8 = vpop.xlane.xlu0 %601  ;;  %vm617_vm3 = vcmp.eq.f32.partialorder %v8168_v36, %v8457_v15 }
 0x207   :  { %v618_v58 = vsel %vm617_vm3, %v613_v42, inf  ;;  %vm603_vm4 = vcmp.eq.f32.partialorder %v8174_v37, %v8460_v8  ;;  %v653_v37 = vand.u32 65535, %v8195_v55 }
 0x208   :  { %619 = vmin.xlane.f32.xlu1 %v618_v58  ;;  %v604_v39 = vsel %vm603_vm4, %v599_v29, inf  ;;  %v667_v29 = vand.u32 65535, %v8211_v57  ;;  %v709_v57 = vand.u32 65535, %v8208_v1  ;;  %v737_v1 = vand.u32 65535, %v8227_v0 }
 0x209   :  { %v8467_v27 = vpop.xlane.xlu1 %643  ;;  %605 = vmin.xlane.f32.xlu0 %v604_v39  ;;  %v655_v42 = vcvt.s32.f32 %v653_v37  ;;  %v751_v0 = vand.u32 65535, %v8240_v33  ;;  %v779_v33 = vand.u32 65535, %v8256_v48  ;;  %v807_v48 = vand.u32 65535, %v8272_v6 }
 0x20a   :  { %v8469_v38 = vpop.xlane.xlu0 %629  ;;  %vm645_vm5 = vcmp.eq.f32.partialorder %v8183_v40, %v8467_v27  ;;  %v711_v37 = vcvt.s32.f32 %v709_v57  ;;  %v835_v6 = vand.u32 65535, %v8288_v25  ;;  %v863_v25 = vand.u32 65535, %v8304_v47 }
 0x20b   :  { %v646_v36 = vsel %vm645_vm5, %v641_v4, inf  ;;  %vm631_vm6 = vcmp.eq.f32.partialorder %v8185_v44, %v8469_v38  ;;  %v681_v44 = vand.u32 65535, %v8192_v54  ;;  %v669_v4 = vcvt.s32.f32 %v667_v29 }
 0x20c   :  { %647 = vmin.xlane.f32.xlu1 %v646_v36  ;;  %v632_v45 = vsel %vm631_vm6, %v627_v43, inf  ;;  %v697_v36 = vcvt.s32.f32 %v695_v24  ;;  %v739_v29 = vcvt.s32.f32 %v737_v1  ;;  %v809_v1 = vcvt.s32.f32 %v807_v48 }
 0x20d   :  { %633 = vmin.xlane.f32.xlu0 %v632_v45  ;;  %v683_v43 = vcvt.s32.f32 %v681_v44  ;;  %v891_v47 = vand.u32 65535, %v8320_v12 }
 0x219   :  { %v8482_v40 = vpop.xlane.xlu0 %657 }
 0x21a   :  { %vm659_vm7 = vcmp.eq.f32.partialorder %v8201_v63, %v8482_v40 }
 0x21b   :  { %v660_v55 = vsel %vm659_vm7, %v655_v42, inf }
 0x21c   :  { %661 = vmin.xlane.f32.xlu0 %v660_v55 }
 0x21d   :  { %v8489_v58 = vpop.xlane.xlu1 %671  ;;  %v8491_v39 = vpop.xlane.xlu0 %685 }
 0x21e   :  { %vm673_vm8 = vcmp.eq.f32.partialorder %v8217_v7, %v8489_v58  ;;  %vm687_vm9 = vcmp.eq.f32.partialorder %v8219_v9, %v8491_v39  ;;  %v7841_v7 = vmov 0  }
 0x21f   :  { %v674_v54 = vsel %vm673_vm8, %v669_v4, inf  ;;  %v688_v63 = vsel %vm687_vm9, %v683_v43, inf  ;;  %7759 = vset.pattern.permute.xlu1 %v7841_v7  ;;  %7760 = vset.pattern.permute.xlu0 %v7841_v7  ;;  %v753_v4 = vcvt.s32.f32 %v751_v0 }
 0x220   :  { %675 = vmin.xlane.f32.xlu1 %v674_v54  ;;  %689 = vmin.xlane.f32.xlu0 %v688_v63  ;;  %v781_v63 = vcvt.s32.f32 %v779_v33 }
 0x221   :  { %v8498_v62 = vpop.xlane.xlu1 %699  ;;  %v8500_v45 = vpop.xlane.xlu0 %713 }
 0x222   :  { %vm701_vm10 = vcmp.eq.f32.partialorder %v8233_v26, %v8498_v62  ;;  %vm715_vm11 = vcmp.eq.f32.partialorder %v8235_v30, %v8500_v45  ;;  %v765_v26 = vand.u32 65535, %v8243_v16  ;;  %v793_v16 = vand.u32 65535, %v8259_v22 }
 0x223   :  { %v702_v9 = vsel %vm701_vm10, %v697_v36, inf  ;;  %v716_v20 = vsel %vm715_vm11, %v711_v37, inf  ;;  %v821_v22 = vand.u32 65535, %v8275_v28  ;;  %v849_v28 = vand.u32 65535, %v8291_v34 }
 0x224   :  { %703 = vmin.xlane.f32.xlu1 %v702_v9  ;;  %717 = vmin.xlane.f32.xlu0 %v716_v20  ;;  %v767_v43 = vcvt.s32.f32 %v765_v26  ;;  %v795_v36 = vcvt.s32.f32 %v793_v16  ;;  %v877_v34 = vand.u32 65535, %v8307_v41  ;;  %v893_v16 = vcvt.s32.f32 %v891_v47 }
 0x225   :  { %v8508_v19 = vpop.xlane.xlu1 %727  ;;  %v8510_v42 = vpop.xlane.xlu0 %741  ;;  %v823_v7 = vcvt.s32.f32 %v821_v22 }
 0x226   :  { %vm729_vm12 = vcmp.eq.f32.partialorder %v8249_v49, %v8508_v19  ;;  %vm743_vm13 = vcmp.eq.f32.partialorder %v8251_v51, %v8510_v42 }
 0x227   :  { %v730_v30 = vsel %vm729_vm12, %v725_v18, inf  ;;  %v744_v44 = vsel %vm743_vm13, %v739_v29, inf  ;;  %v837_v18 = vcvt.s32.f32 %v835_v6  ;;  %v851_v29 = vcvt.s32.f32 %v849_v28 }
 0x228   :  { %731 = vmin.xlane.f32.xlu1 %v730_v30  ;;  %745 = vmin.xlane.f32.xlu0 %v744_v44  ;;  %v865_v30 = vcvt.s32.f32 %v863_v25  ;;  %v879_v44 = vcvt.s32.f32 %v877_v34 }
 0x229   :  { %v8518_v55 = vpop.xlane.xlu1 %755  ;;  %v8520_v24 = vpop.xlane.xlu0 %769 }
 0x22a   :  { %vm757_vm14 = vcmp.eq.f32.partialorder %v8265_v56, %v8518_v55  ;;  %vm771_vm15 = vcmp.eq.f32.partialorder %v8267_v60, %v8520_v24 }
 0x22b   :  { %v758_v49 = vsel %vm757_vm14, %v753_v4, inf  ;;  %v772_v51 = vsel %vm771_vm15, %v767_v43, inf  ;;  %v10677_v4 = vld [vmem:[#allocation9_spill] sm:$0xff] }
 0x22c   :  { %759 = vmin.xlane.f32.xlu1 %v758_v49  ;;  %773 = vmin.xlane.f32.xlu0 %v772_v51  ;;  %v905_v41 = vand.u32 65535, %v10677_v4  ;;  %v10678_v51 = vld [vmem:[#allocation10_spill] sm:$0xff] }
 0x22d   :  { %v8528_v57 = vpop.xlane.xlu1 %783  ;;  %v8530_v54 = vpop.xlane.xlu0 %797  ;;  %v919_v12 = vand.u32 65535, %v10678_v51  ;;  %v10686_v51 = vld [vmem:[#allocation18_spill] sm:$0xff] }
 0x22e   :  { %vm785_vm1 = vcmp.eq.f32.partialorder %v8281_v2, %v8528_v57  ;;  %vm799_vm2 = vcmp.eq.f32.partialorder %v8283_v11, %v8530_v54  ;;  %v907_v49 = vcvt.s32.f32 %v905_v41 }
 0x22f   :  { %v786_v56 = vsel %vm785_vm1, %v781_v63, inf  ;;  %v800_v60 = vsel %vm799_vm2, %v795_v36, inf  ;;  %v10679_v63 = vld [vmem:[#allocation11_spill] sm:$0xff] }
 0x230   :  { %787 = vmin.xlane.f32.xlu1 %v786_v56  ;;  %801 = vmin.xlane.f32.xlu0 %v800_v60  ;;  %v933_v36 = vand.u32 65535, %v10679_v63  ;;  %v921_v56 = vcvt.s32.f32 %v919_v12 }
 0x231   :  { %v8538_v37 = vpop.xlane.xlu1 %811  ;;  %v8540_v52 = vpop.xlane.xlu0 %825 }
 0x232   :  { %vm813_vm3 = vcmp.eq.f32.partialorder %v8297_v32, %v8538_v37  ;;  %vm827_vm4 = vcmp.eq.f32.partialorder %v8299_v17, %v8540_v52  ;;  %v935_v60 = vcvt.s32.f32 %v933_v36 }
 0x233   :  { %v814_v2 = vsel %vm813_vm3, %v809_v1, inf  ;;  %v828_v11 = vsel %vm827_vm4, %v823_v7, inf  ;;  %v947_v1 = vand.u32 65535, %v8352_v50  ;;  %v10680_v7 = vld [vmem:[#allocation12_spill] sm:$0xff]  ;;  %v975_v50 = vand.u32 65535, %v8368_v46 }
 0x234   :  { %815 = vmin.xlane.f32.xlu1 %v814_v2  ;;  %829 = vmin.xlane.f32.xlu0 %v828_v11  ;;  %v961_v6 = vand.u32 65535, %v10680_v7  ;;  %v1003_v46 = vand.u32 65535, %v8384_v3  ;;  %v650_v7 = vcvt.f32.s32 %v8467_v27  ;;  %v664_v27 = vcvt.f32.s32 %v8482_v40 }
 0x235   :  { %v8548_v9 = vpop.xlane.xlu1 %839  ;;  %v8550_v20 = vpop.xlane.xlu0 %853  ;;  %v949_v11 = vcvt.s32.f32 %v947_v1  ;;  %v608_v1 = vcvt.f32.s32 %v8460_v8  ;;  %v720_v40 = vcvt.f32.s32 %v8500_v45  ;;  %v804_v45 = vcvt.f32.s32 %v8530_v54 }
 0x236   :  { %vm841_vm5 = vcmp.eq.f32.partialorder %v8313_v53, %v8548_v9  ;;  %vm855_vm6 = vcmp.eq.f32.partialorder %v8315_v61, %v8550_v20 }
 0x237   :  { %v842_v32 = vsel %vm841_vm5, %v837_v18, inf  ;;  %v856_v17 = vsel %vm855_vm6, %v851_v29, inf  ;;  %v963_v18 = vcvt.s32.f32 %v961_v6  ;;  %v989_v29 = vand.u32 65535, %v8371_v14 }
 0x238   :  { %843 = vmin.xlane.f32.xlu1 %v842_v32  ;;  %857 = vmin.xlane.f32.xlu0 %v856_v17  ;;  %v977_v32 = vcvt.s32.f32 %v975_v50  ;;  %v636_v6 = vcvt.f32.s32 %v8469_v38 }
 0x239   :  { %v8558_v0 = vpop.xlane.xlu1 %867  ;;  %v8560_v26 = vpop.xlane.xlu0 %881  ;;  %v991_v17 = vcvt.s32.f32 %v989_v29  ;;  %v8630_v29 = vshll.u32 %v608_v1, 16 }
 0x23a   :  { %vm869_vm7 = vcmp.eq.f32.partialorder %v8329_v10, %v8558_v0  ;;  %vm883_vm8 = vcmp.eq.f32.partialorder %v8331_v35, %v8560_v26 }
 0x23b   :  { %v870_v53 = vsel %vm869_vm7, %v865_v30, inf  ;;  %v884_v61 = vsel %vm883_vm8, %v879_v44, inf  ;;  %v10681_v30 = vld [vmem:[#allocation13_spill] sm:$0xff]  ;;  %v10682_v44 = vld [vmem:[#allocation14_spill] sm:$0xff] }
 0x23c   :  { %871 = vmin.xlane.f32.xlu1 %v870_v53  ;;  %885 = vmin.xlane.f32.xlu0 %v884_v61  ;;  %v1017_v14 = vand.u32 65535, %v10681_v30  ;;  %v1005_v53 = vcvt.s32.f32 %v1003_v46  ;;  %v678_v46 = vcvt.f32.s32 %v8489_v58  ;;  %v692_v30 = vcvt.f32.s32 %v8491_v39 }
 0x23d   :  { %v8568_v43 = vpop.xlane.xlu1 %895  ;;  %v8570_v33 = vpop.xlane.xlu0 %909  ;;  %v776_v58 = vcvt.f32.s32 %v8520_v24  ;;  %v8683_v24 = vshll.u32 %v720_v40, 16 }
 0x23e   :  { %vm897_vm9 = vcmp.eq.f32.partialorder %v8345_v23, %v8568_v43  ;;  %vm911_vm10 = vcmp.eq.f32.partialorder %v8347_v5, %v8570_v33  ;;  %v1019_v61 = vcvt.s32.f32 %v1017_v14 }
 0x23f   :  { %v898_v10 = vsel %vm897_vm9, %v893_v16, inf  ;;  %v912_v35 = vsel %vm911_vm10, %v907_v49, inf  ;;  %v10684_v16 = vld [vmem:[#allocation16_spill] sm:$0xff]  ;;  %v10685_v49 = vld [vmem:[#allocation17_spill] sm:$0xff] }
 0x240   :  { %899 = vmin.xlane.f32.xlu1 %v898_v10  ;;  %913 = vmin.xlane.f32.xlu0 %v912_v35  ;;  %v1031_v3 = vand.u32 65535, %v10684_v16  ;;  %v10687_v35 = vld [vmem:[#allocation19_spill] sm:$0xff]  ;;  %v8669_v16 = vshll.u32 %v664_v27, 16 }
 0x241   :  { %v8578_v48 = vpop.xlane.xlu1 %923  ;;  %v8580_v22 = vpop.xlane.xlu0 %937 }
 0x242   :  { %vm925_vm11 = vcmp.eq.f32.partialorder %v8361_v13, %v8578_v48  ;;  %vm939_vm12 = vcmp.eq.f32.partialorder %v8363_v31, %v8580_v22  ;;  %v1033_v10 = vcvt.s32.f32 %v1031_v3  ;;  %v8673_v3 = vshll.u32 %v678_v46, 16 }
 0x243   :  { %v926_v23 = vsel %vm925_vm11, %v921_v56, inf  ;;  %v940_v5 = vsel %vm939_vm12, %v935_v60, inf  ;;  %v622_v60 = vcvt.f32.s32 %v8457_v15 }
 0x244   :  { %927 = vmin.xlane.f32.xlu1 %v926_v23  ;;  %941 = vmin.xlane.f32.xlu0 %v940_v5  ;;  %v10688_v23 = vlaneseq }
 0x245   :  { %v8588_v28 = vpop.xlane.xlu1 %951  ;;  %v8590_v2 = vpop.xlane.xlu0 %965  ;;  %v8628_v50 = vshll.u32 %v622_v60, 16  ;;  %v874_v60 = vcvt.f32.s32 %v8558_v0 }
 0x246   :  { %vm953_vm13 = vcmp.eq.f32.partialorder %v8377_v21, %v8588_v28  ;;  %vm967_vm14 = vcmp.eq.f32.partialorder %v8379_v59, %v8590_v2  ;;  %v10683_v21 = vld [vmem:[#allocation15_spill] sm:$0xff]  ;;  %v8626_v5 = vshrl.u32 %v10688_v23, 7  ;;  %v958_v27 = vcvt.f32.s32 %v8588_v28 }
 0x247   :  { %v954_v13 = vsel %vm953_vm13, %v949_v11, inf  ;;  %v968_v31 = vsel %vm967_vm14, %v963_v18, inf  ;;  %v7842_v11 = vmov 1966171168  }
 0x248   :  { %955 = vmin.xlane.f32.xlu1 %v954_v13  ;;  %969 = vmin.xlane.f32.xlu0 %v968_v31  ;;  %10689 = vst [vmem:[#allocation9_spill] sm:$0xff] %v8626_v5  ;;  %v2427_v18 = vunpack.c.l.s4 %v7842_v11  ;;  %v8632_v13 = vshll.u32 %v650_v7, 16  ;;  %v8634_v31 = vshll.u32 %v636_v6, 16  ;;  %v8637_v15 = vsub.s32 0, %v8626_v5 }
 0x249   :  { %v8598_v25 = vpop.xlane.xlu1 %979  ;;  %v8600_v34 = vpop.xlane.xlu0 %993  ;;  %v8640_v8 = vsub.s32 1, %v8626_v5  ;;  %v8644_v38 = vsub.s32 2, %v8626_v5  ;;  %v8655_v14 = vsub.s32 5, %v8626_v5  ;;  %v8667_v39 = vsub.s32 7, %v8626_v5 }
 0x24a   :  { %vm981_vm15 = vcmp.eq.f32.partialorder %v10682_v44, %v8598_v25  ;;  %vm995_vm1 = vcmp.eq.f32.partialorder %v10683_v21, %v8600_v34  ;;  %v2428_v44 = vunpack.c.0.s8 %v2427_v18  ;;  %v706_v21 = vcvt.f32.s32 %v8498_v62 }
 0x24b   :  { %v982_v59 = vsel %vm981_vm15, %v977_v32, inf  ;;  %v996_v47 = vsel %vm995_vm1, %v991_v17, inf  ;;  %v8647_v32 = vsub.s32 3, %v8626_v5  ;;  %v8650_v17 = vsub.s32 4, %v8626_v5 }
 0x24c   :  { %983 = vmin.xlane.f32.xlu1 %v982_v59  ;;  %997 = vmin.xlane.f32.xlu0 %v996_v47  ;;  %v734_v59 = vcvt.f32.s32 %v8508_v19  ;;  %v8661_v47 = vsub.s32 6, %v8626_v5  ;;  %v790_v62 = vcvt.f32.s32 %v8528_v57  ;;  %v8675_v19 = vshll.u32 %v692_v30, 16 }
 0x24d   :  { %v8608_v4 = vpop.xlane.xlu1 %1007  ;;  %v8610_v41 = vpop.xlane.xlu0 %1021  ;;  %v902_v7 = vcvt.f32.s32 %v8568_v43  ;;  %v916_v6 = vcvt.f32.s32 %v8570_v33  ;;  %v944_v18 = vcvt.f32.s32 %v8580_v22  ;;  %v986_v0 = vcvt.f32.s32 %v8598_v25 }
 0x24e   :  { %vm1009_vm2 = vcmp.eq.f32.partialorder %v10685_v49, %v8608_v4  ;;  %vm1023_vm3 = vcmp.eq.f32.partialorder %v10686_v51, %v8610_v41  ;;  %v818_v49 = vcvt.f32.s32 %v8538_v37  ;;  %v8685_v51 = vshll.u32 %v734_v59, 16 }
 0x24f   :  { %v1010_v12 = vsel %vm1009_vm2, %v1005_v53, inf  ;;  %v1024_v63 = vsel %vm1023_vm3, %v1019_v61, inf  ;;  %v748_v53 = vcvt.f32.s32 %v8510_v42  ;;  %v762_v61 = vcvt.f32.s32 %v8518_v55 }
 0x250   :  { %1011 = vmin.xlane.f32.xlu1 %v1010_v12  ;;  %1025 = vmin.xlane.f32.xlu0 %v1024_v63  ;;  %v8679_v42 = vsub.s32 %v2428_v44, %v8626_v5  ;;  %v8681_v55 = vshll.u32 %v706_v21, 16  ;;  %v832_v12 = vcvt.f32.s32 %v8540_v52  ;;  %v8692_v63 = vshll.u32 %v776_v58, 16 }
 0x251   :  { %v8617_v36 = vpop.xlane.xlu1 %1035  ;;  %v8688_v57 = vshll.u32 %v748_v53, 16  ;;  %v8690_v54 = vshll.u32 %v762_v61, 16  ;;  %v8695_v37 = vshll.u32 %v790_v62, 16  ;;  %v8701_v1 = vshll.u32 %v818_v49, 16 }
 0x252   :  { %vm1037_vm4 = vcmp.eq.f32.partialorder %v10687_v35, %v8617_v36  ;;  %v8697_v35 = vshll.u32 %v804_v45, 16  ;;  %v888_v52 = vcvt.f32.s32 %v8560_v26  ;;  %v8706_v11 = vshll.u32 %v832_v12, 16 }
 0x253   :  { %v1038_v56 = vsel %vm1037_vm4, %v1033_v10, inf  ;;  %v846_v10 = vcvt.f32.s32 %v8548_v9  ;;  %v930_v9 = vcvt.f32.s32 %v8578_v48  ;;  %v1000_v26 = vcvt.f32.s32 %v8600_v34 }
 0x254   :  { %1039 = vmin.xlane.f32.xlu1 %v1038_v56  ;;  %v860_v56 = vcvt.f32.s32 %v8550_v20  ;;  %v972_v20 = vcvt.f32.s32 %v8590_v2  ;;  %v8718_v43 = vshll.u32 %v874_v60, 16  ;;  %v1014_v33 = vcvt.f32.s32 %v8608_v4 }
 0x255   :  { %v8711_v46 = vshll.u32 %v846_v10, 16  ;;  %v1028_v48 = vcvt.f32.s32 %v8610_v41  ;;  %v8722_v22 = vshll.u32 %v888_v52, 16  ;;  %v8724_v28 = vshll.u32 %v902_v7, 16  ;;  %v10690_v52 = vld [vmem:[#allocation8_spill] sm:$0xff] }
 0x256   :  { %v8716_v30 = vshll.u32 %v860_v56, 16  ;;  %v8726_v21 = vshll.u32 %v916_v6, 16  ;;  %v8728_v25 = vshll.u32 %v930_v9, 16  ;;  %v8730_v34 = vshll.u32 %v944_v18, 16 }
 0x257   :  { %v8732_v59 = vshll.u32 %v958_v27, 16  ;;  %v8734_v61 = vshll.u32 %v972_v20, 16  ;;  %v8736_v4 = vshll.u32 %v986_v0, 16  ;;  %v8738_v41 = vshll.u32 %v1000_v26, 16 }
 0x258   :  { %v8741_v62 = vshll.u32 %v1014_v33, 16  ;;  %v8743_v45 = vshll.u32 %v1028_v48, 16  ;;  %v10660_v20 = vmov 1.0  }
 0x295   :  { %v620_v44 = vpop.xlane.xlu1 %619 }
 0x296   :  { %v621_v2 = vcvt.f32.s32 %v620_v44  ;;  %v606_v40 = vpop.xlane.xlu0 %605 }
 0x297   :  { %v607_v53 = vcvt.f32.s32 %v606_v40 }
 0x298   :  { %v624_v58 = vadd.s32 %v8628_v50, %v621_v2 }
 0x299   :  { %v610_v12 = vadd.s32 %v8630_v29, %v607_v53  ;;  %v648_v10 = vpop.xlane.xlu1 %647 }
 0x29a   :  { %v649_v56 = vcvt.f32.s32 %v648_v10  ;;  %v634_v60 = vpop.xlane.xlu0 %633  ;;  %vm1046_vm5 = vcmp.eq.s32.totalorder %v10690_v52, %v624_v58  ;;  %v1433_v7 = vrot.slane %v624_v58, %v8637_v15  ;;  %v1437_v6 = vrot.slane %v624_v58, %v8640_v8 }
 0x29b   :  { %v635_v9 = vcvt.f32.s32 %v634_v60  ;;  %vm1045_vm6 = vcmp.eq.s32.totalorder %v10690_v52, %v610_v12  ;;  %v1441_v50 = vrot.slane %v624_v58, %v8644_v38  ;;  %v1445_v18 = vrot.slane %v624_v58, %v8647_v32 }
 0x29c   :  { %v652_v27 = vadd.s32 %v8632_v13, %v649_v56  ;;  %7650 = vmatprep.mubr.msk.f32.mxu0 %vm1045_vm6, %v10660_v20  ;;  %v1449_v29 = vrot.slane %v624_v58, %v8650_v17  ;;  %v1453_v0 = vrot.slane %v624_v58, %v8655_v14  ;;  %v1457_v26 = vrot.slane %v624_v58, %v8661_v47 }
 0x29d   :  { %v8759_v33 = vadd.s32 %v8634_v31, %v635_v9  ;;  %7651 = vmatmul.mubr.msk.f32.vlgmr.msra.gmra.mrb[32].mxu0 %vm1046_vm5, %v10660_v20  ;;  %v1461_v48 = vrot.slane %v624_v58, %v8667_v39  ;;  %v2471_v44 = vcombine.low %v1433_v7, %v1437_v6  ;;  %v2472_v2 = vcombine.low %v1441_v50, %v1445_v18 }
 0x29e   :  { %vm1048_vm7 = vcmp.eq.s32.totalorder %v10690_v52, %v652_v27  ;;  %v2473_v13 = vcombine.low %v1449_v29, %v1453_v0  ;;  %v1401_v40 = vrot.slane %v610_v12, %v8637_v15  ;;  %v1405_v53 = vrot.slane %v610_v12, %v8640_v8 }
 0x29f   :  { %vm1047_vm8 = vcmp.eq.s32.totalorder %v10690_v52, %v8759_v33  ;;  %v2474_v10 = vcombine.low %v1457_v26, %v1461_v48  ;;  %v2481_v31 = vrot.slane %v2471_v44, %v8679_v42  ;;  %v2488_v56 = vrot.slane %v2472_v2, %v8679_v42 }
 0x2a0   :  { %7653 = vmatprep.mubr.msk.f32.mxu0 %vm1047_vm8, %v10660_v20  ;;  %v2495_v58 = vrot.slane %v2473_v13, %v8679_v42  ;;  %v1409_v60 = vrot.slane %v610_v12, %v8644_v38  ;;  %v1413_v7 = vrot.slane %v610_v12, %v8647_v32  ;;  %v1417_v6 = vrot.slane %v610_v12, %v8650_v17 }
 0x2a1   :  { %7654 = vmatmul.mubr.msk.f32.gmra.mrb[34].mxu0 %vm1048_vm7, %v10660_v20  ;;  %v2502_v9 = vrot.slane %v2474_v10, %v8679_v42  ;;  %v2503_v50 = vcombine.low %v2481_v31, %v2488_v56  ;;  %v1421_v18 = vrot.slane %v610_v12, %v8655_v14  ;;  %v1425_v29 = vrot.slane %v610_v12, %v8661_v47 }
 0x2a2   :  { %v1429_v0 = vrot.slane %v610_v12, %v8667_v39  ;;  %v2422_v26 = vcombine.low %v1401_v40, %v1405_v53  ;;  %v2423_v48 = vcombine.low %v1409_v60, %v1413_v7  ;;  %v1497_v44 = vrot.slane %v652_v27, %v8637_v15 }
 0x2a3   :  { %v2504_v2 = vcombine.low %v2495_v58, %v2502_v9  ;;  %v2511_v13 = vrot.slane %v2503_v50, %v8679_v42  ;;  %v2424_v49 = vcombine.low %v1417_v6, %v1421_v18  ;;  %v1501_v23 = vrot.slane %v652_v27, %v8640_v8 }
 0x2a4   :  { %v2425_v20 = vcombine.low %v1425_v29, %v1429_v0  ;;  %v2432_v10 = vrot.slane %v2422_v26, %v8679_v42  ;;  %v2439_v31 = vrot.slane %v2423_v48, %v8679_v42  ;;  %v1505_v56 = vrot.slane %v652_v27, %v8644_v38 }
 0x2a5   :  { %v2518_v5 = vrot.slane %v2504_v2, %v8679_v42  ;;  %v2446_v12 = vrot.slane %v2424_v49, %v8679_v42  ;;  %v1509_v40 = vrot.slane %v652_v27, %v8647_v32  ;;  %v1513_v53 = vrot.slane %v652_v27, %v8650_v17 }
 0x2a6   :  { %v2453_v58 = vrot.slane %v2425_v20, %v8679_v42  ;;  %v2454_v60 = vcombine.low %v2432_v10, %v2439_v31  ;;  %v1517_v7 = vrot.slane %v652_v27, %v8655_v14  ;;  %v1521_v6 = vrot.slane %v652_v27, %v8661_v47 }
 0x2a7   :  { %v2519_v9 = vcombine.low %v2511_v13, %v2518_v5  ;;  %v1525_v50 = vrot.slane %v652_v27, %v8667_v39  ;;  %v2569_v18 = vcombine.low %v1497_v44, %v1501_v23  ;;  %v2570_v29 = vcombine.low %v1505_v56, %v1509_v40 }
 0x2a8   :  { %v2455_v0 = vcombine.low %v2446_v12, %v2453_v58  ;;  %v2462_v26 = vrot.slane %v2454_v60, %v8679_v42  ;;  %v2571_v49 = vcombine.low %v1513_v53, %v1517_v7  ;;  %v1465_v48 = vrot.slane %v8759_v33, %v8637_v15 }
 0x2a9   :  { %3994 = vperm.xlu1 %7759, %v2519_v9   ;;  %v662_v2 = vpop.xlane.xlu0 %661  ;;  %v2572_v20 = vcombine.low %v1521_v6, %v1525_v50  ;;  %v2579_v10 = vrot.slane %v2569_v18, %v8679_v42  ;;  %v2586_v31 = vrot.slane %v2570_v29, %v8679_v42  ;;  %v1469_v5 = vrot.slane %v8759_v33, %v8640_v8 }
 0x2aa   :  { %v2469_v23 = vrot.slane %v2455_v0, %v8679_v42  ;;  %v663_v27 = vcvt.f32.s32 %v662_v2  ;;  %v2593_v44 = vrot.slane %v2571_v49, %v8679_v42  ;;  %v1473_v13 = vrot.slane %v8759_v33, %v8644_v38 }
 0x2ab   :  { %v2600_v56 = vrot.slane %v2572_v20, %v8679_v42  ;;  %v2601_v12 = vcombine.low %v2579_v10, %v2586_v31  ;;  %v1477_v40 = vrot.slane %v8759_v33, %v8647_v32  ;;  %v1481_v53 = vrot.slane %v8759_v33, %v8650_v17 }
 0x2ac   :  { %v2470_v58 = vcombine.low %v2462_v26, %v2469_v23  ;;  %v8811_v60 = vadd.s32 %v8669_v16, %v663_v27  ;;  %v1485_v7 = vrot.slane %v8759_v33, %v8655_v14  ;;  %v1489_v6 = vrot.slane %v8759_v33, %v8661_v47 }
 0x2ad   :  { %v2602_v9 = vcombine.low %v2593_v44, %v2600_v56  ;;  %v2609_v50 = vrot.slane %v2601_v12, %v8679_v42  ;;  %v676_v18 = vpop.xlane.xlu1 %675  ;;  %v690_v29 = vpop.xlane.xlu0 %689  ;;  %v1493_v0 = vrot.slane %v8759_v33, %v8667_v39  ;;  %v2520_v49 = vcombine.low %v1465_v48, %v1469_v5 }
 0x2ae   :  { %3991 = vperm.xlu0 %7760, %v2470_v58   ;;  %v677_v26 = vcvt.f32.s32 %v676_v18  ;;  %v691_v2 = vcvt.f32.s32 %v690_v29  ;;  %v2521_v16 = vcombine.low %v1473_v13, %v1477_v40  ;;  %v2522_v20 = vcombine.low %v1481_v53, %v1485_v7 }
 0x2af   :  { %v2616_v10 = vrot.slane %v2602_v9, %v8679_v42  ;;  %v2523_v31 = vcombine.low %v1489_v6, %v1493_v0  ;;  %v2530_v23 = vrot.slane %v2520_v49, %v8679_v42  ;;  %vm1049_vm9 = vcmp.eq.s32.totalorder %v10690_v52, %v8811_v60 }
 0x2b0   :  { %v680_v27 = vadd.s32 %v8673_v3, %v677_v26  ;;  %v8826_v44 = vadd.s32 %v8675_v19, %v691_v2  ;;  %v2537_v33 = vrot.slane %v2521_v16, %v8679_v42  ;;  %v2544_v48 = vrot.slane %v2522_v20, %v8679_v42 }
 0x2b1   :  { %v10691_v5 = vmov 1.0   ;;  %v2617_v13 = vcombine.low %v2609_v50, %v2616_v10  ;;  %v2551_v56 = vrot.slane %v2523_v31, %v8679_v42  ;;  %v704_v12 = vpop.xlane.xlu1 %703  ;;  %v718_v40 = vpop.xlane.xlu0 %717  ;;  %v1529_v53 = vrot.slane %v8811_v60, %v8637_v15 }
 0x2b2   :  { %7656 = vmatprep.mubr.msk.f32.mxu0 %vm1049_vm9, %v10691_v5  ;;  %v1533_v3 = vrot.slane %v8811_v60, %v8640_v8  ;;  %v2552_v58 = vcombine.low %v2530_v23, %v2537_v33  ;;  %v705_v19 = vcvt.f32.s32 %v704_v12  ;;  %v719_v7 = vcvt.f32.s32 %v718_v40 }
 0x2b3   :  { %vm1050_vm10 = vcmp.eq.s32.totalorder %v10690_v52, %v680_v27  ;;  %v10692_v6 = vcvt.f32.s32 %v8617_v36  ;;  %4000 = vperm.xlu1 %7759, %v2617_v13   ;;  %v2553_v50 = vcombine.low %v2544_v48, %v2551_v56  ;;  %vm1051_vm11 = vcmp.eq.s32.totalorder %v10690_v52, %v8826_v44 }
 0x2b4   :  { %7657 = vmatmul.mubr.msk.f32.gmra.mrb[36].mxu0 %vm1050_vm10, %v10691_v5  ;;  %v1561_v18 = vrot.slane %v680_v27, %v8637_v15  ;;  %v2560_v29 = vrot.slane %v2552_v58, %v8679_v42  ;;  %v8847_v0 = vadd.s32 %v8681_v55, %v705_v19  ;;  %v8850_v49 = vadd.s32 %v8683_v24, %v719_v7 }
 0x2b5   :  { %v8839_v9 = vshll.u32 %v10692_v6, 16  ;;  %7659 = vmatprep.mubr.msk.f32.mxu1 %vm1051_vm11, %v10691_v5  ;;  %v1565_v36 = vrot.slane %v680_v27, %v8640_v8  ;;  %v2567_v26 = vrot.slane %v2553_v50, %v8679_v42  ;;  %v732_v2 = vpop.xlane.xlu1 %731  ;;  %v746_v16 = vpop.xlane.xlu0 %745  ;;  %v1569_v20 = vrot.slane %v680_v27, %v8644_v38 }
 0x2b6   :  { %v1573_v10 = vrot.slane %v680_v27, %v8647_v32  ;;  %v1577_v31 = vrot.slane %v680_v27, %v8650_v17  ;;  %v733_v23 = vcvt.f32.s32 %v732_v2  ;;  %v747_v55 = vcvt.f32.s32 %v746_v16 }
 0x2b7   :  { %vm1052_vm12 = vcmp.eq.s32.totalorder %v10690_v52, %v8847_v0  ;;  %vm1053_vm13 = vcmp.eq.s32.totalorder %v10690_v52, %v8850_v49  ;;  %v2568_v24 = vcombine.low %v2560_v29, %v2567_v26  ;;  %v1581_v33 = vrot.slane %v680_v27, %v8655_v14 }
 0x2b8   :  { %7660 = vmatmul.mubr.msk.f32.vlgmr.msra.gmra.mrb[0].mxu1 %vm1052_vm12, %v10691_v5  ;;  %v1585_v48 = vrot.slane %v680_v27, %v8661_v47  ;;  %v1589_v13 = vrot.slane %v680_v27, %v8667_v39  ;;  %v8867_v56 = vadd.s32 %v8685_v51, %v733_v23  ;;  %v8870_v12 = vadd.s32 %v8688_v57, %v747_v55 }
 0x2b9   :  { %7662 = vmatprep.mubr.msk.f32.mxu1 %vm1053_vm13, %v10691_v5  ;;  %v2667_v40 = vcombine.low %v1561_v18, %v1565_v36  ;;  %v2668_v58 = vcombine.low %v1569_v20, %v1573_v10  ;;  %3997 = vperm.xlu1 %7759, %v2568_v24   ;;  %v760_v19 = vpop.xlane.xlu1 %759  ;;  %v774_v7 = vpop.xlane.xlu0 %773  ;;  %v2669_v6 = vcombine.low %v1577_v31, %v1581_v33 }
 0x2ba   :  { %v2670_v50 = vcombine.low %v1585_v48, %v1589_v13  ;;  %v1537_v29 = vrot.slane %v8811_v60, %v8644_v38  ;;  %v1541_v27 = vrot.slane %v8811_v60, %v8647_v32  ;;  %v761_v51 = vcvt.f32.s32 %v760_v19 }
 0x2bb   :  { %v775_v26 = vcvt.f32.s32 %v774_v7  ;;  %vm1054_vm14 = vcmp.eq.s32.totalorder %v10690_v52, %v8867_v56  ;;  %vm1055_vm15 = vcmp.eq.s32.totalorder %v10690_v52, %v8870_v12  ;;  %v2677_v57 = vrot.slane %v2667_v40, %v8679_v42 }
 0x2bc   :  { %7663 = vmatmul.mubr.msk.f32.gmra.mrb[2].mxu1 %vm1054_vm14, %v10691_v5  ;;  %v2684_v18 = vrot.slane %v2668_v58, %v8679_v42  ;;  %v2691_v36 = vrot.slane %v2669_v6, %v8679_v42  ;;  %v2698_v2 = vrot.slane %v2670_v50, %v8679_v42  ;;  %v8887_v16 = vadd.s32 %v8690_v54, %v761_v51 }
 0x2bd   :  { %v8890_v20 = vadd.s32 %v8692_v63, %v775_v26  ;;  %7665 = vmatprep.mubr.msk.f32.mxu1 %vm1055_vm15, %v10691_v5  ;;  %v1545_v10 = vrot.slane %v8811_v60, %v8650_v17  ;;  %v1549_v31 = vrot.slane %v8811_v60, %v8655_v14  ;;  %v788_v23 = vpop.xlane.xlu1 %787  ;;  %v802_v55 = vpop.xlane.xlu0 %801  ;;  %v1553_v48 = vrot.slane %v8811_v60, %v8661_v47 }
 0x2be   :  { %v2699_v24 = vcombine.low %v2677_v57, %v2684_v18  ;;  %v2700_v33 = vcombine.low %v2691_v36, %v2698_v2  ;;  %v1557_v54 = vrot.slane %v8811_v60, %v8667_v39  ;;  %v789_v63 = vcvt.f32.s32 %v788_v23 }
 0x2bf   :  { %v803_v13 = vcvt.f32.s32 %v802_v55  ;;  %vm1056_vm1 = vcmp.eq.s32.totalorder %v10690_v52, %v8887_v16  ;;  %vm1057_vm2 = vcmp.eq.s32.totalorder %v10690_v52, %v8890_v20  ;;  %v2618_v19 = vcombine.low %v1529_v53, %v1533_v3 }
 0x2c0   :  { %v2707_v40 = vrot.slane %v2699_v24, %v8679_v42  ;;  %v2714_v58 = vrot.slane %v2700_v33, %v8679_v42  ;;  %7666 = vmatmul.mubr.msk.f32.gmra.mrb[4].mxu1 %vm1056_vm1, %v10691_v5  ;;  %v2619_v7 = vcombine.low %v1537_v29, %v1541_v27  ;;  %v8915_v6 = vadd.s32 %v8695_v37, %v789_v63 }
 0x2c1   :  { %v8918_v50 = vadd.s32 %v8697_v35, %v803_v13  ;;  %7668 = vmatprep.mubr.msk.f32.mxu1 %vm1057_vm2, %v10691_v5  ;;  %v2620_v51 = vcombine.low %v1545_v10, %v1549_v31  ;;  %v2621_v26 = vcombine.low %v1553_v48, %v1557_v54  ;;  %v816_v18 = vpop.xlane.xlu1 %815  ;;  %v830_v36 = vpop.xlane.xlu0 %829  ;;  %v2628_v2 = vrot.slane %v2618_v19, %v8679_v42 }
 0x2c2   :  { %v2715_v57 = vcombine.low %v2707_v40, %v2714_v58  ;;  %v2635_v23 = vrot.slane %v2619_v7, %v8679_v42  ;;  %v1689_v60 = vrot.slane %v8867_v56, %v8637_v15  ;;  %v817_v53 = vcvt.f32.s32 %v816_v18 }
 0x2c3   :  { %v831_v37 = vcvt.f32.s32 %v830_v36  ;;  %v2642_v3 = vrot.slane %v2620_v51, %v8679_v42  ;;  %v2649_v35 = vrot.slane %v2621_v26, %v8679_v42  ;;  %vm1058_vm3 = vcmp.eq.s32.totalorder %v10690_v52, %v8915_v6 }
 0x2c4   :  { %4006 = vperm.xlu1 %7759, %v2715_v57   ;;  %v2650_v29 = vcombine.low %v2628_v2, %v2635_v23  ;;  %vm1059_vm4 = vcmp.eq.s32.totalorder %v10690_v52, %v8918_v50  ;;  %v1693_v27 = vrot.slane %v8867_v56, %v8640_v8  ;;  %v8934_v10 = vadd.s32 %v8701_v1, %v817_v53 }
 0x2c5   :  { %v8937_v31 = vadd.s32 %v8706_v11, %v831_v37  ;;  %v2651_v55 = vcombine.low %v2642_v3, %v2649_v35  ;;  %7669 = vmatmul.mubr.msk.f32.gmra.mrb[6].mxu1 %vm1058_vm3, %v10691_v5  ;;  %v1697_v24 = vrot.slane %v8867_v56, %v8644_v38  ;;  %v844_v48 = vpop.xlane.xlu1 %843  ;;  %v858_v54 = vpop.xlane.xlu0 %857  ;;  %v1701_v63 = vrot.slane %v8867_v56, %v8647_v32 }
 0x2c6   :  { %v2658_v33 = vrot.slane %v2650_v29, %v8679_v42  ;;  %7671 = vmatprep.mubr.msk.f32.mxu1 %vm1059_vm4, %v10691_v5  ;;  %v1705_v1 = vrot.slane %v8867_v56, %v8650_v17  ;;  %v1709_v11 = vrot.slane %v8867_v56, %v8655_v14  ;;  %v845_v40 = vcvt.f32.s32 %v844_v48 }
 0x2c7   :  { %v2665_v13 = vrot.slane %v2651_v55, %v8679_v42  ;;  %v859_v58 = vcvt.f32.s32 %v858_v54  ;;  %v1713_v19 = vrot.slane %v8867_v56, %v8661_v47  ;;  %v1717_v7 = vrot.slane %v8867_v56, %v8667_v39 }
 0x2c8   :  { %v2863_v51 = vcombine.low %v1689_v60, %v1693_v27  ;;  %v2864_v26 = vcombine.low %v1697_v24, %v1701_v63  ;;  %v2865_v57 = vcombine.low %v1705_v1, %v1709_v11  ;;  %v8956_v36 = vadd.s32 %v8711_v46, %v845_v40 }
 0x2c9   :  { %v2666_v18 = vcombine.low %v2658_v33, %v2665_v13  ;;  %v8959_v2 = vadd.s32 %v8716_v30, %v859_v58  ;;  %v1625_v23 = vrot.slane %v8847_v0, %v8637_v15  ;;  %v2866_v53 = vcombine.low %v1713_v19, %v1717_v7  ;;  %v872_v33 = vpop.xlane.xlu1 %871  ;;  %v886_v1 = vpop.xlane.xlu0 %885 }
 0x2ca   :  { %v2873_v37 = vrot.slane %v2863_v51, %v8679_v42  ;;  %v2880_v3 = vrot.slane %v2864_v26, %v8679_v42  ;;  %v2887_v56 = vrot.slane %v2865_v57, %v8679_v42  ;;  %v1629_v60 = vrot.slane %v8847_v0, %v8640_v8 }
 0x2cb   :  { %4003 = vperm.xlu1 %7759, %v2666_v18   ;;  %v1633_v46 = vrot.slane %v8847_v0, %v8644_v38  ;;  %v1637_v30 = vrot.slane %v8847_v0, %v8647_v32  ;;  %v1641_v35 = vrot.slane %v8847_v0, %v8650_v17  ;;  %v2894_v29 = vrot.slane %v2866_v53, %v8679_v42 }
 0x2cc   :  { %v2895_v27 = vcombine.low %v2873_v37, %v2880_v3  ;;  %v1645_v55 = vrot.slane %v8847_v0, %v8655_v14  ;;  %v1649_v24 = vrot.slane %v8847_v0, %v8661_v47  ;;  %v1653_v48 = vrot.slane %v8847_v0, %v8667_v39 }
 0x2cd   :  { %v2765_v54 = vcombine.low %v1625_v23, %v1629_v60  ;;  %v2766_v63 = vcombine.low %v1633_v46, %v1637_v30  ;;  %vm1060_vm5 = vcmp.eq.s32.totalorder %v10690_v52, %v8934_v10  ;;  %v2896_v11 = vcombine.low %v2887_v56, %v2894_v29 }
 0x2ce   :  { %v2903_v13 = vrot.slane %v2895_v27, %v8679_v42  ;;  %v2767_v40 = vcombine.low %v1641_v35, %v1645_v55  ;;  %7672 = vmatmul.mubr.msk.f32.gmra.mrb[8].mxu1 %vm1060_vm5, %v10691_v5  ;;  %vm1061_vm6 = vcmp.eq.s32.totalorder %v10690_v52, %v8937_v31  ;;  %v2768_v58 = vcombine.low %v1649_v24, %v1653_v48 }
 0x2cf   :  { %v2775_v19 = vrot.slane %v2765_v54, %v8679_v42  ;;  %v2782_v0 = vrot.slane %v2766_v63, %v8679_v42  ;;  %7674 = vmatprep.mubr.msk.f32.mxu1 %vm1061_vm6, %v10691_v5  ;;  %v873_v7 = vcvt.f32.s32 %v872_v33  ;;  %v2910_v51 = vrot.slane %v2896_v11, %v8679_v42 }
 0x2d0   :  { %v2789_v26 = vrot.slane %v2767_v40, %v8679_v42  ;;  %v887_v57 = vcvt.f32.s32 %v886_v1  ;;  %v1753_v18 = vrot.slane %v8887_v16, %v8637_v15  ;;  %v2796_v23 = vrot.slane %v2768_v58, %v8679_v42 }
 0x2d1   :  { %v2797_v53 = vcombine.low %v2775_v19, %v2782_v0  ;;  %v8996_v37 = vadd.s32 %v8718_v43, %v873_v7  ;;  %v1757_v3 = vrot.slane %v8887_v16, %v8640_v8  ;;  %v2911_v56 = vcombine.low %v2903_v13, %v2910_v51 }
 0x2d2   :  { %v9001_v60 = vadd.s32 %v8722_v22, %v887_v57  ;;  %v1761_v46 = vrot.slane %v8887_v16, %v8644_v38  ;;  %v1765_v30 = vrot.slane %v8887_v16, %v8647_v32  ;;  %v2798_v35 = vcombine.low %v2789_v26, %v2796_v23  ;;  %v900_v23 = vpop.xlane.xlu1 %899 }
 0x2d3   :  { %v2805_v29 = vrot.slane %v2797_v53, %v8679_v42  ;;  %v1769_v43 = vrot.slane %v8887_v16, %v8650_v17  ;;  %v1773_v27 = vrot.slane %v8887_v16, %v8655_v14  ;;  %4018 = vperm.xlu0 %7760, %v2911_v56   ;;  %v1777_v22 = vrot.slane %v8887_v16, %v8661_v47 }
 0x2d4   :  { %v1781_v55 = vrot.slane %v8887_v16, %v8667_v39  ;;  %v2961_v24 = vcombine.low %v1753_v18, %v1757_v3  ;;  %v2962_v33 = vcombine.low %v1761_v46, %v1765_v30  ;;  %v2812_v48 = vrot.slane %v2798_v35, %v8679_v42  ;;  %v914_v46 = vpop.xlane.xlu0 %913 }
 0x2d5   :  { %v2963_v54 = vcombine.low %v1769_v43, %v1773_v27  ;;  %v1593_v63 = vrot.slane %v8826_v44, %v8637_v15  ;;  %v1597_v1 = vrot.slane %v8826_v44, %v8640_v8  ;;  %v1601_v58 = vrot.slane %v8826_v44, %v8644_v38 }
 0x2d6   :  { %v2964_v11 = vcombine.low %v1777_v22, %v1781_v55  ;;  %v2971_v13 = vrot.slane %v2961_v24, %v8679_v42  ;;  %v2978_v40 = vrot.slane %v2962_v33, %v8679_v42  ;;  %v2813_v16 = vcombine.low %v2805_v29, %v2812_v48 }
 0x2d7   :  { %v2985_v19 = vrot.slane %v2963_v54, %v8679_v42  ;;  %v1605_v0 = vrot.slane %v8826_v44, %v8647_v32  ;;  %v1609_v7 = vrot.slane %v8826_v44, %v8650_v17  ;;  %v1613_v57 = vrot.slane %v8826_v44, %v8655_v14 }
 0x2d8   :  { %v2992_v51 = vrot.slane %v2964_v11, %v8679_v42  ;;  %v2993_v26 = vcombine.low %v2971_v13, %v2978_v40  ;;  %v1617_v18 = vrot.slane %v8826_v44, %v8661_v47  ;;  %4012 = vperm.xlu1 %7759, %v2813_v16   ;;  %v1621_v53 = vrot.slane %v8826_v44, %v8667_v39 }
 0x2d9   :  { %v2716_v3 = vcombine.low %v1593_v63, %v1597_v1  ;;  %v2717_v56 = vcombine.low %v1601_v58, %v1605_v0  ;;  %vm1062_vm7 = vcmp.eq.s32.totalorder %v10690_v52, %v8956_v36  ;;  %v2718_v29 = vcombine.low %v1609_v7, %v1613_v57 }
 0x2da   :  { %v2994_v30 = vcombine.low %v2985_v19, %v2992_v51  ;;  %v3001_v35 = vrot.slane %v2993_v26, %v8679_v42  ;;  %7675 = vmatmul.mubr.msk.f32.gmra.mrb[10].mxu1 %vm1062_vm7, %v10691_v5  ;;  %vm1063_vm8 = vcmp.eq.s32.totalorder %v10690_v52, %v8959_v2  ;;  %v2719_v43 = vcombine.low %v1617_v18, %v1621_v53 }
 0x2db   :  { %v2726_v27 = vrot.slane %v2716_v3, %v8679_v42  ;;  %v2733_v44 = vrot.slane %v2717_v56, %v8679_v42  ;;  %7677 = vmatprep.mubr.msk.f32.mxu1 %vm1063_vm8, %v10691_v5  ;;  %v901_v22 = vcvt.f32.s32 %v900_v23  ;;  %v2740_v24 = vrot.slane %v2718_v29, %v8679_v42 }
 0x2dc   :  { %v3008_v55 = vrot.slane %v2994_v30, %v8679_v42  ;;  %v915_v33 = vcvt.f32.s32 %v914_v46  ;;  %v1817_v48 = vrot.slane %v8915_v6, %v8637_v15  ;;  %v2747_v54 = vrot.slane %v2719_v43, %v8679_v42 }
 0x2dd   :  { %v2748_v63 = vcombine.low %v2726_v27, %v2733_v44  ;;  %v9052_v1 = vadd.s32 %v8724_v28, %v901_v22  ;;  %v1821_v11 = vrot.slane %v8915_v6, %v8640_v8  ;;  %v1825_v58 = vrot.slane %v8915_v6, %v8644_v38 }
 0x2de   :  { %v3009_v13 = vcombine.low %v3001_v35, %v3008_v55  ;;  %v9057_v40 = vadd.s32 %v8726_v21, %v915_v33  ;;  %v1829_v16 = vrot.slane %v8915_v6, %v8647_v32  ;;  %v2749_v19 = vcombine.low %v2740_v24, %v2747_v54  ;;  %v928_v33 = vpop.xlane.xlu1 %927 }
 0x2df   :  { %v2756_v0 = vrot.slane %v2748_v63, %v8679_v42  ;;  %v1833_v28 = vrot.slane %v8915_v6, %v8650_v17  ;;  %v1837_v7 = vrot.slane %v8915_v6, %v8655_v14  ;;  %v1841_v21 = vrot.slane %v8915_v6, %v8661_v47 }
 0x2e0   :  { %4024 = vperm.xlu0 %7760, %v3009_v13   ;;  %v1845_v51 = vrot.slane %v8915_v6, %v8667_v39  ;;  %v3059_v26 = vcombine.low %v1817_v48, %v1821_v11  ;;  %v3060_v57 = vcombine.low %v1825_v58, %v1829_v16  ;;  %v2763_v18 = vrot.slane %v2749_v19, %v8679_v42  ;;  %v942_v11 = vpop.xlane.xlu0 %941 }
 0x2e1   :  { %v3061_v23 = vcombine.low %v1833_v28, %v1837_v7  ;;  %v1657_v53 = vrot.slane %v8850_v49, %v8637_v15  ;;  %v1661_v3 = vrot.slane %v8850_v49, %v8640_v8  ;;  %v1665_v35 = vrot.slane %v8850_v49, %v8644_v38 }
 0x2e2   :  { %v3062_v56 = vcombine.low %v1841_v21, %v1845_v51  ;;  %v3069_v46 = vrot.slane %v3059_v26, %v8679_v42  ;;  %v3076_v30 = vrot.slane %v3060_v57, %v8679_v42  ;;  %v2764_v6 = vcombine.low %v2756_v0, %v2763_v18 }
 0x2e3   :  { %v3083_v29 = vrot.slane %v3061_v23, %v8679_v42  ;;  %v1669_v43 = vrot.slane %v8850_v49, %v8647_v32  ;;  %v1673_v27 = vrot.slane %v8850_v49, %v8650_v17  ;;  %v1677_v55 = vrot.slane %v8850_v49, %v8655_v14 }
 0x2e4   :  { %v3090_v44 = vrot.slane %v3062_v56, %v8679_v42  ;;  %v3091_v22 = vcombine.low %v3069_v46, %v3076_v30  ;;  %v1681_v24 = vrot.slane %v8850_v49, %v8661_v47  ;;  %4009 = vperm.xlu1 %7759, %v2764_v6   ;;  %v1685_v48 = vrot.slane %v8850_v49, %v8667_v39 }
 0x2e5   :  { %v2814_v54 = vcombine.low %v1657_v53, %v1661_v3  ;;  %v2815_v63 = vcombine.low %v1665_v35, %v1669_v43  ;;  %vm1064_vm9 = vcmp.eq.s32.totalorder %v10690_v52, %v8996_v37  ;;  %v2816_v16 = vcombine.low %v1673_v27, %v1677_v55 }
 0x2e6   :  { %v3092_v13 = vcombine.low %v3083_v29, %v3090_v44  ;;  %v3099_v58 = vrot.slane %v3091_v22, %v8679_v42  ;;  %7678 = vmatmul.mubr.msk.f32.gmra.mrb[12].mxu1 %vm1064_vm9, %v10691_v5  ;;  %vm1065_vm10 = vcmp.eq.s32.totalorder %v10690_v52, %v9001_v60  ;;  %v2817_v19 = vcombine.low %v1681_v24, %v1685_v48 }
 0x2e7   :  { %v2824_v0 = vrot.slane %v2814_v54, %v8679_v42  ;;  %v2831_v49 = vrot.slane %v2815_v63, %v8679_v42  ;;  %7680 = vmatprep.mubr.msk.f32.mxu1 %vm1065_vm10, %v10691_v5  ;;  %v929_v28 = vcvt.f32.s32 %v928_v33  ;;  %v2838_v21 = vrot.slane %v2816_v16, %v8679_v42 }
 0x2e8   :  { %v3106_v7 = vrot.slane %v3092_v13, %v8679_v42  ;;  %v943_v51 = vcvt.f32.s32 %v942_v11  ;;  %v1881_v26 = vrot.slane %v8934_v10, %v8637_v15  ;;  %v2845_v57 = vrot.slane %v2817_v19, %v8679_v42 }
 0x2e9   :  { %v2846_v18 = vcombine.low %v2824_v0, %v2831_v49  ;;  %v9108_v23 = vadd.s32 %v8728_v25, %v929_v28  ;;  %v1885_v53 = vrot.slane %v8934_v10, %v8640_v8  ;;  %v1889_v46 = vrot.slane %v8934_v10, %v8644_v38 }
 0x2ea   :  { %v3107_v3 = vcombine.low %v3099_v58, %v3106_v7  ;;  %v9113_v56 = vadd.s32 %v8730_v34, %v943_v51  ;;  %v1893_v30 = vrot.slane %v8934_v10, %v8647_v32  ;;  %v2847_v35 = vcombine.low %v2838_v21, %v2845_v57  ;;  %v956_v7 = vpop.xlane.xlu1 %955  ;;  %v970_v57 = vpop.xlane.xlu0 %969 }
 0x2eb   :  { %v2854_v6 = vrot.slane %v2846_v18, %v8679_v42  ;;  %v1897_v25 = vrot.slane %v8934_v10, %v8650_v17  ;;  %v1901_v29 = vrot.slane %v8934_v10, %v8655_v14  ;;  %v1905_v34 = vrot.slane %v8934_v10, %v8661_v47 }
 0x2ec   :  { %4030 = vperm.xlu0 %7760, %v3107_v3   ;;  %v1909_v43 = vrot.slane %v8934_v10, %v8667_v39  ;;  %v3157_v27 = vcombine.low %v1881_v26, %v1885_v53  ;;  %v3158_v44 = vcombine.low %v1889_v46, %v1893_v30  ;;  %v2861_v22 = vrot.slane %v2847_v35, %v8679_v42 }
 0x2ed   :  { %v3159_v55 = vcombine.low %v1897_v25, %v1901_v29  ;;  %v1721_v24 = vrot.slane %v8870_v12, %v8637_v15  ;;  %v1725_v33 = vrot.slane %v8870_v12, %v8640_v8  ;;  %v1729_v11 = vrot.slane %v8870_v12, %v8644_v38 }
 0x2ee   :  { %v3160_v48 = vcombine.low %v1905_v34, %v1909_v43  ;;  %v3167_v54 = vrot.slane %v3157_v27, %v8679_v42  ;;  %v3174_v63 = vrot.slane %v3158_v44, %v8679_v42  ;;  %v2862_v10 = vcombine.low %v2854_v6, %v2861_v22 }
 0x2ef   :  { %v3181_v13 = vrot.slane %v3159_v55, %v8679_v42  ;;  %v1733_v58 = vrot.slane %v8870_v12, %v8647_v32  ;;  %v1737_v16 = vrot.slane %v8870_v12, %v8650_v17  ;;  %v1741_v49 = vrot.slane %v8870_v12, %v8655_v14 }
 0x2f0   :  { %v3188_v19 = vrot.slane %v3160_v48, %v8679_v42  ;;  %v3189_v0 = vcombine.low %v3167_v54, %v3174_v63  ;;  %v1745_v28 = vrot.slane %v8870_v12, %v8661_v47  ;;  %4015 = vperm.xlu1 %7759, %v2862_v10   ;;  %v1749_v21 = vrot.slane %v8870_v12, %v8667_v39 }
 0x2f1   :  { %v2912_v51 = vcombine.low %v1721_v24, %v1725_v33  ;;  %v2913_v26 = vcombine.low %v1729_v11, %v1733_v58  ;;  %vm1066_vm11 = vcmp.eq.s32.totalorder %v10690_v52, %v9052_v1  ;;  %v2914_v3 = vcombine.low %v1737_v16, %v1741_v49 }
 0x2f2   :  { %v3190_v18 = vcombine.low %v3181_v13, %v3188_v19  ;;  %v3197_v53 = vrot.slane %v3189_v0, %v8679_v42  ;;  %7681 = vmatmul.mubr.msk.f32.gmra.mrb[14].mxu1 %vm1066_vm11, %v10691_v5  ;;  %vm1067_vm12 = vcmp.eq.s32.totalorder %v10690_v52, %v9057_v40  ;;  %v2915_v46 = vcombine.low %v1745_v28, %v1749_v21 }
 0x2f3   :  { %v2922_v30 = vrot.slane %v2912_v51, %v8679_v42  ;;  %v2929_v12 = vrot.slane %v2913_v26, %v8679_v42  ;;  %7683 = vmatprep.mubr.msk.f32.mxu1 %vm1067_vm12, %v10691_v5  ;;  %v957_v35 = vcvt.f32.s32 %v956_v7  ;;  %v2936_v25 = vrot.slane %v2914_v3, %v8679_v42 }
 0x2f4   :  { %v3204_v6 = vrot.slane %v3190_v18, %v8679_v42  ;;  %v971_v29 = vcvt.f32.s32 %v970_v57  ;;  %v1945_v34 = vrot.slane %v8956_v36, %v8637_v15  ;;  %v2943_v43 = vrot.slane %v2915_v46, %v8679_v42 }
 0x2f5   :  { %v2944_v27 = vcombine.low %v2922_v30, %v2929_v12  ;;  %v9164_v44 = vadd.s32 %v8732_v59, %v957_v35  ;;  %v1949_v22 = vrot.slane %v8956_v36, %v8640_v8  ;;  %v1953_v33 = vrot.slane %v8956_v36, %v8644_v38  ;;  %v984_v12 = vpop.xlane.xlu1 %983 }
 0x2f6   :  { %v3205_v55 = vcombine.low %v3197_v53, %v3204_v6  ;;  %v9169_v24 = vadd.s32 %v8734_v61, %v971_v29  ;;  %v1957_v48 = vrot.slane %v8956_v36, %v8647_v32  ;;  %v2945_v54 = vcombine.low %v2936_v25, %v2943_v43  ;;  %v998_v29 = vpop.xlane.xlu0 %997 }
 0x2f7   :  { %v2952_v63 = vrot.slane %v2944_v27, %v8679_v42  ;;  %v1961_v59 = vrot.slane %v8956_v36, %v8650_v17  ;;  %v1965_v11 = vrot.slane %v8956_v36, %v8655_v14  ;;  %v1969_v61 = vrot.slane %v8956_v36, %v8661_v47 }
 0x2f8   :  { %4036 = vperm.xlu0 %7760, %v3205_v55   ;;  %v1973_v10 = vrot.slane %v8956_v36, %v8667_v39  ;;  %v3255_v13 = vcombine.low %v1945_v34, %v1949_v22  ;;  %v3256_v58 = vcombine.low %v1953_v33, %v1957_v48  ;;  %v2959_v16 = vrot.slane %v2945_v54, %v8679_v42 }
 0x2f9   :  { %v3257_v19 = vcombine.low %v1961_v59, %v1965_v11  ;;  %v1785_v0 = vrot.slane %v8890_v20, %v8637_v15  ;;  %v1789_v49 = vrot.slane %v8890_v20, %v8640_v8  ;;  %v1793_v51 = vrot.slane %v8890_v20, %v8644_v38 }
 0x2fa   :  { %v3258_v28 = vcombine.low %v1969_v61, %v1973_v10  ;;  %v3265_v7 = vrot.slane %v3255_v13, %v8679_v42  ;;  %v3272_v21 = vrot.slane %v3256_v58, %v8679_v42  ;;  %v2960_v36 = vcombine.low %v2952_v63, %v2959_v16 }
 0x2fb   :  { %v3279_v26 = vrot.slane %v3257_v19, %v8679_v42  ;;  %v1797_v57 = vrot.slane %v8890_v20, %v8647_v32  ;;  %v1801_v18 = vrot.slane %v8890_v20, %v8650_v17  ;;  %v1805_v46 = vrot.slane %v8890_v20, %v8655_v14 }
 0x2fc   :  { %v3286_v53 = vrot.slane %v3258_v28, %v8679_v42  ;;  %v3287_v3 = vcombine.low %v3265_v7, %v3272_v21  ;;  %v1809_v30 = vrot.slane %v8890_v20, %v8661_v47  ;;  %4021 = vperm.xlu1 %7759, %v2960_v36   ;;  %v1813_v35 = vrot.slane %v8890_v20, %v8667_v39 }
 0x2fd   :  { %v3010_v6 = vcombine.low %v1785_v0, %v1789_v49  ;;  %v3011_v25 = vcombine.low %v1793_v51, %v1797_v57  ;;  %vm1068_vm13 = vcmp.eq.s32.totalorder %v10690_v52, %v9108_v23  ;;  %v3012_v27 = vcombine.low %v1801_v18, %v1805_v46 }
 0x2fe   :  { %v3288_v34 = vcombine.low %v3279_v26, %v3286_v53  ;;  %v3295_v43 = vrot.slane %v3287_v3, %v8679_v42  ;;  %7684 = vmatmul.mubr.msk.f32.gmra.mrb[16].mxu1 %vm1068_vm13, %v10691_v5  ;;  %vm1069_vm14 = vcmp.eq.s32.totalorder %v10690_v52, %v9113_v56  ;;  %v3013_v22 = vcombine.low %v1809_v30, %v1813_v35 }
 0x2ff   :  { %v3020_v55 = vrot.slane %v3010_v6, %v8679_v42  ;;  %v3027_v20 = vrot.slane %v3011_v25, %v8679_v42  ;;  %7686 = vmatprep.mubr.msk.f32.mxu1 %vm1069_vm14, %v10691_v5  ;;  %v985_v33 = vcvt.f32.s32 %v984_v12  ;;  %v3034_v54 = vrot.slane %v3012_v27, %v8679_v42 }
 0x300   :  { %v3302_v48 = vrot.slane %v3288_v34, %v8679_v42  ;;  %v999_v63 = vcvt.f32.s32 %v998_v29  ;;  %v2009_v59 = vrot.slane %v8996_v37, %v8637_v15  ;;  %v3041_v11 = vrot.slane %v3013_v22, %v8679_v42  ;;  %v1012_v22 = vpop.xlane.xlu1 %1011 }
 0x301   :  { %v3042_v61 = vcombine.low %v3020_v55, %v3027_v20  ;;  %v9220_v10 = vadd.s32 %v8736_v4, %v985_v33  ;;  %v2013_v13 = vrot.slane %v8996_v37, %v8640_v8  ;;  %v2017_v19 = vrot.slane %v8996_v37, %v8644_v38 }
 0x302   :  { %v3303_v58 = vcombine.low %v3295_v43, %v3302_v48  ;;  %v9225_v16 = vadd.s32 %v8738_v41, %v999_v63  ;;  %v2021_v0 = vrot.slane %v8996_v37, %v8647_v32  ;;  %v3043_v49 = vcombine.low %v3034_v54, %v3041_v11  ;;  %v1026_v48 = vpop.xlane.xlu0 %1025 }
 0x303   :  { %v3050_v28 = vrot.slane %v3042_v61, %v8679_v42  ;;  %v2025_v4 = vrot.slane %v8996_v37, %v8650_v17  ;;  %v2029_v7 = vrot.slane %v8996_v37, %v8655_v14  ;;  %v2033_v41 = vrot.slane %v8996_v37, %v8661_v47 }
 0x304   :  { %4042 = vperm.xlu0 %7760, %v3303_v58   ;;  %v2037_v21 = vrot.slane %v8996_v37, %v8667_v39  ;;  %v3353_v51 = vcombine.low %v2009_v59, %v2013_v13  ;;  %v3354_v36 = vcombine.low %v2017_v19, %v2021_v0  ;;  %v3057_v26 = vrot.slane %v3043_v49, %v8679_v42 }
 0x305   :  { %v3355_v57 = vcombine.low %v2025_v4, %v2029_v7  ;;  %v1849_v18 = vrot.slane %v8918_v50, %v8637_v15  ;;  %v1853_v53 = vrot.slane %v8918_v50, %v8640_v8  ;;  %v1857_v12 = vrot.slane %v8918_v50, %v8644_v38 }
 0x306   :  { %v3356_v3 = vcombine.low %v2033_v41, %v2037_v21  ;;  %v3363_v46 = vrot.slane %v3353_v51, %v8679_v42  ;;  %v3370_v30 = vrot.slane %v3354_v36, %v8679_v42  ;;  %v3058_v37 = vcombine.low %v3050_v28, %v3057_v26 }
 0x307   :  { %v3377_v35 = vrot.slane %v3355_v57, %v8679_v42  ;;  %v1861_v6 = vrot.slane %v8918_v50, %v8647_v32  ;;  %v1865_v25 = vrot.slane %v8918_v50, %v8650_v17  ;;  %v1869_v43 = vrot.slane %v8918_v50, %v8655_v14 }
 0x308   :  { %v3384_v29 = vrot.slane %v3356_v3, %v8679_v42  ;;  %v3385_v34 = vcombine.low %v3363_v46, %v3370_v30  ;;  %v1873_v27 = vrot.slane %v8918_v50, %v8661_v47  ;;  %4027 = vperm.xlu1 %7759, %v3058_v37   ;;  %v1877_v55 = vrot.slane %v8918_v50, %v8667_v39 }
 0x309   :  { %v3108_v20 = vcombine.low %v1849_v18, %v1853_v53  ;;  %v3109_v33 = vcombine.low %v1857_v12, %v1861_v6  ;;  %vm1070_vm15 = vcmp.eq.s32.totalorder %v10690_v52, %v9164_v44  ;;  %v3110_v59 = vcombine.low %v1865_v25, %v1869_v43 }
 0x30a   :  { %v3386_v54 = vcombine.low %v3377_v35, %v3384_v29  ;;  %v3393_v63 = vrot.slane %v3385_v34, %v8679_v42  ;;  %7687 = vmatmul.mubr.msk.f32.gmra.mrb[18].mxu1 %vm1070_vm15, %v10691_v5  ;;  %vm1071_vm1 = vcmp.eq.s32.totalorder %v10690_v52, %v9169_v24  ;;  %v3111_v11 = vcombine.low %v1873_v27, %v1877_v55 }
 0x30b   :  { %v3118_v61 = vrot.slane %v3108_v20, %v8679_v42  ;;  %v3125_v50 = vrot.slane %v3109_v33, %v8679_v42  ;;  %7689 = vmatprep.mubr.msk.f32.mxu1 %vm1071_vm1, %v10691_v5  ;;  %v1013_v13 = vcvt.f32.s32 %v1012_v22  ;;  %v3132_v19 = vrot.slane %v3110_v59, %v8679_v42 }
 0x30c   :  { %v3400_v58 = vrot.slane %v3386_v54, %v8679_v42  ;;  %v1027_v0 = vcvt.f32.s32 %v1026_v48  ;;  %v2073_v49 = vrot.slane %v9052_v1, %v8637_v15  ;;  %v3139_v28 = vrot.slane %v3111_v11, %v8679_v42 }
 0x30d   :  { %v3140_v4 = vcombine.low %v3118_v61, %v3125_v50  ;;  %v9276_v7 = vadd.s32 %v8741_v62, %v1013_v13  ;;  %v2077_v41 = vrot.slane %v9052_v1, %v8640_v8  ;;  %v2081_v36 = vrot.slane %v9052_v1, %v8644_v38 }
 0x30e   :  { %v3401_v21 = vcombine.low %v3393_v63, %v3400_v58  ;;  %v9281_v51 = vadd.s32 %v8743_v45, %v1027_v0  ;;  %v2085_v26 = vrot.slane %v9052_v1, %v8647_v32  ;;  %v3141_v57 = vcombine.low %v3132_v19, %v3139_v28  ;;  %v1040_v63 = vpop.xlane.xlu1 %1039 }
 0x30f   :  { %v3148_v18 = vrot.slane %v3140_v4, %v8679_v42  ;;  %v2089_v62 = vrot.slane %v9052_v1, %v8650_v17  ;;  %v2093_v53 = vrot.slane %v9052_v1, %v8655_v14  ;;  %v2097_v45 = vrot.slane %v9052_v1, %v8661_v47 }
 0x310   :  { %4048 = vperm.xlu0 %7760, %v3401_v21   ;;  %v2101_v3 = vrot.slane %v9052_v1, %v8667_v39  ;;  %v3451_v46 = vcombine.low %v2073_v49, %v2077_v41  ;;  %v3452_v30 = vcombine.low %v2081_v36, %v2085_v26  ;;  %v3155_v12 = vrot.slane %v3141_v57, %v8679_v42 }
 0x311   :  { %v3453_v37 = vcombine.low %v2089_v62, %v2093_v53  ;;  %v1913_v35 = vrot.slane %v8937_v31, %v8637_v15  ;;  %v1917_v6 = vrot.slane %v8937_v31, %v8640_v8  ;;  %v1921_v43 = vrot.slane %v8937_v31, %v8644_v38 }
 0x312   :  { %v3454_v25 = vcombine.low %v2097_v45, %v2101_v3  ;;  %v3461_v29 = vrot.slane %v3451_v46, %v8679_v42  ;;  %v3468_v34 = vrot.slane %v3452_v30, %v8679_v42  ;;  %v3156_v1 = vcombine.low %v3148_v18, %v3155_v12 }
 0x313   :  { %v3475_v27 = vrot.slane %v3453_v37, %v8679_v42  ;;  %v1925_v22 = vrot.slane %v8937_v31, %v8647_v32  ;;  %v1929_v55 = vrot.slane %v8937_v31, %v8650_v17  ;;  %v1933_v48 = vrot.slane %v8937_v31, %v8655_v14 }
 0x314   :  { %v3482_v20 = vrot.slane %v3454_v25, %v8679_v42  ;;  %v3483_v33 = vcombine.low %v3461_v29, %v3468_v34  ;;  %v1937_v54 = vrot.slane %v8937_v31, %v8661_v47  ;;  %4033 = vperm.xlu1 %7759, %v3156_v1   ;;  %v1941_v59 = vrot.slane %v8937_v31, %v8667_v39 }
 0x315   :  { %v3206_v11 = vcombine.low %v1913_v35, %v1917_v6  ;;  %v3207_v61 = vcombine.low %v1921_v43, %v1925_v22  ;;  %vm1072_vm2 = vcmp.eq.s32.totalorder %v10690_v52, %v9220_v10  ;;  %v3208_v58 = vcombine.low %v1929_v55, %v1933_v48 }
 0x316   :  { %v3484_v50 = vcombine.low %v3475_v27, %v3482_v20  ;;  %v3491_v13 = vrot.slane %v3483_v33, %v8679_v42  ;;  %7690 = vmatmul.mubr.msk.f32.gmra.mrb[20].mxu1 %vm1072_vm2, %v10691_v5  ;;  %vm1073_vm3 = vcmp.eq.s32.totalorder %v10690_v52, %v9225_v16  ;;  %v3209_v19 = vcombine.low %v1937_v54, %v1941_v59 }
 0x317   :  { %v3216_v0 = vrot.slane %v3206_v11, %v8679_v42  ;;  %v3223_v49 = vrot.slane %v3207_v61, %v8679_v42  ;;  %7692 = vmatprep.mubr.msk.f32.mxu1 %vm1073_vm3, %v10691_v5  ;;  %v1041_v31 = vcvt.f32.s32 %v1040_v63  ;;  %v3230_v4 = vrot.slane %v3208_v58, %v8679_v42 }
 0x318   :  { %v3498_v28 = vrot.slane %v3484_v50, %v8679_v42  ;;  %v2137_v41 = vrot.slane %v9108_v23, %v8637_v15  ;;  %v2141_v21 = vrot.slane %v9108_v23, %v8640_v8  ;;  %v3237_v36 = vrot.slane %v3209_v19, %v8679_v42 }
 0x319   :  { %v3238_v26 = vcombine.low %v3216_v0, %v3223_v49  ;;  %v9334_v57 = vadd.s32 %v8839_v9, %v1041_v31  ;;  %v2145_v18 = vrot.slane %v9108_v23, %v8644_v38  ;;  %v2149_v53 = vrot.slane %v9108_v23, %v8647_v32 }
 0x31a   :  { %v3499_v62 = vcombine.low %v3491_v13, %v3498_v28  ;;  %v2153_v45 = vrot.slane %v9108_v23, %v8650_v17  ;;  %v2157_v3 = vrot.slane %v9108_v23, %v8655_v14  ;;  %v3239_v46 = vcombine.low %v3230_v4, %v3237_v36 }
 0x31b   :  { %v3246_v30 = vrot.slane %v3238_v26, %v8679_v42  ;;  %v2161_v9 = vrot.slane %v9108_v23, %v8661_v47  ;;  %v2165_v12 = vrot.slane %v9108_v23, %v8667_v39  ;;  %v3549_v37 = vcombine.low %v2137_v41, %v2141_v21 }
 0x31c   :  { %4054 = vperm.xlu0 %7760, %v3499_v62   ;;  %v3550_v35 = vcombine.low %v2145_v18, %v2149_v53  ;;  %v3551_v6 = vcombine.low %v2153_v45, %v2157_v3  ;;  %v1977_v25 = vrot.slane %v8959_v2, %v8637_v15  ;;  %v3253_v29 = vrot.slane %v3239_v46, %v8679_v42 }
 0x31d   :  { %v3552_v34 = vcombine.low %v2161_v9, %v2165_v12  ;;  %v1981_v43 = vrot.slane %v8959_v2, %v8640_v8  ;;  %v1985_v1 = vrot.slane %v8959_v2, %v8644_v38  ;;  %v3559_v27 = vrot.slane %v3549_v37, %v8679_v42 }
 0x31e   :  { %v3566_v23 = vrot.slane %v3550_v35, %v8679_v42  ;;  %v3573_v22 = vrot.slane %v3551_v6, %v8679_v42  ;;  %v1989_v55 = vrot.slane %v8959_v2, %v8647_v32  ;;  %v3254_v20 = vcombine.low %v3246_v30, %v3253_v29 }
 0x31f   :  { %v3580_v33 = vrot.slane %v3552_v34, %v8679_v42  ;;  %v1993_v48 = vrot.slane %v8959_v2, %v8650_v17  ;;  %v1997_v54 = vrot.slane %v8959_v2, %v8655_v14  ;;  %v2001_v59 = vrot.slane %v8959_v2, %v8661_v47 }
 0x320   :  { %v3581_v63 = vcombine.low %v3559_v27, %v3566_v23  ;;  %v2005_v11 = vrot.slane %v8959_v2, %v8667_v39  ;;  %v3304_v61 = vcombine.low %v1977_v25, %v1981_v43  ;;  %4039 = vperm.xlu1 %7759, %v3254_v20   ;;  %v3305_v13 = vcombine.low %v1985_v1, %v1989_v55 }
 0x321   :  { %v3582_v50 = vcombine.low %v3573_v22, %v3580_v33  ;;  %v3306_v58 = vcombine.low %v1993_v48, %v1997_v54  ;;  %vm1074_vm4 = vcmp.eq.s32.totalorder %v10690_v52, %v9276_v7  ;;  %vm1075_vm5 = vcmp.eq.s32.totalorder %v10690_v52, %v9281_v51 }
 0x322   :  { %v3589_v19 = vrot.slane %v3581_v63, %v8679_v42  ;;  %v3307_v0 = vcombine.low %v2001_v59, %v2005_v11  ;;  %v3314_v49 = vrot.slane %v3304_v61, %v8679_v42  ;;  %7693 = vmatmul.mubr.msk.f32.gmra.mrb[22].mxu1 %vm1074_vm4, %v10691_v5  ;;  %v3321_v31 = vrot.slane %v3305_v13, %v8679_v42 }
 0x323   :  { %v3596_v2 = vrot.slane %v3582_v50, %v8679_v42  ;;  %v3328_v28 = vrot.slane %v3306_v58, %v8679_v42  ;;  %7695 = vmatprep.mubr.msk.f32.mxu1 %vm1075_vm5, %v10691_v5  ;;  %v2201_v4 = vrot.slane %v9164_v44, %v8637_v15  ;;  %v2205_v21 = vrot.slane %v9164_v44, %v8640_v8 }
 0x324   :  { %v3335_v41 = vrot.slane %v3307_v0, %v8679_v42  ;;  %v2209_v36 = vrot.slane %v9164_v44, %v8644_v38  ;;  %v2213_v26 = vrot.slane %v9164_v44, %v8647_v32  ;;  %v3336_v62 = vcombine.low %v3314_v49, %v3321_v31 }
 0x325   :  { %v3597_v18 = vcombine.low %v3589_v19, %v3596_v2  ;;  %v2217_v53 = vrot.slane %v9164_v44, %v8650_v17  ;;  %v2221_v45 = vrot.slane %v9164_v44, %v8655_v14  ;;  %v2225_v46 = vrot.slane %v9164_v44, %v8661_v47 }
 0x326   :  { %v3337_v3 = vcombine.low %v3328_v28, %v3335_v41  ;;  %v2229_v30 = vrot.slane %v9164_v44, %v8667_v39  ;;  %v3647_v9 = vcombine.low %v2201_v4, %v2205_v21  ;;  %v3344_v12 = vrot.slane %v3336_v62, %v8679_v42 }
 0x327   :  { %4060 = vperm.xlu0 %7760, %v3597_v18   ;;  %v3648_v37 = vcombine.low %v2209_v36, %v2213_v26  ;;  %v3649_v35 = vcombine.low %v2217_v53, %v2221_v45  ;;  %v2041_v6 = vrot.slane %v9001_v60, %v8637_v15  ;;  %v2045_v43 = vrot.slane %v9001_v60, %v8640_v8 }
 0x328   :  { %v3351_v25 = vrot.slane %v3337_v3, %v8679_v42  ;;  %v3650_v29 = vcombine.low %v2225_v46, %v2229_v30  ;;  %v3657_v34 = vrot.slane %v3647_v9, %v8679_v42  ;;  %v2049_v27 = vrot.slane %v9001_v60, %v8644_v38 }
 0x329   :  { %v3664_v1 = vrot.slane %v3648_v37, %v8679_v42  ;;  %v3671_v44 = vrot.slane %v3649_v35, %v8679_v42  ;;  %v2053_v23 = vrot.slane %v9001_v60, %v8647_v32  ;;  %v2057_v20 = vrot.slane %v9001_v60, %v8650_v17 }
 0x32a   :  { %v3352_v22 = vcombine.low %v3344_v12, %v3351_v25  ;;  %v3678_v55 = vrot.slane %v3650_v29, %v8679_v42  ;;  %v2061_v33 = vrot.slane %v9001_v60, %v8655_v14  ;;  %v2065_v54 = vrot.slane %v9001_v60, %v8661_v47 }
 0x32b   :  { %v3679_v48 = vcombine.low %v3657_v34, %v3664_v1  ;;  %v2069_v63 = vrot.slane %v9001_v60, %v8667_v39  ;;  %v3402_v59 = vcombine.low %v2041_v6, %v2045_v43  ;;  %v3403_v61 = vcombine.low %v2049_v27, %v2053_v23 }
 0x32c   :  { %4045 = vperm.xlu1 %7759, %v3352_v22   ;;  %v3680_v11 = vcombine.low %v3671_v44, %v3678_v55  ;;  %v3404_v50 = vcombine.low %v2057_v20, %v2061_v33  ;;  %vm1076_vm6 = vcmp.eq.s32.totalorder %v10690_v52, %v9334_v57  ;;  %v2265_v0 = vrot.slane %v9220_v10, %v8637_v15 }
 0x32d   :  { %v3687_v13 = vrot.slane %v3679_v48, %v8679_v42  ;;  %v3405_v58 = vcombine.low %v2065_v54, %v2069_v63  ;;  %v3412_v19 = vrot.slane %v3402_v59, %v8679_v42  ;;  %7696 = vmatmul.mubr.msk.f32.gmra.mrb[24].mxu1 %vm1076_vm6, %v10691_v5  ;;  %v3419_v49 = vrot.slane %v3403_v61, %v8679_v42 }
 0x32e   :  { %v3694_v60 = vrot.slane %v3680_v11, %v8679_v42  ;;  %v3426_v2 = vrot.slane %v3404_v50, %v8679_v42  ;;  %v2269_v31 = vrot.slane %v9220_v10, %v8640_v8  ;;  %v2273_v4 = vrot.slane %v9220_v10, %v8644_v38 }
 0x32f   :  { %v3433_v28 = vrot.slane %v3405_v58, %v8679_v42  ;;  %v2277_v5 = vrot.slane %v9220_v10, %v8647_v32  ;;  %v2281_v41 = vrot.slane %v9220_v10, %v8650_v17  ;;  %v3434_v36 = vcombine.low %v3412_v19, %v3419_v49 }
 0x330   :  { %v3695_v21 = vcombine.low %v3687_v13, %v3694_v60  ;;  %v2285_v26 = vrot.slane %v9220_v10, %v8655_v14  ;;  %v2289_v18 = vrot.slane %v9220_v10, %v8661_v47  ;;  %v2293_v53 = vrot.slane %v9220_v10, %v8667_v39 }
 0x331   :  { %v3435_v62 = vcombine.low %v3426_v2, %v3433_v28  ;;  %v3745_v45 = vcombine.low %v2265_v0, %v2269_v31  ;;  %v3746_v3 = vcombine.low %v2273_v4, %v2277_v5  ;;  %v3442_v46 = vrot.slane %v3434_v36, %v8679_v42 }
 0x332   :  { %4066 = vperm.xlu0 %7760, %v3695_v21   ;;  %v3747_v30 = vcombine.low %v2281_v41, %v2285_v26  ;;  %v2105_v9 = vrot.slane %v9057_v40, %v8637_v15  ;;  %v2109_v12 = vrot.slane %v9057_v40, %v8640_v8  ;;  %v3748_v35 = vcombine.low %v2289_v18, %v2293_v53 }
 0x333   :  { %v3449_v37 = vrot.slane %v3435_v62, %v8679_v42  ;;  %v3755_v6 = vrot.slane %v3745_v45, %v8679_v42  ;;  %v3762_v25 = vrot.slane %v3746_v3, %v8679_v42  ;;  %v2113_v29 = vrot.slane %v9057_v40, %v8644_v38 }
 0x334   :  { %v3769_v10 = vrot.slane %v3747_v30, %v8679_v42  ;;  %v2117_v34 = vrot.slane %v9057_v40, %v8647_v32  ;;  %v2121_v43 = vrot.slane %v9057_v40, %v8650_v17  ;;  %v3776_v44 = vrot.slane %v3748_v35, %v8679_v42 }
 0x335   :  { %v3450_v1 = vcombine.low %v3442_v46, %v3449_v37  ;;  %v3777_v27 = vcombine.low %v3755_v6, %v3762_v25  ;;  %v2125_v23 = vrot.slane %v9057_v40, %v8655_v14  ;;  %v2129_v22 = vrot.slane %v9057_v40, %v8661_v47 }
 0x336   :  { %v2133_v55 = vrot.slane %v9057_v40, %v8667_v39  ;;  %v3500_v20 = vcombine.low %v2105_v9, %v2109_v12  ;;  %v3501_v33 = vcombine.low %v2113_v29, %v2117_v34  ;;  %v3778_v48 = vcombine.low %v3769_v10, %v3776_v44 }
 0x337   :  { %4051 = vperm.xlu1 %7759, %v3450_v1   ;;  %v3785_v54 = vrot.slane %v3777_v27, %v8679_v42  ;;  %v3502_v63 = vcombine.low %v2121_v43, %v2125_v23  ;;  %v2329_v59 = vrot.slane %v9276_v7, %v8637_v15  ;;  %v2333_v13 = vrot.slane %v9276_v7, %v8640_v8 }
 0x338   :  { %v3503_v11 = vcombine.low %v2129_v22, %v2133_v55  ;;  %v3510_v61 = vrot.slane %v3500_v20, %v8679_v42  ;;  %v3517_v50 = vrot.slane %v3501_v33, %v8679_v42  ;;  %v3792_v40 = vrot.slane %v3778_v48, %v8679_v42 }
 0x339   :  { %v3524_v58 = vrot.slane %v3502_v63, %v8679_v42  ;;  %v2337_v19 = vrot.slane %v9276_v7, %v8644_v38  ;;  %v2341_v0 = vrot.slane %v9276_v7, %v8647_v32  ;;  %v2345_v2 = vrot.slane %v9276_v7, %v8650_v17 }
 0x33a   :  { %v3531_v60 = vrot.slane %v3503_v11, %v8679_v42  ;;  %v3532_v49 = vcombine.low %v3510_v61, %v3517_v50  ;;  %v2349_v31 = vrot.slane %v9276_v7, %v8655_v14  ;;  %v3793_v28 = vcombine.low %v3785_v54, %v3792_v40 }
 0x33b   :  { %v2353_v4 = vrot.slane %v9276_v7, %v8661_v47  ;;  %v2357_v5 = vrot.slane %v9276_v7, %v8667_v39  ;;  %v3843_v41 = vcombine.low %v2329_v59, %v2333_v13  ;;  %v3844_v26 = vcombine.low %v2337_v19, %v2341_v0 }
 0x33c   :  { %v3533_v21 = vcombine.low %v3524_v58, %v3531_v60  ;;  %v3540_v36 = vrot.slane %v3532_v49, %v8679_v42  ;;  %v3845_v18 = vcombine.low %v2345_v2, %v2349_v31  ;;  %4072 = vperm.xlu0 %7760, %v3793_v28   ;;  %v2169_v45 = vrot.slane %v9113_v56, %v8637_v15 }
 0x33d   :  { %v3846_v62 = vcombine.low %v2353_v4, %v2357_v5  ;;  %v3853_v53 = vrot.slane %v3843_v41, %v8679_v42  ;;  %v2173_v3 = vrot.slane %v9113_v56, %v8640_v8  ;;  %v3860_v7 = vrot.slane %v3844_v26, %v8679_v42 }
 0x33e   :  { %v3547_v46 = vrot.slane %v3533_v21, %v8679_v42  ;;  %v3867_v30 = vrot.slane %v3845_v18, %v8679_v42  ;;  %v2177_v9 = vrot.slane %v9113_v56, %v8644_v38  ;;  %v2181_v37 = vrot.slane %v9113_v56, %v8647_v32 }
 0x33f   :  { %v3874_v12 = vrot.slane %v3846_v62, %v8679_v42  ;;  %v2185_v35 = vrot.slane %v9113_v56, %v8650_v17  ;;  %v2189_v6 = vrot.slane %v9113_v56, %v8655_v14  ;;  %v3875_v10 = vcombine.low %v3853_v53, %v3860_v7 }
 0x340   :  { %v3548_v25 = vcombine.low %v3540_v36, %v3547_v46  ;;  %v2193_v29 = vrot.slane %v9113_v56, %v8661_v47  ;;  %v2197_v34 = vrot.slane %v9113_v56, %v8667_v39  ;;  %v3598_v1 = vcombine.low %v2169_v45, %v2173_v3 }
 0x341   :  { %v3876_v43 = vcombine.low %v3867_v30, %v3874_v12  ;;  %v3599_v44 = vcombine.low %v2177_v9, %v2181_v37  ;;  %v3600_v27 = vcombine.low %v2185_v35, %v2189_v6  ;;  %v3883_v23 = vrot.slane %v3875_v10, %v8679_v42 }
 0x342   :  { %4057 = vperm.xlu1 %7759, %v3548_v25   ;;  %v3601_v22 = vcombine.low %v2193_v29, %v2197_v34  ;;  %v2393_v55 = vrot.slane %v9334_v57, %v8637_v15  ;;  %v2397_v20 = vrot.slane %v9334_v57, %v8640_v8  ;;  %v3608_v48 = vrot.slane %v3598_v1, %v8679_v42 }
 0x343   :  { %v3890_v33 = vrot.slane %v3876_v43, %v8679_v42  ;;  %v3615_v56 = vrot.slane %v3599_v44, %v8679_v42  ;;  %v3622_v54 = vrot.slane %v3600_v27, %v8679_v42  ;;  %v2401_v59 = vrot.slane %v9334_v57, %v8644_v38 }
 0x344   :  { %v3629_v63 = vrot.slane %v3601_v22, %v8679_v42  ;;  %v2405_v11 = vrot.slane %v9334_v57, %v8647_v32  ;;  %v2409_v61 = vrot.slane %v9334_v57, %v8650_v17  ;;  %v2413_v40 = vrot.slane %v9334_v57, %v8655_v14 }
 0x345   :  { %v3891_v50 = vcombine.low %v3883_v23, %v3890_v33  ;;  %v3630_v13 = vcombine.low %v3608_v48, %v3615_v56  ;;  %v2417_v58 = vrot.slane %v9334_v57, %v8661_v47  ;;  %v2421_v0 = vrot.slane %v9334_v57, %v8667_v39 }
 0x346   :  { %v3631_v19 = vcombine.low %v3622_v54, %v3629_v63  ;;  %v3941_v60 = vcombine.low %v2393_v55, %v2397_v20  ;;  %v3942_v49 = vcombine.low %v2401_v59, %v2405_v11  ;;  %v3943_v31 = vcombine.low %v2409_v61, %v2413_v40 }
 0x347   :  { %4078 = vperm.xlu0 %7760, %v3891_v50   ;;  %v3638_v2 = vrot.slane %v3630_v13, %v8679_v42  ;;  %v2233_v28 = vrot.slane %v9169_v24, %v8637_v15  ;;  %v2237_v4 = vrot.slane %v9169_v24, %v8640_v8  ;;  %v3944_v41 = vcombine.low %v2417_v58, %v2421_v0 }
 0x348   :  { %v3645_v5 = vrot.slane %v3631_v19, %v8679_v42  ;;  %v3951_v21 = vrot.slane %v3941_v60, %v8679_v42  ;;  %v3958_v36 = vrot.slane %v3942_v49, %v8679_v42  ;;  %v3965_v57 = vrot.slane %v3943_v31, %v8679_v42 }
 0x349   :  { %v2241_v26 = vrot.slane %v9169_v24, %v8644_v38  ;;  %v2245_v18 = vrot.slane %v9169_v24, %v8647_v32  ;;  %v2249_v62 = vrot.slane %v9169_v24, %v8650_v17  ;;  %v3972_v45 = vrot.slane %v3944_v41, %v8679_v42 }
 0x34a   :  { %v3646_v53 = vcombine.low %v3638_v2, %v3645_v5  ;;  %v3973_v3 = vcombine.low %v3951_v21, %v3958_v36  ;;  %v2253_v46 = vrot.slane %v9169_v24, %v8655_v14  ;;  %v2257_v7 = vrot.slane %v9169_v24, %v8661_v47 }
 0x34b   :  { %v2261_v30 = vrot.slane %v9169_v24, %v8667_v39  ;;  %v3696_v9 = vcombine.low %v2233_v28, %v2237_v4  ;;  %v3697_v12 = vcombine.low %v2241_v26, %v2245_v18  ;;  %v3974_v37 = vcombine.low %v3965_v57, %v3972_v45 }
 0x34c   :  { %4063 = vperm.xlu1 %7759, %v3646_v53   ;;  %v3981_v35 = vrot.slane %v3973_v3, %v8679_v42  ;;  %v3698_v6 = vcombine.low %v2249_v62, %v2253_v46  ;;  %v2297_v25 = vrot.slane %v9225_v16, %v8637_v15  ;;  %v2301_v43 = vrot.slane %v9225_v16, %v8640_v8 }
 0x34d   :  { %v3699_v10 = vcombine.low %v2257_v7, %v2261_v30  ;;  %v3706_v29 = vrot.slane %v3696_v9, %v8679_v42  ;;  %v3713_v34 = vrot.slane %v3697_v12, %v8679_v42  ;;  %v3988_v24 = vrot.slane %v3974_v37, %v8679_v42 }
 0x34e   :  { %v3720_v1 = vrot.slane %v3698_v6, %v8679_v42  ;;  %v2305_v44 = vrot.slane %v9225_v16, %v8644_v38  ;;  %v2309_v27 = vrot.slane %v9225_v16, %v8647_v32  ;;  %v2313_v55 = vrot.slane %v9225_v16, %v8650_v17 }
 0x34f   :  { %v3727_v23 = vrot.slane %v3699_v10, %v8679_v42  ;;  %v3728_v22 = vcombine.low %v3706_v29, %v3713_v34  ;;  %v2317_v20 = vrot.slane %v9225_v16, %v8655_v14  ;;  %v3989_v33 = vcombine.low %v3981_v35, %v3988_v24  ;;  %v7761_v10 = vld [vmem:[%s10638_s0 + $0x8] sm:$0xff] }
 0x350   :  { %v2321_v48 = vrot.slane %v9225_v16, %v8661_v47  ;;  %v2325_v56 = vrot.slane %v9225_v16, %v8667_v39  ;;  %v3794_v54 = vcombine.low %v2297_v25, %v2301_v43  ;;  %v3795_v11 = vcombine.low %v2305_v44, %v2309_v27  ;;  %v7762_v27 = vld [vmem:[%s10638_s0 + $0x10] sm:$0xff] }
 0x351   :  { %v3729_v63 = vcombine.low %v3720_v1, %v3727_v23  ;;  %v3736_v59 = vrot.slane %v3728_v22, %v8679_v42  ;;  %v3796_v61 = vcombine.low %v2313_v55, %v2317_v20  ;;  %4084 = vperm.xlu0 %7760, %v3989_v33   ;;  %v2361_v40 = vrot.slane %v9281_v51, %v8637_v15  ;;  %v9630_v22 = vpop.permute.xlu1 %3994  ;;  %v7763_v20 = vld [vmem:[%s10638_s0] sm:$0xff] }
 0x352   :  { %v3797_v50 = vcombine.low %v2321_v48, %v2325_v56  ;;  %v3804_v13 = vrot.slane %v3794_v54, %v8679_v42  ;;  %v2365_v58 = vrot.slane %v9281_v51, %v8640_v8  ;;  %v3811_v16 = vrot.slane %v3795_v11, %v8679_v42 }
 0x353   :  { %v3743_v19 = vrot.slane %v3729_v63, %v8679_v42  ;;  %v3818_v0 = vrot.slane %v3796_v61, %v8679_v42  ;;  %v2369_v60 = vrot.slane %v9281_v51, %v8644_v38  ;;  %v2373_v2 = vrot.slane %v9281_v51, %v8647_v32  ;;  %v7764_v63 = vld [vmem:[%s10638_s0 + $0x18] sm:$0xff] }
 0x354   :  { %v3825_v49 = vrot.slane %v3797_v50, %v8679_v42  ;;  %v2377_v31 = vrot.slane %v9281_v51, %v8650_v17  ;;  %v2381_v28 = vrot.slane %v9281_v51, %v8655_v14  ;;  %v3826_v5 = vcombine.low %v3804_v13, %v3811_v16 }
 0x355   :  { %v3744_v4 = vcombine.low %v3736_v59, %v3743_v19  ;;  %v2385_v41 = vrot.slane %v9281_v51, %v8661_v47  ;;  %v2389_v21 = vrot.slane %v9281_v51, %v8667_v39  ;;  %v3892_v57 = vcombine.low %v2361_v40, %v2365_v58  ;;  %v9636_v56 = vpop.permute.xlu1 %4000  ;;  %v7765_v19 = vld [vmem:[%s10638_s0 + $0x28] sm:$0xff] }
 0x356   :  { %v3827_v36 = vcombine.low %v3818_v0, %v3825_v49  ;;  %v3893_v26 = vcombine.low %v2369_v60, %v2373_v2  ;;  %v3894_v18 = vcombine.low %v2377_v31, %v2381_v28  ;;  %v3834_v62 = vrot.slane %v3826_v5, %v8679_v42  ;;  %v7766_v60 = vld [vmem:[%s10638_s0 + $0x20] sm:$0xff] }
 0x357   :  { %4069 = vperm.xlu1 %7759, %v3744_v4   ;;  %v3895_v53 = vcombine.low %v2385_v41, %v2389_v21  ;;  %v3902_v3 = vrot.slane %v3892_v57, %v8679_v42  ;;  %v7767_v4 = vld [vmem:[%s10638_s0 + $0x38] sm:$0xff]  ;;  %vm4095_vm7 = vcmask 130112   ;;  %vm4102_vm8 = vcmask 195712  }
 0x358   :  { %v3841_v45 = vrot.slane %v3827_v36, %v8679_v42  ;;  %v3909_v46 = vrot.slane %v3893_v26, %v8679_v42  ;;  %v3916_v7 = vrot.slane %v3894_v18, %v8679_v42  ;;  %v7768_v36 = vld [vmem:[%s10638_s0 + $0x30] sm:$0xff]  ;;  %vm4109_vm9 = vcmask 261312  }
 0x359   :  { %v3923_v30 = vrot.slane %v3895_v53, %v8679_v42  ;;  %v9642_v50 = vpop.permute.xlu1 %3997  ;;  %vm4116_vm10 = vcmask 326912   ;;  %vm4123_vm11 = vcmask 392512   ;;  %vm4130_vm12 = vcmask 458112  }
 0x35a   :  { %v3842_v9 = vcombine.low %v3834_v62, %v3841_v45  ;;  %v3924_v51 = vcombine.low %v3902_v3, %v3909_v46  ;;  %v7769_v3 = vld [vmem:[%s10638_s0 + $0x48] sm:$0xff]  ;;  %vm4137_vm13 = vcmask 523712   ;;  %vm4144_vm14 = vcmask 589312  }
 0x35b   :  { %v3925_v12 = vcombine.low %v3916_v7, %v3923_v30  ;;  %vm4151_vm15 = vcmask 654912   ;;  %vm4158_vm1 = vcmask 720512   ;;  %vm4165_vm2 = vcmask 786112  }
 0x35c   :  { %4075 = vperm.xlu1 %7759, %v3842_v9   ;;  %v3932_v37 = vrot.slane %v3924_v51, %v8679_v42  ;;  %v7770_v9 = vld [vmem:[%s10638_s0 + $0x40] sm:$0xff]  ;;  %vm10664_vm3 = vcmask 851712   ;;  %vm4179_vm4 = vcmask 917312   ;;  %vm4186_vm5 = vcmask 982912  }
 0x35d   :  { %v3939_v35 = vrot.slane %v3925_v12, %v8679_v42  ;;  %v9645_v58 = vpop.permute.xlu1 %4006  ;;  %vm4193_vm6 = vcmask 1048512  }
 0x35f   :  { %v3940_v6 = vcombine.low %v3932_v37, %v3939_v35 }
 0x361   :  { %4081 = vperm.xlu1 %7759, %v3940_v6   ;;  %v9677_v18 = vpop.permute.xlu1 %4003 }
 0x370   :  { %v7652_v25 = vpop.f32.mrb[32].mxu0 }
 0x371   :  { %1367 = vst.msk [vmem:[%s10642_s4 + $0x8] sm:$0xff] %vm75_vm0, %v7652_v25  ;;  %v4295_v29 = vsub.f32 %v7761_v10, %v7652_v25  ;;  %v1207_v34 = vpop.f32.mrb[33].mxu0  ;;  %v9695_v25 = vpop.permute.xlu1 %4012  ;;  %v7771_v10 = vld [vmem:[%s10638_s0 + $0x58] sm:$0xff] }
 0x372   :  { %1366 = vst.msk [vmem:[%s10642_s4] sm:$0xff] %vm75_vm0, %v1207_v34  ;;  %v4294_v33 = vsub.f32 %v7763_v20, %v1207_v34 }
 0x373   :  { %v4327_v43 = vmul.f32 %v4295_v29, %v4295_v29 }
 0x374   :  { %v7655_v24 = vpop.f32.mrb[34].mxu0  ;;  %v4326_v54 = vmul.f32 %v4294_v33, %v4294_v33  ;;  %v9714_v33 = vpop.permute.xlu0 %3991 }
 0x375   :  { %1369 = vst.msk [vmem:[%s10642_s4 + $0x18] sm:$0xff] %vm75_vm0, %v7655_v24  ;;  %v1217_v1 = vpop.f32.mrb[35].mxu0  ;;  %v4361_v44 = vsel %vm75_vm0, %v4327_v43, 0.0  ;;  %v4297_v59 = vsub.f32 %v7764_v63, %v7655_v24  ;;  %v7772_v24 = vld [vmem:[%s10638_s0 + $0x50] sm:$0xff] }
 0x376   :  { %1368 = vst.msk [vmem:[%s10642_s4 + $0x10] sm:$0xff] %vm75_vm0, %v1217_v1  ;;  %v4296_v23 = vsub.f32 %v7762_v27, %v1217_v1  ;;  %4362 = vadd.xlane.f32.xlu0 %v4361_v44  ;;  %v4358_v61 = vsel %vm75_vm0, %v4326_v54, 0.0 }
 0x377   :  { %v4329_v11 = vmul.f32 %v4297_v59, %v4297_v59 }
 0x378   :  { %v4328_v55 = vmul.f32 %v4296_v23, %v4296_v23 }
 0x379   :  { %v4367_v13 = vsel %vm75_vm0, %v4329_v11, 0.0  ;;  %v9724_v11 = vpop.permute.xlu1 %4009 }
 0x37a   :  { %v4364_v48 = vsel %vm75_vm0, %v4328_v55, 0.0 }
 0x37b   :  { %4365 = vadd.xlane.f32.xlu0 %v4364_v48  ;;  %v7773_v48 = vld [vmem:[%s10638_s0 + $0x68] sm:$0xff] }
 0x385   :  { %4359 = vadd.xlane.f32.xlu1 %v4358_v61  ;;  %v7774_v61 = vld [vmem:[%s10638_s0 + $0x60] sm:$0xff] }
 0x387   :  { %v7658_v40 = vpop.f32.mrb[36].mxu0 }
 0x388   :  { %1371 = vst.msk [vmem:[%s10642_s4 + $0x28] sm:$0xff] %vm75_vm0, %v7658_v40  ;;  %v4299_v16 = vsub.f32 %v7765_v19, %v7658_v40  ;;  %v1227_v0 = vpop.f32.mrb[37].mxu0 }
 0x389   :  { %4368 = vadd.xlane.f32.xlu1 %v4367_v13  ;;  %1370 = vst.msk [vmem:[%s10642_s4 + $0x20] sm:$0xff] %vm75_vm0, %v1227_v0  ;;  %v4298_v49 = vsub.f32 %v7766_v60, %v1227_v0 }
 0x38a   :  { %v4331_v2 = vmul.f32 %v4299_v16, %v4299_v16  ;;  %v9733_v16 = vpop.permute.xlu0 %4018 }
 0x38b   :  { %v4330_v31 = vmul.f32 %v4298_v49, %v4298_v49  ;;  %v7661_v28 = vpop.f32.mrb[0].mxu1  ;;  %v9737_v49 = vpop.permute.xlu1 %4015 }
 0x38c   :  { %1373 = vst.msk [vmem:[%s10642_s4 + $0x38] sm:$0xff] %vm75_vm0, %v7661_v28  ;;  %v4301_v5 = vsub.f32 %v7767_v4, %v7661_v28  ;;  %v1237_v41 = vpop.f32.mrb[1].mxu1  ;;  %v4373_v21 = vsel %vm75_vm0, %v4331_v2, 0.0 }
 0x38d   :  { %1372 = vst.msk [vmem:[%s10642_s4 + $0x30] sm:$0xff] %vm75_vm0, %v1237_v41  ;;  %v4300_v57 = vsub.f32 %v7768_v36, %v1237_v41  ;;  %4374 = vadd.xlane.f32.xlu1 %v4373_v21  ;;  %v4370_v26 = vsel %vm75_vm0, %v4330_v31, 0.0  ;;  %v7775_v31 = vld [vmem:[%s10638_s0 + $0x78] sm:$0xff]  ;;  %v7776_v41 = vld [vmem:[%s10638_s0 + $0x70] sm:$0xff] }
 0x38e   :  { %v4333_v62 = vmul.f32 %v4301_v5, %v4301_v5  ;;  %4371 = vadd.xlane.f32.xlu0 %v4370_v26  ;;  %v9746_v5 = vpop.permute.xlu0 %4024 }
 0x38f   :  { %v4332_v53 = vmul.f32 %v4300_v57, %v4300_v57  ;;  %v7664_v45 = vpop.f32.mrb[2].mxu1  ;;  %v9755_v26 = vpop.permute.xlu1 %4021 }
 0x390   :  { %1375 = vst.msk [vmem:[%s10642_s4 + $0x48] sm:$0xff] %vm75_vm0, %v7664_v45  ;;  %v4303_v46 = vsub.f32 %v7769_v3, %v7664_v45  ;;  %v1247_v7 = vpop.f32.mrb[3].mxu1  ;;  %v4379_v30 = vsel %vm75_vm0, %v4333_v62, 0.0 }
 0x391   :  { %1374 = vst.msk [vmem:[%s10642_s4 + $0x40] sm:$0xff] %vm75_vm0, %v1247_v7  ;;  %v4302_v51 = vsub.f32 %v7770_v9, %v1247_v7  ;;  %4380 = vadd.xlane.f32.xlu1 %v4379_v30  ;;  %v4376_v12 = vsel %vm75_vm0, %v4332_v53, 0.0  ;;  %v7777_v7 = vld [vmem:[%s10638_s0 + $0x88] sm:$0xff] }
 0x392   :  { %v4335_v37 = vmul.f32 %v4303_v46, %v4303_v46  ;;  %4377 = vadd.xlane.f32.xlu0 %v4376_v12  ;;  %v9759_v45 = vpop.permute.xlu0 %4030  ;;  %v7778_v12 = vld [vmem:[%s10638_s0 + $0x80] sm:$0xff] }
 0x393   :  { %v4334_v35 = vmul.f32 %v4302_v51, %v4302_v51  ;;  %v7667_v6 = vpop.f32.mrb[4].mxu1  ;;  %v9761_v3 = vpop.permute.xlu1 %4027 }
 0x394   :  { %1377 = vst.msk [vmem:[%s10642_s4 + $0x58] sm:$0xff] %vm75_vm0, %v7667_v6  ;;  %v4305_v29 = vsub.f32 %v7771_v10, %v7667_v6  ;;  %v1257_v34 = vpop.f32.mrb[5].mxu1  ;;  %v4385_v43 = vsel %vm75_vm0, %v4335_v37, 0.0 }
 0x395   :  { %1376 = vst.msk [vmem:[%s10642_s4 + $0x50] sm:$0xff] %vm75_vm0, %v1257_v34  ;;  %v4304_v1 = vsub.f32 %v7772_v24, %v1257_v34  ;;  %4386 = vadd.xlane.f32.xlu1 %v4385_v43  ;;  %v4382_v44 = vsel %vm75_vm0, %v4334_v35, 0.0 }
 0x396   :  { %v4337_v27 = vmul.f32 %v4305_v29, %v4305_v29  ;;  %4383 = vadd.xlane.f32.xlu0 %v4382_v44  ;;  %v9770_v51 = vpop.permute.xlu0 %4036  ;;  %v4090_v44 = vadd.s32 4294967288, %v10690_v52 }
 0x397   :  { %v4336_v23 = vmul.f32 %v4304_v1, %v4304_v1  ;;  %v9779_v10 = vpop.permute.xlu1 %4033 }
 0x398   :  { %v7670_v55 = vpop.f32.mrb[6].mxu1  ;;  %v4391_v20 = vsel %vm75_vm0, %v4337_v27, 0.0  ;;  %v7779_v27 = vld [vmem:[%s10638_s0 + $0x98] sm:$0xff] }
 0x399   :  { %1379 = vst.msk [vmem:[%s10642_s4 + $0x68] sm:$0xff] %vm75_vm0, %v7670_v55  ;;  %v4307_v54 = vsub.f32 %v7773_v48, %v7670_v55  ;;  %v1267_v63 = vpop.f32.mrb[7].mxu1  ;;  %4392 = vadd.xlane.f32.xlu1 %v4391_v20  ;;  %v4388_v59 = vsel %vm75_vm0, %v4336_v23, 0.0  ;;  %v7780_v48 = vld [vmem:[%s10638_s0 + $0x90] sm:$0xff] }
 0x39a   :  { %1378 = vst.msk [vmem:[%s10642_s4 + $0x60] sm:$0xff] %vm75_vm0, %v1267_v63  ;;  %v4306_v13 = vsub.f32 %v7774_v61, %v1267_v63  ;;  %4389 = vadd.xlane.f32.xlu0 %v4388_v59  ;;  %v9783_v43 = vpop.permute.xlu0 %4042  ;;  %v4097_v63 = vadd.s32 4294967280, %v10690_v52 }
 0x39b   :  { %v4339_v40 = vmul.f32 %v4307_v54, %v4307_v54 }
 0x39c   :  { %v4338_v19 = vmul.f32 %v4306_v13, %v4306_v13  ;;  %v10693_v13 = vld [vmem:[#allocation9_spill] sm:$0xff] }
 0x39d   :  { %v4397_v0 = vsel %vm75_vm0, %v4339_v40, 0.0  ;;  %v9804_v40 = vsub.s32 %v4090_v44, %v10693_v13 }
 0x39e   :  { %4398 = vadd.xlane.f32.xlu1 %v4397_v0  ;;  %v4394_v60 = vsel %vm75_vm0, %v4338_v19, 0.0  ;;  %v9793_v20 = vpop.permute.xlu0 %4048  ;;  %v9808_v19 = vsub.s32 %v10690_v52, %v10693_v13 }
 0x39f   :  { %4395 = vadd.xlane.f32.xlu0 %v4394_v60  ;;  %v4040_v24 = vpop.permute.xlu1 %4039 }
 0x3a1   :  { %v7673_v2 = vpop.f32.mrb[8].mxu1 }
 0x3a2   :  { %1381 = vst.msk [vmem:[%s10642_s4 + $0x78] sm:$0xff] %vm75_vm0, %v7673_v2  ;;  %v4309_v28 = vsub.f32 %v7775_v31, %v7673_v2  ;;  %v1277_v4 = vpop.f32.mrb[9].mxu1  ;;  %v9813_v31 = vsub.s32 %v4097_v63, %v10693_v13  ;;  %v4139_v63 = vadd.s32 4294967232, %v10690_v52 }
 0x3a3   :  { %1380 = vst.msk [vmem:[%s10642_s4 + $0x70] sm:$0xff] %vm75_vm0, %v1277_v4  ;;  %v4308_v21 = vsub.f32 %v7776_v41, %v1277_v4  ;;  %v4111_v4 = vadd.s32 4294967264, %v10690_v52  ;;  %v9817_v41 = vpop.permute.xlu0 %4054 }
 0x3a4   :  { %v4341_v36 = vmul.f32 %v4309_v28, %v4309_v28  ;;  %v4104_v28 = vadd.s32 4294967272, %v10690_v52 }
 0x3a5   :  { %v4340_v57 = vmul.f32 %v4308_v21, %v4308_v21  ;;  %v4094_v21 = vrot.slane %v9630_v22, %v9804_v40 }
 0x3a6   :  { %v4403_v62 = vsel %vm75_vm0, %v4341_v36, 0.0  ;;  %v4089_v36 = vrot.slane %v9714_v33, %v9808_v19  ;;  %v4198_v33 = vrot.slane %v4040_v24, %v9808_v19  ;;  %v7782_v24 = vld [vmem:[%s10638_s0 + $0xa0] sm:$0xff] }
 0x3a7   :  { %4404 = vadd.xlane.f32.xlu1 %v4403_v62  ;;  %v4400_v53 = vsel %vm75_vm0, %v4340_v57, 0.0  ;;  %v4118_v57 = vadd.s32 4294967256, %v10690_v52  ;;  %v4101_v62 = vrot.slane %v9642_v50, %v9813_v31  ;;  %v7781_v50 = vld [vmem:[%s10638_s0 + $0xa8] sm:$0xff] }
 0x3a8   :  { %4401 = vadd.xlane.f32.xlu0 %v4400_v53 }
 0x3ab   :  { %v4046_v0 = vpop.permute.xlu1 %4045 }
 0x3ad   :  { %v7676_v46 = vpop.f32.mrb[10].mxu1 }
 0x3ae   :  { %1383 = vst.msk [vmem:[%s10642_s4 + $0x88] sm:$0xff] %vm75_vm0, %v7676_v46  ;;  %v4311_v30 = vsub.f32 %v7777_v7, %v7676_v46  ;;  %v1287_v9 = vpop.f32.mrb[11].mxu1  ;;  %v9827_v46 = vsub.s32 %v4104_v28, %v10693_v13  ;;  %v9830_v7 = vsub.s32 %v4111_v4, %v10693_v13 }
 0x3af   :  { %1382 = vst.msk [vmem:[%s10642_s4 + $0x80] sm:$0xff] %vm75_vm0, %v1287_v9  ;;  %v4310_v37 = vsub.f32 %v7778_v12, %v1287_v9  ;;  %v4096_v9 = vsel %vm4095_vm7, %v4094_v21, %v4089_v36 }
 0x3b0   :  { %v4343_v35 = vmul.f32 %v4311_v30, %v4311_v30  ;;  %v4125_v30 = vadd.s32 4294967248, %v10690_v52  ;;  %v4103_v44 = vsel %vm4102_vm8, %v4101_v62, %v4096_v9  ;;  %v4212_v36 = vrot.slane %v9793_v20, %v9827_v46 }
 0x3b1   :  { %v4342_v6 = vmul.f32 %v4310_v37, %v4310_v37 }
 0x3b2   :  { %v4409_v29 = vsel %vm75_vm0, %v4343_v35, 0.0  ;;  %v9843_v35 = vsub.s32 %v4118_v57, %v10693_v13 }
 0x3b3   :  { %4410 = vadd.xlane.f32.xlu1 %v4409_v29  ;;  %v4406_v34 = vsel %vm75_vm0, %v4342_v6, 0.0  ;;  %v4132_v6 = vadd.s32 4294967240, %v10690_v52  ;;  %v4207_v29 = vrot.slane %v4046_v0, %v9813_v31 }
 0x3b4   :  { %4407 = vadd.xlane.f32.xlu0 %v4406_v34  ;;  %v9847_v34 = vpop.permute.xlu0 %4060  ;;  %v4122_v9 = vrot.slane %v9645_v58, %v9843_v35  ;;  %v4222_v58 = vrot.slane %v9817_v41, %v9843_v35 }
 0x3b6   :  { %v4052_v53 = vpop.permute.xlu1 %4051 }
 0x3b7   :  { %v4217_v28 = vrot.slane %v4052_v53, %v9830_v7  ;;  %v9886_v53 = vsub.s32 %v4139_v63, %v10693_v13 }
 0x3b9   :  { %v7679_v1 = vpop.f32.mrb[12].mxu1 }
 0x3ba   :  { %1385 = vst.msk [vmem:[%s10642_s4 + $0x98] sm:$0xff] %vm75_vm0, %v7679_v1  ;;  %v4313_v23 = vsub.f32 %v7779_v27, %v7679_v1  ;;  %v1297_v55 = vpop.f32.mrb[13].mxu1  ;;  %v4146_v27 = vadd.s32 4294967224, %v10690_v52 }
 0x3bb   :  { %1384 = vst.msk [vmem:[%s10642_s4 + $0x90] sm:$0xff] %vm75_vm0, %v1297_v55  ;;  %v4312_v54 = vsub.f32 %v7780_v48, %v1297_v55  ;;  %v4115_v48 = vrot.slane %v9677_v18, %v9830_v7 }
 0x3bc   :  { %v4345_v59 = vmul.f32 %v4313_v23, %v4313_v23  ;;  %v4202_v23 = vrot.slane %v9783_v43, %v9804_v40  ;;  %v9871_v43 = vsub.s32 %v4132_v6, %v10693_v13 }
 0x3bd   :  { %v4344_v61 = vmul.f32 %v4312_v54, %v4312_v54  ;;  %v9863_v54 = vsub.s32 %v4125_v30, %v10693_v13  ;;  %v4153_v30 = vadd.s32 4294967216, %v10690_v52 }
 0x3be   :  { %v4415_v60 = vsel %vm75_vm0, %v4345_v59, 0.0  ;;  %v4203_v0 = vsel %vm4095_vm7, %v4202_v23, %v4198_v33  ;;  %v4160_v33 = vadd.s32 4294967208, %v10690_v52 }
 0x3bf   :  { %4416 = vadd.xlane.f32.xlu1 %v4415_v60  ;;  %v4412_v2 = vsel %vm75_vm0, %v4344_v61, 0.0  ;;  %v4108_v61 = vrot.slane %v9636_v56, %v9827_v46  ;;  %v4208_v18 = vsel %vm4102_vm8, %v4207_v29, %v4203_v0  ;;  %v9878_v56 = vsub.s32 %v4146_v27, %v10693_v13 }
 0x3c0   :  { %4413 = vadd.xlane.f32.xlu0 %v4412_v2  ;;  %v4129_v62 = vrot.slane %v9724_v11, %v9863_v54  ;;  %v4213_v20 = vsel %vm4109_vm9, %v4212_v36, %v4208_v18  ;;  %v4232_v18 = vrot.slane %v9847_v34, %v9871_v43 }
 0x3c1   :  { %v4058_v60 = vpop.permute.xlu1 %4057  ;;  %v4110_v21 = vsel %vm4109_vm9, %v4108_v61, %v4103_v44  ;;  %v4218_v11 = vsel %vm4116_vm10, %v4217_v28, %v4213_v20  ;;  %v4167_v44 = vadd.s32 4294967200, %v10690_v52  ;;  %v7784_v61 = vld [vmem:[%s10638_s0 + $0xb0] sm:$0xff] }
 0x3c2   :  { %v4117_v57 = vsel %vm4116_vm10, %v4115_v48, %v4110_v21  ;;  %v4223_v23 = vsel %vm4123_vm11, %v4222_v58, %v4218_v11  ;;  %v4188_v11 = vadd.s32 4294967176, %v10690_v52 }
 0x3c3   :  { %v4124_v6 = vsel %vm4123_vm11, %v4122_v9, %v4117_v57  ;;  %v9939_v36 = vsub.s32 %v4167_v44, %v10693_v13 }
 0x3c5   :  { %v7682_v22 = vpop.f32.mrb[14].mxu1  ;;  %v4171_v58 = vrot.slane %v9761_v3, %v9939_v36 }
 0x3c6   :  { %1387 = vst.msk [vmem:[%s10642_s4 + $0xa8] sm:$0xff] %vm75_vm0, %v7682_v22  ;;  %v4315_v12 = vsub.f32 %v7781_v50, %v7682_v22  ;;  %v1307_v37 = vpop.f32.mrb[15].mxu1  ;;  %v9889_v22 = vpop.permute.xlu0 %4066  ;;  %v4136_v50 = vrot.slane %v9695_v25, %v9871_v43  ;;  %v9908_v25 = vsub.s32 %v4153_v30, %v10693_v13 }
 0x3c7   :  { %1386 = vst.msk [vmem:[%s10642_s4 + $0xa0] sm:$0xff] %vm75_vm0, %v1307_v37  ;;  %v4314_v1 = vsub.f32 %v7782_v24, %v1307_v37  ;;  %v4150_v37 = vrot.slane %v9733_v16, %v9878_v56  ;;  %v4131_v24 = vsel %vm4130_vm12, %v4129_v62, %v4124_v6  ;;  %v9912_v16 = vsub.s32 %v4160_v33, %v10693_v13 }
 0x3c8   :  { %v4347_v55 = vmul.f32 %v4315_v12, %v4315_v12  ;;  %v4227_v12 = vrot.slane %v4058_v60, %v9863_v54  ;;  %v4138_v60 = vsel %vm4137_vm13, %v4136_v50, %v4131_v24  ;;  %v4157_v21 = vrot.slane %v9755_v26, %v9908_v25 }
 0x3c9   :  { %v4346_v59 = vmul.f32 %v4314_v1, %v4314_v1  ;;  %v4143_v1 = vrot.slane %v9737_v49, %v9886_v53  ;;  %v7783_v49 = vld [vmem:[%s10638_s0 + $0xb8] sm:$0xff]  ;;  %v4174_v62 = vadd.s32 4294967192, %v10690_v52 }
 0x3ca   :  { %v4421_v2 = vsel %vm75_vm0, %v4347_v55, 0.0  ;;  %v4228_v48 = vsel %vm4130_vm12, %v4227_v12, %v4223_v23  ;;  %v4073_v63 = vpop.permute.xlu0 %4072  ;;  %v4242_v12 = vrot.slane %v9889_v22, %v9878_v56 }
 0x3cb   :  { %4422 = vadd.xlane.f32.xlu1 %v4421_v2  ;;  %v4418_v4 = vsel %vm75_vm0, %v4346_v59, 0.0  ;;  %v4064_v29 = vpop.permute.xlu1 %4063  ;;  %v4181_v2 = vadd.s32 4294967184, %v10690_v52  ;;  %v4233_v30 = vsel %vm4137_vm13, %v4232_v18, %v4228_v48  ;;  %v4252_v3 = vrot.slane %v4073_v63, %v9912_v16 }
 0x3cc   :  { %4419 = vadd.xlane.f32.xlu0 %v4418_v4  ;;  %v4237_v59 = vrot.slane %v4064_v29, %v9886_v53  ;;  %v4145_v4 = vsel %vm4144_vm14, %v4143_v1, %v4138_v60  ;;  %v4164_v1 = vrot.slane %v9746_v5, %v9912_v16 }
 0x3cd   :  { %v4152_v26 = vsel %vm4151_vm15, %v4150_v37, %v4145_v4  ;;  %v9955_v29 = vsub.s32 %v4181_v2, %v10693_v13  ;;  %v9960_v37 = vsub.s32 %v4174_v62, %v10693_v13 }
 0x3ce   :  { %v4238_v34 = vsel %vm4144_vm14, %v4237_v59, %v4233_v30  ;;  %v4159_v6 = vsel %vm4158_vm1, %v4157_v21, %v4152_v26  ;;  %v4079_v24 = vpop.permute.xlu0 %4078 }
 0x3cf   :  { %v4243_v52 = vsel %vm4151_vm15, %v4242_v12, %v4238_v34  ;;  %v4178_v48 = vrot.slane %v9759_v45, %v9960_v37  ;;  %v7786_v45 = vld [vmem:[%s10638_s0 + $0xc0] sm:$0xff]  ;;  %v4262_v18 = vrot.slane %v4079_v24, %v9960_v37 }
 0x3d1   :  { %v7685_v27 = vpop.f32.mrb[16].mxu1 }
 0x3d2   :  { %1389 = vst.msk [vmem:[%s10642_s4 + $0xb8] sm:$0xff] %vm75_vm0, %v7685_v27  ;;  %v4317_v41 = vsub.f32 %v7783_v49, %v7685_v27  ;;  %v1317_v55 = vpop.f32.mrb[17].mxu1  ;;  %v4166_v27 = vsel %vm4165_vm2, %v4164_v1, %v4159_v6  ;;  %v9968_v49 = vsub.s32 %v4188_v11, %v10693_v13  ;;  %v7785_v13 = vld [vmem:[%s10638_s0 + $0xc8] sm:$0xff] }
 0x3d3   :  { %1388 = vst.msk [vmem:[%s10642_s4 + $0xb0] sm:$0xff] %vm75_vm0, %v1317_v55  ;;  %v4316_v0 = vsub.f32 %v7784_v61, %v1317_v55  ;;  %v4173_v5 = vsel %vm10664_vm3, %v4171_v58, %v4166_v27  ;;  %v7788_v27 = vld [vmem:[%s10638_s0 + $0xd0] sm:$0xff] }
 0x3d4   :  { %v4349_v28 = vmul.f32 %v4317_v41, %v4317_v41  ;;  %v4185_v41 = vrot.slane %v9779_v10, %v9955_v29  ;;  %v4180_v2 = vsel %vm4179_vm4, %v4178_v48, %v4173_v5  ;;  %v4192_v30 = vrot.slane %v9770_v51, %v9968_v49 }
 0x3d5   :  { %v4348_v57 = vmul.f32 %v4316_v0, %v4316_v0  ;;  %v4085_v0 = vpop.permute.xlu0 %4084  ;;  %v10694_v51 = vlaneseq }
 0x3d6   :  { %v4070_v9 = vpop.permute.xlu1 %4069  ;;  %v4427_v33 = vsel %vm75_vm0, %v4349_v28, 0.0  ;;  %v4187_v21 = vsel %vm4186_vm5, %v4185_v41, %v4180_v2 }
 0x3d7   :  { %v4247_v20 = vrot.slane %v4070_v9, %v9908_v25  ;;  %4428 = vadd.xlane.f32.xlu1 %v4427_v33  ;;  %v4424_v50 = vsel %vm75_vm0, %v4348_v57, 0.0  ;;  %v4272_v9 = vrot.slane %v4085_v0, %v9968_v49  ;;  %v4194_v26 = vsel %vm4193_vm6, %v4192_v30, %v4187_v21 }
 0x3d8   :  { %4425 = vadd.xlane.f32.xlu0 %v4424_v50 }
 0x3d9   :  { %v4248_v22 = vsel %vm4158_vm1, %v4247_v20, %v4243_v52  ;;  %v7787_v52 = vld [vmem:[%s10638_s0 + $0xd8] sm:$0xff] }
 0x3da   :  { %v4253_v59 = vsel %vm4165_vm2, %v4252_v3, %v4248_v22 }
 0x3db   :  { %v4076_v44 = vpop.permute.xlu1 %4075 }
 0x3dc   :  { %v4257_v23 = vrot.slane %v4076_v44, %v9939_v36 }
 0x3dd   :  { %v7688_v55 = vpop.f32.mrb[18].mxu1 }
 0x3de   :  { %1391 = vst.msk [vmem:[%s10642_s4 + $0xc8] sm:$0xff] %vm75_vm0, %v7688_v55  ;;  %v4319_v63 = vsub.f32 %v7785_v13, %v7688_v55  ;;  %v1327_v61 = vpop.f32.mrb[19].mxu1  ;;  %v4258_v10 = vsel %vm10664_vm3, %v4257_v23, %v4253_v59  ;;  %vm10006_vm3 = vcmp.lt.s32.totalorder %v10694_v51, 256  ;;  %v7789_v59 = vld [vmem:[%s10638_s0 + $0xe8] sm:$0xff] }
 0x3df   :  { %1390 = vst.msk [vmem:[%s10642_s4 + $0xc0] sm:$0xff] %vm75_vm0, %v1327_v61  ;;  %v4318_v60 = vsub.f32 %v7786_v45, %v1327_v61  ;;  %v4263_v33 = vsel %vm4179_vm4, %v4262_v18, %v4258_v10  ;;  %v7790_v61 = vld [vmem:[%s10638_s0 + $0xe0] sm:$0xff] }
 0x3e0   :  { %v4082_v28 = vpop.permute.xlu1 %4081  ;;  %v4351_v4 = vmul.f32 %v4319_v63, %v4319_v63 }
 0x3e1   :  { %v4267_v57 = vrot.slane %v4082_v28, %v9955_v29  ;;  %v4350_v62 = vmul.f32 %v4318_v60, %v4318_v60  ;;  %v7791_v28 = vld [vmem:[%s10638_s0 + $0xf8] sm:$0xff] }
 0x3e2   :  { %v4433_v34 = vsel %vm75_vm0, %v4351_v4, 0.0 }
 0x3e3   :  { %v4268_v20 = vsel %vm4186_vm5, %v4267_v57, %v4263_v33  ;;  %4434 = vadd.xlane.f32.xlu1 %v4433_v34  ;;  %v4430_v50 = vsel %vm75_vm0, %v4350_v62, 0.0  ;;  %v7792_v57 = vld [vmem:[%s10638_s0 + $0xf0] sm:$0xff]  ;;  %s7844_s0 = smov [#allocation2]  }
 0x3e4   :  { %v4273_v11 = vsel %vm4193_vm6, %v4272_v9, %v4268_v20  ;;  %4431 = vadd.xlane.f32.xlu0 %v4430_v50 }
 0x3e5   :  { %v4274_v12 = vcombine.low %v4194_v26, %v4273_v11 }
 0x3e7   :  { %v4281_v6 = vrot.slane %v4274_v12, %v8679_v42 }
 0x3e9   :  { %v7691_v24 = vpop.f32.mrb[20].mxu1  ;;  %v4288_v1 = vrot.slane %v4281_v6, %v8679_v42 }
 0x3ea   :  { %1393 = vst.msk [vmem:[%s10642_s4 + $0xd8] sm:$0xff] %vm75_vm0, %v7691_v24  ;;  %v4321_v22 = vsub.f32 %v7787_v52, %v7691_v24  ;;  %v1337_v44 = vpop.f32.mrb[21].mxu1 }
 0x3eb   :  { %1392 = vst.msk [vmem:[%s10642_s4 + $0xd0] sm:$0xff] %vm75_vm0, %v1337_v44  ;;  %v4320_v3 = vsub.f32 %v7788_v27, %v1337_v44 }
 0x3ec   :  { %4293 = vst.msk [vmem:[#allocation2] sm:$0x3] %vm10006_vm3, %v4288_v1  ;;  %v4353_v23 = vmul.f32 %v4321_v22, %v4321_v22 }
 0x3ed   :  { %v4352_v5 = vmul.f32 %v4320_v3, %v4320_v3 }
 0x3ee   :  { %v4439_v41 = vsel %vm75_vm0, %v4353_v23, 0.0 }
 0x3ef   :  { %4440 = vadd.xlane.f32.xlu1 %v4439_v41  ;;  %v4436_v55 = vsel %vm75_vm0, %v4352_v5, 0.0 }
 0x3f0   :  { %4437 = vadd.xlane.f32.xlu0 %v4436_v55 }
 0x3f5   :  { %v7694_v48 = vpop.f32.mrb[22].mxu1 }
 0x3f6   :  { %1395 = vst.msk [vmem:[%s10642_s4 + $0xe8] sm:$0xff] %vm75_vm0, %v7694_v48  ;;  %v4323_v13 = vsub.f32 %v7789_v59, %v7694_v48  ;;  %v1347_v63 = vpop.f32.mrb[23].mxu1 }
 0x3f7   :  { %1394 = vst.msk [vmem:[%s10642_s4 + $0xe0] sm:$0xff] %vm75_vm0, %v1347_v63  ;;  %v4322_v0 = vsub.f32 %v7790_v61, %v1347_v63 }
 0x3f8   :  { %v4355_v10 = vmul.f32 %v4323_v13, %v4323_v13 }
 0x3f9   :  { %v4354_v45 = vmul.f32 %v4322_v0, %v4322_v0 }
 0x3fa   :  { %v4445_v60 = vsel %vm75_vm0, %v4355_v10, 0.0 }
 0x3fb   :  { %4446 = vadd.xlane.f32.xlu1 %v4445_v60  ;;  %v4442_v2 = vsel %vm75_vm0, %v4354_v45, 0.0 }
 0x3fc   :  { %4443 = vadd.xlane.f32.xlu0 %v4442_v2 }
 0x400   :  { %v7697_v18 = vpop.f32.mrb[24].mxu1 }
 0x401   :  { %1397 = vst.msk [vmem:[%s10642_s4 + $0xf8] sm:$0xff] %vm75_vm0, %v7697_v18  ;;  %v4325_v4 = vsub.f32 %v7791_v28, %v7697_v18  ;;  %v1357_v21 = vpop.f32.mrb[25].mxu1 }
 0x402   :  { %1396 = vst.msk [vmem:[%s10642_s4 + $0xf0] sm:$0xff] %vm75_vm0, %v1357_v21  ;;  %v4324_v62 = vsub.f32 %v7792_v57, %v1357_v21  ;;  %s7357_s4 = sshll.u32 %s7844_s0, 4  ;;  %s7358_s4 = int_to_ptr.vmem [resolvable:$true] %s7357_s4 }
 0x403   :  { %v4357_v30 = vmul.f32 %v4325_v4, %v4325_v4  ;;  %v4363_v33 = vpop.xlane.xlu0 %4362  ;;  %s7793_s19 = scalar_lea.vmem %s7358_s4, 32  ;;  %p7798_p1 = scmp.lt.s32.totalorder %s7358_s4, %s7358_s4 }
 0x404   :  { %v4356_v9 = vmul.f32 %v4324_v62, %v4324_v62  ;;  %v4521_v20 = vrot.slane %v4363_v33, %v8637_v15  ;;  %v4525_v50 = vrot.slane %v4363_v33, %v8640_v8  ;;  %v4529_v26 = vrot.slane %v4363_v33, %v8644_v38  ;;  %p7794_p0 = scmp.ne.s32.totalorder %s7358_s4, %s7793_s19  ;;  %p7799_p2 = scmp.lt.s32.totalorder %s7793_s19, %s7793_s19 }
 0x405   :  { %v4451_v34 = vsel %vm75_vm0, %v4357_v30, 0.0  ;;  %v4533_v12 = vrot.slane %v4363_v33, %v8647_v32  ;;  %v4537_v6 = vrot.slane %v4363_v33, %v8650_v17  ;;  %v4541_v51 = vrot.slane %v4363_v33, %v8655_v14 }
 0x406   :  { %4452 = vadd.xlane.f32.xlu1 %v4451_v34  ;;  %v4448_v11 = vsel %vm75_vm0, %v4356_v9, 0.0  ;;  %v4545_v24 = vrot.slane %v4363_v33, %v8661_v47  ;;  %v4549_v1 = vrot.slane %v4363_v33, %v8667_v39  ;;  %v5559_v52 = vcombine.low %v4521_v20, %v4525_v50  ;;  %p7800_p3 = por %p7799_p2, %p7798_p1 }
 0x407   :  { %4449 = vadd.xlane.f32.xlu0 %v4448_v11  ;;  %v5560_v22 = vcombine.low %v4529_v26, %v4533_v12  ;;  %v5561_v44 = vcombine.low %v4537_v6, %v4541_v51 }
 0x408   :  { %v4366_v27 = vpop.xlane.xlu0 %4365  ;;  %v5562_v3 = vcombine.low %v4545_v24, %v4549_v1  ;;  %v5569_v23 = vrot.slane %v5559_v52, %v8679_v42  ;;  %p7801_p4 = pnand %p7800_p3, %p7794_p0 }
 0x409   :  { %v5576_v5 = vrot.slane %v5560_v22, %v8679_v42  ;;  %v5583_v41 = vrot.slane %v5561_v44, %v8679_v42  ;;  %v4553_v55 = vrot.slane %v4366_v27, %v8637_v15  ;;  %v4557_v48 = vrot.slane %v4366_v27, %v8640_v8 }
 0x40a   :  { %v5590_v59 = vrot.slane %v5562_v3, %v8679_v42  ;;  %v4561_v13 = vrot.slane %v4366_v27, %v8644_v38  ;;  %v4565_v63 = vrot.slane %v4366_v27, %v8647_v32  ;;  %v4569_v61 = vrot.slane %v4366_v27, %v8650_v17 }
 0x40b   :  { %v5591_v0 = vcombine.low %v5569_v23, %v5576_v5  ;;  %v4573_v10 = vrot.slane %v4366_v27, %v8655_v14  ;;  %v4577_v45 = vrot.slane %v4366_v27, %v8661_v47  ;;  %v4581_v60 = vrot.slane %v4366_v27, %v8667_v39 }
 0x40c   :  { %v5592_v2 = vcombine.low %v5583_v41, %v5590_v59  ;;  %v5608_v18 = vcombine.low %v4553_v55, %v4557_v48  ;;  %v5609_v28 = vcombine.low %v4561_v13, %v4565_v63 }
 0x40d   :  { %v5599_v4 = vrot.slane %v5591_v0, %v8679_v42  ;;  %v5610_v21 = vcombine.low %v4569_v61, %v4573_v10  ;;  %v5611_v57 = vcombine.low %v4577_v45, %v4581_v60 }
 0x40e   :  { %v5606_v62 = vrot.slane %v5592_v2, %v8679_v42  ;;  %v5618_v30 = vrot.slane %v5608_v18, %v8679_v42  ;;  %v5625_v9 = vrot.slane %v5609_v28, %v8679_v42 }
 0x40f   :  { %v5632_v33 = vrot.slane %v5610_v21, %v8679_v42  ;;  %v5639_v34 = vrot.slane %v5611_v57, %v8679_v42 }
 0x410   :  { %v5607_v50 = vcombine.low %v5599_v4, %v5606_v62  ;;  %v5640_v26 = vcombine.low %v5618_v30, %v5625_v9 }
 0x411   :  { %v5641_v11 = vcombine.low %v5632_v33, %v5639_v34 }
 0x412   :  { %v4360_v20 = vpop.xlane.xlu1 %4359  ;;  %v5648_v55 = vrot.slane %v5640_v26, %v8679_v42 }
 0x413   :  { %v4489_v12 = vrot.slane %v4360_v20, %v8637_v15  ;;  %v4493_v6 = vrot.slane %v4360_v20, %v8640_v8  ;;  %v4497_v51 = vrot.slane %v4360_v20, %v8644_v38  ;;  %v4501_v24 = vrot.slane %v4360_v20, %v8647_v32 }
 0x414   :  { %v4505_v1 = vrot.slane %v4360_v20, %v8650_v17  ;;  %v4509_v52 = vrot.slane %v4360_v20, %v8655_v14  ;;  %v4513_v22 = vrot.slane %v4360_v20, %v8661_v47  ;;  %v4517_v44 = vrot.slane %v4360_v20, %v8667_v39 }
 0x415   :  { %v5510_v27 = vcombine.low %v4489_v12, %v4493_v6  ;;  %v5511_v3 = vcombine.low %v4497_v51, %v4501_v24  ;;  %v5655_v48 = vrot.slane %v5641_v11, %v8679_v42 }
 0x416   :  { %v4369_v23 = vpop.xlane.xlu1 %4368  ;;  %v5512_v5 = vcombine.low %v4505_v1, %v4509_v52  ;;  %v5513_v41 = vcombine.low %v4513_v22, %v4517_v44 }
 0x417   :  { %7082 = vperm.xlu1 %7759, %v5607_v50   ;;  %v5520_v59 = vrot.slane %v5510_v27, %v8679_v42  ;;  %v5527_v13 = vrot.slane %v5511_v3, %v8679_v42  ;;  %v4585_v63 = vrot.slane %v4369_v23, %v8637_v15  ;;  %v4589_v61 = vrot.slane %v4369_v23, %v8640_v8 }
 0x418   :  { %v5534_v0 = vrot.slane %v5512_v5, %v8679_v42  ;;  %v5541_v10 = vrot.slane %v5513_v41, %v8679_v42  ;;  %v4593_v45 = vrot.slane %v4369_v23, %v8644_v38  ;;  %v4597_v60 = vrot.slane %v4369_v23, %v8647_v32 }
 0x419   :  { %v5542_v2 = vcombine.low %v5520_v59, %v5527_v13  ;;  %v4601_v18 = vrot.slane %v4369_v23, %v8650_v17  ;;  %v4605_v28 = vrot.slane %v4369_v23, %v8655_v14  ;;  %v4609_v4 = vrot.slane %v4369_v23, %v8661_v47 }
 0x41a   :  { %v5543_v21 = vcombine.low %v5534_v0, %v5541_v10  ;;  %v4613_v57 = vrot.slane %v4369_v23, %v8667_v39  ;;  %v5657_v62 = vcombine.low %v4585_v63, %v4589_v61  ;;  %v5658_v30 = vcombine.low %v4593_v45, %v4597_v60  ;;  %v4375_v9 = vpop.xlane.xlu1 %4374 }
 0x41b   :  { %v5550_v33 = vrot.slane %v5542_v2, %v8679_v42  ;;  %v5659_v34 = vcombine.low %v4601_v18, %v4605_v28  ;;  %v5656_v20 = vcombine.low %v5648_v55, %v5655_v48  ;;  %v4649_v50 = vrot.slane %v4375_v9, %v8637_v15  ;;  %v4372_v24 = vpop.xlane.xlu0 %4371 }
 0x41c   :  { %v5557_v26 = vrot.slane %v5543_v21, %v8679_v42  ;;  %v5660_v11 = vcombine.low %v4609_v4, %v4613_v57  ;;  %v5667_v12 = vrot.slane %v5657_v62, %v8679_v42  ;;  %v5674_v6 = vrot.slane %v5658_v30, %v8679_v42 }
 0x41d   :  { %v5681_v51 = vrot.slane %v5659_v34, %v8679_v42  ;;  %7085 = vperm.xlu1 %7759, %v5656_v20   ;;  %v4653_v1 = vrot.slane %v4375_v9, %v8640_v8  ;;  %v4657_v52 = vrot.slane %v4375_v9, %v8644_v38  ;;  %v4661_v22 = vrot.slane %v4375_v9, %v8647_v32 }
 0x41e   :  { %v5558_v44 = vcombine.low %v5550_v33, %v5557_v26  ;;  %v5688_v27 = vrot.slane %v5660_v11, %v8679_v42  ;;  %v5689_v3 = vcombine.low %v5667_v12, %v5674_v6  ;;  %v4665_v23 = vrot.slane %v4375_v9, %v8650_v17  ;;  %v4381_v21 = vpop.xlane.xlu1 %4380 }
 0x41f   :  { %v4669_v5 = vrot.slane %v4375_v9, %v8655_v14  ;;  %v4673_v41 = vrot.slane %v4375_v9, %v8661_v47  ;;  %v4677_v55 = vrot.slane %v4375_v9, %v8667_v39  ;;  %v5755_v48 = vcombine.low %v4649_v50, %v4653_v1 }
 0x420   :  { %7079 = vperm.xlu0 %7760, %v5558_v44   ;;  %v5690_v59 = vcombine.low %v5681_v51, %v5688_v27  ;;  %v5697_v13 = vrot.slane %v5689_v3, %v8679_v42  ;;  %v5756_v63 = vcombine.low %v4657_v52, %v4661_v22  ;;  %v4617_v61 = vrot.slane %v4372_v24, %v8637_v15 }
 0x421   :  { %v5757_v0 = vcombine.low %v4665_v23, %v4669_v5  ;;  %v5758_v10 = vcombine.low %v4673_v41, %v4677_v55  ;;  %v5765_v45 = vrot.slane %v5755_v48, %v8679_v42  ;;  %v4621_v60 = vrot.slane %v4372_v24, %v8640_v8  ;;  %v4378_v23 = vpop.xlane.xlu0 %4377 }
 0x422   :  { %v5704_v2 = vrot.slane %v5690_v59, %v8679_v42  ;;  %v5772_v18 = vrot.slane %v5756_v63, %v8679_v42  ;;  %v4625_v28 = vrot.slane %v4372_v24, %v8644_v38  ;;  %v4629_v4 = vrot.slane %v4372_v24, %v8647_v32 }
 0x423   :  { %v5779_v57 = vrot.slane %v5757_v0, %v8679_v42  ;;  %v5786_v62 = vrot.slane %v5758_v10, %v8679_v42  ;;  %v4633_v30 = vrot.slane %v4372_v24, %v8650_v17  ;;  %v4637_v9 = vrot.slane %v4372_v24, %v8655_v14 }
 0x424   :  { %v5705_v33 = vcombine.low %v5697_v13, %v5704_v2  ;;  %v5787_v34 = vcombine.low %v5765_v45, %v5772_v18  ;;  %v4641_v20 = vrot.slane %v4372_v24, %v8661_v47  ;;  %v4645_v50 = vrot.slane %v4372_v24, %v8667_v39 }
 0x425   :  { %v5788_v26 = vcombine.low %v5779_v57, %v5786_v62  ;;  %v5706_v11 = vcombine.low %v4617_v61, %v4621_v60  ;;  %v5707_v12 = vcombine.low %v4625_v28, %v4629_v4  ;;  %v5708_v6 = vcombine.low %v4633_v30, %v4637_v9 }
 0x426   :  { %7088 = vperm.xlu0 %7760, %v5705_v33   ;;  %v5795_v51 = vrot.slane %v5787_v34, %v8679_v42  ;;  %v5709_v1 = vcombine.low %v4641_v20, %v4645_v50  ;;  %v4713_v52 = vrot.slane %v4381_v21, %v8637_v15  ;;  %v4717_v22 = vrot.slane %v4381_v21, %v8640_v8  ;;  %v4387_v33 = vpop.xlane.xlu1 %4386 }
 0x427   :  { %v5802_v44 = vrot.slane %v5788_v26, %v8679_v42  ;;  %v5716_v27 = vrot.slane %v5706_v11, %v8679_v42  ;;  %v5723_v3 = vrot.slane %v5707_v12, %v8679_v42  ;;  %v5730_v24 = vrot.slane %v5708_v6, %v8679_v42 }
 0x428   :  { %v5737_v5 = vrot.slane %v5709_v1, %v8679_v42  ;;  %v4721_v41 = vrot.slane %v4381_v21, %v8644_v38  ;;  %v4725_v55 = vrot.slane %v4381_v21, %v8647_v32  ;;  %v4729_v48 = vrot.slane %v4381_v21, %v8650_v17 }
 0x429   :  { %v5803_v59 = vcombine.low %v5795_v51, %v5802_v44  ;;  %v5738_v13 = vcombine.low %v5716_v27, %v5723_v3  ;;  %v4733_v63 = vrot.slane %v4381_v21, %v8655_v14  ;;  %v4737_v61 = vrot.slane %v4381_v21, %v8661_v47 }
 0x42a   :  { %v5739_v0 = vcombine.low %v5730_v24, %v5737_v5  ;;  %v4741_v10 = vrot.slane %v4381_v21, %v8667_v39  ;;  %v5853_v45 = vcombine.low %v4713_v52, %v4717_v22  ;;  %v5854_v60 = vcombine.low %v4721_v41, %v4725_v55 }
 0x42b   :  { %7094 = vperm.xlu0 %7760, %v5803_v59   ;;  %v5746_v2 = vrot.slane %v5738_v13, %v8679_v42  ;;  %v5855_v18 = vcombine.low %v4729_v48, %v4733_v63  ;;  %v4681_v28 = vrot.slane %v4378_v23, %v8637_v15  ;;  %v4685_v4 = vrot.slane %v4378_v23, %v8640_v8 }
 0x42c   :  { %v5753_v57 = vrot.slane %v5739_v0, %v8679_v42  ;;  %v5856_v62 = vcombine.low %v4737_v61, %v4741_v10  ;;  %v5863_v30 = vrot.slane %v5853_v45, %v8679_v42  ;;  %v5870_v9 = vrot.slane %v5854_v60, %v8679_v42  ;;  %v4384_v61 = vpop.xlane.xlu0 %4383 }
 0x42d   :  { %v5877_v21 = vrot.slane %v5855_v18, %v8679_v42  ;;  %v4689_v34 = vrot.slane %v4378_v23, %v8644_v38  ;;  %v4693_v20 = vrot.slane %v4378_v23, %v8647_v32  ;;  %v4697_v50 = vrot.slane %v4378_v23, %v8650_v17 }
 0x42e   :  { %v5754_v26 = vcombine.low %v5746_v2, %v5753_v57  ;;  %v5884_v11 = vrot.slane %v5856_v62, %v8679_v42  ;;  %v5885_v12 = vcombine.low %v5863_v30, %v5870_v9  ;;  %v4701_v6 = vrot.slane %v4378_v23, %v8655_v14 }
 0x42f   :  { %v4705_v51 = vrot.slane %v4378_v23, %v8661_v47  ;;  %v4709_v1 = vrot.slane %v4378_v23, %v8667_v39  ;;  %v5804_v52 = vcombine.low %v4681_v28, %v4685_v4  ;;  %v5805_v22 = vcombine.low %v4689_v34, %v4693_v20 }
 0x430   :  { %7091 = vperm.xlu1 %7759, %v5754_v26   ;;  %v5886_v44 = vcombine.low %v5877_v21, %v5884_v11  ;;  %v5893_v27 = vrot.slane %v5885_v12, %v8679_v42  ;;  %v5806_v3 = vcombine.low %v4697_v50, %v4701_v6  ;;  %v4777_v24 = vrot.slane %v4387_v33, %v8637_v15  ;;  %v4393_v21 = vpop.xlane.xlu1 %4392 }
 0x431   :  { %v5807_v5 = vcombine.low %v4705_v51, %v4709_v1  ;;  %v5814_v41 = vrot.slane %v5804_v52, %v8679_v42  ;;  %v5821_v55 = vrot.slane %v5805_v22, %v8679_v42  ;;  %v4781_v48 = vrot.slane %v4387_v33, %v8640_v8 }
 0x432   :  { %v5900_v59 = vrot.slane %v5886_v44, %v8679_v42  ;;  %v5828_v23 = vrot.slane %v5806_v3, %v8679_v42  ;;  %v4785_v13 = vrot.slane %v4387_v33, %v8644_v38  ;;  %v4789_v63 = vrot.slane %v4387_v33, %v8647_v32 }
 0x433   :  { %v5835_v0 = vrot.slane %v5807_v5, %v8679_v42  ;;  %v5836_v10 = vcombine.low %v5814_v41, %v5821_v55  ;;  %v4793_v45 = vrot.slane %v4387_v33, %v8650_v17  ;;  %v4797_v60 = vrot.slane %v4387_v33, %v8655_v14 }
 0x434   :  { %v5901_v2 = vcombine.low %v5893_v27, %v5900_v59  ;;  %v4801_v18 = vrot.slane %v4387_v33, %v8661_v47  ;;  %v4805_v28 = vrot.slane %v4387_v33, %v8667_v39  ;;  %v5951_v4 = vcombine.low %v4777_v24, %v4781_v48 }
 0x435   :  { %v5837_v57 = vcombine.low %v5828_v23, %v5835_v0  ;;  %v5844_v62 = vrot.slane %v5836_v10, %v8679_v42  ;;  %v5952_v30 = vcombine.low %v4785_v13, %v4789_v63  ;;  %v5953_v9 = vcombine.low %v4793_v45, %v4797_v60  ;;  %v10196_v0 = vpop.xlane.xlu1 %4398 }
 0x436   :  { %7100 = vperm.xlu0 %7760, %v5901_v2   ;;  %v5954_v34 = vcombine.low %v4801_v18, %v4805_v28  ;;  %v5961_v20 = vrot.slane %v5951_v4, %v8679_v42  ;;  %v4745_v50 = vrot.slane %v4384_v61, %v8637_v15  ;;  %v4749_v26 = vrot.slane %v4384_v61, %v8640_v8  ;;  %v4390_v2 = vpop.xlane.xlu0 %4389 }
 0x437   :  { %v5851_v11 = vrot.slane %v5837_v57, %v8679_v42  ;;  %v5968_v12 = vrot.slane %v5952_v30, %v8679_v42  ;;  %v5975_v33 = vrot.slane %v5953_v9, %v8679_v42  ;;  %v4753_v6 = vrot.slane %v4384_v61, %v8644_v38 }
 0x438   :  { %v5982_v51 = vrot.slane %v5954_v34, %v8679_v42  ;;  %v4757_v1 = vrot.slane %v4384_v61, %v8647_v32  ;;  %v4761_v52 = vrot.slane %v4384_v61, %v8650_v17  ;;  %v4765_v22 = vrot.slane %v4384_v61, %v8655_v14 }
 0x439   :  { %v5852_v44 = vcombine.low %v5844_v62, %v5851_v11  ;;  %v5983_v27 = vcombine.low %v5961_v20, %v5968_v12  ;;  %v4769_v3 = vrot.slane %v4384_v61, %v8661_v47  ;;  %v4773_v24 = vrot.slane %v4384_v61, %v8667_v39 }
 0x43a   :  { %v5984_v5 = vcombine.low %v5975_v33, %v5982_v51  ;;  %v5902_v41 = vcombine.low %v4745_v50, %v4749_v26  ;;  %v5903_v55 = vcombine.low %v4753_v6, %v4757_v1  ;;  %v5904_v48 = vcombine.low %v4761_v52, %v4765_v22 }
 0x43b   :  { %7097 = vperm.xlu1 %7759, %v5852_v44   ;;  %v5991_v59 = vrot.slane %v5983_v27, %v8679_v42  ;;  %v5905_v23 = vcombine.low %v4769_v3, %v4773_v24  ;;  %v4841_v13 = vrot.slane %v4393_v21, %v8637_v15  ;;  %v4845_v63 = vrot.slane %v4393_v21, %v8640_v8  ;;  %v10215_v27 = vpop.xlane.xlu1 %4404 }
 0x43c   :  { %v5998_v10 = vrot.slane %v5984_v5, %v8679_v42  ;;  %v5912_v45 = vrot.slane %v5902_v41, %v8679_v42  ;;  %v5919_v61 = vrot.slane %v5903_v55, %v8679_v42  ;;  %v5926_v60 = vrot.slane %v5904_v48, %v8679_v42 }
 0x43d   :  { %v5933_v18 = vrot.slane %v5905_v23, %v8679_v42  ;;  %v4849_v28 = vrot.slane %v4393_v21, %v8644_v38  ;;  %v4853_v4 = vrot.slane %v4393_v21, %v8647_v32  ;;  %v4857_v57 = vrot.slane %v4393_v21, %v8650_v17 }
 0x43e   :  { %v5999_v62 = vcombine.low %v5991_v59, %v5998_v10  ;;  %v5934_v30 = vcombine.low %v5912_v45, %v5919_v61  ;;  %v4861_v9 = vrot.slane %v4393_v21, %v8655_v14  ;;  %v4865_v34 = vrot.slane %v4393_v21, %v8661_v47 }
 0x43f   :  { %v5935_v20 = vcombine.low %v5926_v60, %v5933_v18  ;;  %v4869_v50 = vrot.slane %v4393_v21, %v8667_v39  ;;  %v6049_v26 = vcombine.low %v4841_v13, %v4845_v63  ;;  %v6050_v11 = vcombine.low %v4849_v28, %v4853_v4 }
 0x440   :  { %7106 = vperm.xlu0 %7760, %v5999_v62   ;;  %v5942_v12 = vrot.slane %v5934_v30, %v8679_v42  ;;  %v6051_v33 = vcombine.low %v4857_v57, %v4861_v9  ;;  %v4809_v6 = vrot.slane %v4390_v2, %v8637_v15  ;;  %v4813_v51 = vrot.slane %v4390_v2, %v8640_v8 }
 0x441   :  { %v5949_v1 = vrot.slane %v5935_v20, %v8679_v42  ;;  %v6052_v52 = vcombine.low %v4865_v34, %v4869_v50  ;;  %v6059_v22 = vrot.slane %v6049_v26, %v8679_v42  ;;  %v6066_v44 = vrot.slane %v6050_v11, %v8679_v42  ;;  %v4411_v20 = vpop.xlane.xlu1 %4410 }
 0x442   :  { %v6073_v21 = vrot.slane %v6051_v33, %v8679_v42  ;;  %v4817_v3 = vrot.slane %v4390_v2, %v8644_v38  ;;  %v4821_v24 = vrot.slane %v4390_v2, %v8647_v32  ;;  %v4825_v5 = vrot.slane %v4390_v2, %v8650_v17 }
 0x443   :  { %v5950_v41 = vcombine.low %v5942_v12, %v5949_v1  ;;  %v6080_v55 = vrot.slane %v6052_v52, %v8679_v42  ;;  %v6081_v48 = vcombine.low %v6059_v22, %v6066_v44  ;;  %v4829_v59 = vrot.slane %v4390_v2, %v8655_v14 }
 0x444   :  { %v4833_v23 = vrot.slane %v4390_v2, %v8661_v47  ;;  %v4837_v13 = vrot.slane %v4390_v2, %v8667_v39  ;;  %v6000_v63 = vcombine.low %v4809_v6, %v4813_v51  ;;  %v6001_v10 = vcombine.low %v4817_v3, %v4821_v24  ;;  %v4396_v3 = vpop.xlane.xlu0 %4395 }
 0x445   :  { %7103 = vperm.xlu1 %7759, %v5950_v41   ;;  %v6082_v45 = vcombine.low %v6073_v21, %v6080_v55  ;;  %v6089_v61 = vrot.slane %v6081_v48, %v8679_v42  ;;  %v6002_v60 = vcombine.low %v4825_v5, %v4829_v59  ;;  %v4905_v18 = vrot.slane %v10196_v0, %v8637_v15 }
 0x446   :  { %v6003_v28 = vcombine.low %v4833_v23, %v4837_v13  ;;  %v6010_v4 = vrot.slane %v6000_v63, %v8679_v42  ;;  %v6017_v57 = vrot.slane %v6001_v10, %v8679_v42  ;;  %v4909_v62 = vrot.slane %v10196_v0, %v8640_v8 }
 0x447   :  { %v6096_v2 = vrot.slane %v6082_v45, %v8679_v42  ;;  %v6024_v30 = vrot.slane %v6002_v60, %v8679_v42  ;;  %v4913_v9 = vrot.slane %v10196_v0, %v8644_v38  ;;  %v4917_v34 = vrot.slane %v10196_v0, %v8647_v32 }
 0x448   :  { %v6031_v50 = vrot.slane %v6003_v28, %v8679_v42  ;;  %v6032_v26 = vcombine.low %v6010_v4, %v6017_v57  ;;  %v4921_v11 = vrot.slane %v10196_v0, %v8650_v17  ;;  %v4925_v12 = vrot.slane %v10196_v0, %v8655_v14 }
 0x449   :  { %v6097_v33 = vcombine.low %v6089_v61, %v6096_v2  ;;  %v4929_v6 = vrot.slane %v10196_v0, %v8661_v47  ;;  %v4933_v51 = vrot.slane %v10196_v0, %v8667_v39  ;;  %v6147_v1 = vcombine.low %v4905_v18, %v4909_v62 }
 0x44a   :  { %v6033_v52 = vcombine.low %v6024_v30, %v6031_v50  ;;  %v6040_v22 = vrot.slane %v6032_v26, %v8679_v42  ;;  %v6148_v44 = vcombine.low %v4913_v9, %v4917_v34  ;;  %v6149_v21 = vcombine.low %v4921_v11, %v4925_v12  ;;  %v10264_v26 = vpop.xlane.xlu0 %4401 }
 0x44b   :  { %7112 = vperm.xlu1 %7759, %v6097_v33   ;;  %v6150_v24 = vcombine.low %v4929_v6, %v4933_v51  ;;  %v6157_v5 = vrot.slane %v6147_v1, %v8679_v42  ;;  %v5033_v41 = vrot.slane %v4411_v20, %v8637_v15  ;;  %v5037_v55 = vrot.slane %v4411_v20, %v8640_v8 }
 0x44c   :  { %v6047_v48 = vrot.slane %v6033_v52, %v8679_v42  ;;  %v6164_v59 = vrot.slane %v6148_v44, %v8679_v42  ;;  %v6171_v0 = vrot.slane %v6149_v21, %v8679_v42  ;;  %v5041_v23 = vrot.slane %v4411_v20, %v8644_v38  ;;  %v4417_v6 = vpop.xlane.xlu1 %4416 }
 0x44d   :  { %v6178_v13 = vrot.slane %v6150_v24, %v8679_v42  ;;  %v5045_v63 = vrot.slane %v4411_v20, %v8647_v32  ;;  %v5049_v10 = vrot.slane %v4411_v20, %v8650_v17  ;;  %v5053_v45 = vrot.slane %v4411_v20, %v8655_v14 }
 0x44e   :  { %v6048_v61 = vcombine.low %v6040_v22, %v6047_v48  ;;  %v6179_v60 = vcombine.low %v6157_v5, %v6164_v59  ;;  %v5057_v18 = vrot.slane %v4411_v20, %v8661_v47  ;;  %v5061_v28 = vrot.slane %v4411_v20, %v8667_v39 }
 0x44f   :  { %v6180_v4 = vcombine.low %v6171_v0, %v6178_v13  ;;  %v6343_v57 = vcombine.low %v5033_v41, %v5037_v55  ;;  %v6344_v62 = vcombine.low %v5041_v23, %v5045_v63  ;;  %v6345_v2 = vcombine.low %v5049_v10, %v5053_v45 }
 0x450   :  { %7109 = vperm.xlu1 %7759, %v6048_v61   ;;  %v6187_v30 = vrot.slane %v6179_v60, %v8679_v42  ;;  %v6346_v9 = vcombine.low %v5057_v18, %v5061_v28  ;;  %v4873_v34 = vrot.slane %v4396_v3, %v8637_v15  ;;  %v4877_v50 = vrot.slane %v4396_v3, %v8640_v8  ;;  %v4408_v18 = vpop.xlane.xlu0 %4407 }
 0x451   :  { %v6194_v11 = vrot.slane %v6180_v4, %v8679_v42  ;;  %v6353_v12 = vrot.slane %v6343_v57, %v8679_v42  ;;  %v6360_v20 = vrot.slane %v6344_v62, %v8679_v42  ;;  %v6367_v33 = vrot.slane %v6345_v2, %v8679_v42 }
 0x452   :  { %v6374_v51 = vrot.slane %v6346_v9, %v8679_v42  ;;  %v4881_v1 = vrot.slane %v4396_v3, %v8644_v38  ;;  %v4885_v52 = vrot.slane %v4396_v3, %v8647_v32  ;;  %v4889_v22 = vrot.slane %v4396_v3, %v8650_v17 }
 0x453   :  { %v6195_v44 = vcombine.low %v6187_v30, %v6194_v11  ;;  %v6375_v21 = vcombine.low %v6353_v12, %v6360_v20  ;;  %v4893_v24 = vrot.slane %v4396_v3, %v8655_v14  ;;  %v4897_v5 = vrot.slane %v4396_v3, %v8661_v47 }
 0x454   :  { %v6376_v41 = vcombine.low %v6367_v33, %v6374_v51  ;;  %v4901_v55 = vrot.slane %v4396_v3, %v8667_v39  ;;  %v6098_v48 = vcombine.low %v4873_v34, %v4877_v50  ;;  %v6099_v59 = vcombine.low %v4881_v1, %v4885_v52 }
 0x455   :  { %7118 = vperm.xlu1 %7759, %v6195_v44   ;;  %v6383_v0 = vrot.slane %v6375_v21, %v8679_v42  ;;  %v6100_v23 = vcombine.low %v4889_v22, %v4893_v24  ;;  %v5097_v13 = vrot.slane %v4417_v6, %v8637_v15  ;;  %v5101_v63 = vrot.slane %v4417_v6, %v8640_v8 }
 0x456   :  { %v6390_v10 = vrot.slane %v6376_v41, %v8679_v42  ;;  %v6101_v45 = vcombine.low %v4897_v5, %v4901_v55  ;;  %v6108_v61 = vrot.slane %v6098_v48, %v8679_v42  ;;  %v6115_v60 = vrot.slane %v6099_v59, %v8679_v42 }
 0x457   :  { %v6122_v3 = vrot.slane %v6100_v23, %v8679_v42  ;;  %v5105_v28 = vrot.slane %v4417_v6, %v8644_v38  ;;  %v5109_v4 = vrot.slane %v4417_v6, %v8647_v32  ;;  %v5113_v57 = vrot.slane %v4417_v6, %v8650_v17 }
 0x458   :  { %v6391_v62 = vcombine.low %v6383_v0, %v6390_v10  ;;  %v6129_v2 = vrot.slane %v6101_v45, %v8679_v42  ;;  %v6130_v30 = vcombine.low %v6108_v61, %v6115_v60  ;;  %v5117_v9 = vrot.slane %v4417_v6, %v8655_v14  ;;  %v4423_v55 = vpop.xlane.xlu1 %4422 }
 0x459   :  { %v5121_v34 = vrot.slane %v4417_v6, %v8661_v47  ;;  %v5125_v50 = vrot.slane %v4417_v6, %v8667_v39  ;;  %v6441_v11 = vcombine.low %v5097_v13, %v5101_v63  ;;  %v6442_v12 = vcombine.low %v5105_v28, %v5109_v4 }
 0x45a   :  { %7130 = vperm.xlu0 %7760, %v6391_v62   ;;  %v6131_v20 = vcombine.low %v6122_v3, %v6129_v2  ;;  %v6138_v33 = vrot.slane %v6130_v30, %v8679_v42  ;;  %v6443_v51 = vcombine.low %v5113_v57, %v5117_v9  ;;  %v5001_v1 = vrot.slane %v4408_v18, %v8637_v15 }
 0x45b   :  { %v6444_v52 = vcombine.low %v5121_v34, %v5125_v50  ;;  %v6451_v22 = vrot.slane %v6441_v11, %v8679_v42  ;;  %v6458_v44 = vrot.slane %v6442_v12, %v8679_v42  ;;  %v5005_v21 = vrot.slane %v4408_v18, %v8640_v8  ;;  %v4414_v50 = vpop.xlane.xlu0 %4413 }
 0x45c   :  { %v6145_v24 = vrot.slane %v6131_v20, %v8679_v42  ;;  %v6465_v6 = vrot.slane %v6443_v51, %v8679_v42  ;;  %v5009_v5 = vrot.slane %v4408_v18, %v8644_v38  ;;  %v5013_v41 = vrot.slane %v4408_v18, %v8647_v32 }
 0x45d   :  { %v6472_v48 = vrot.slane %v6444_v52, %v8679_v42  ;;  %v6473_v59 = vcombine.low %v6451_v22, %v6458_v44  ;;  %v5017_v0 = vrot.slane %v4408_v18, %v8650_v17  ;;  %v5021_v23 = vrot.slane %v4408_v18, %v8655_v14 }
 0x45e   :  { %v6146_v13 = vcombine.low %v6138_v33, %v6145_v24  ;;  %v5025_v63 = vrot.slane %v4408_v18, %v8661_v47  ;;  %v5029_v10 = vrot.slane %v4408_v18, %v8667_v39  ;;  %v6294_v45 = vcombine.low %v5001_v1, %v5005_v21 }
 0x45f   :  { %v6474_v61 = vcombine.low %v6465_v6, %v6472_v48  ;;  %v6481_v60 = vrot.slane %v6473_v59, %v8679_v42  ;;  %v6295_v3 = vcombine.low %v5009_v5, %v5013_v41  ;;  %v6296_v28 = vcombine.low %v5017_v0, %v5021_v23 }
 0x460   :  { %7115 = vperm.xlu1 %7759, %v6146_v13   ;;  %v6297_v4 = vcombine.low %v5025_v63, %v5029_v10  ;;  %v6304_v57 = vrot.slane %v6294_v45, %v8679_v42  ;;  %v5161_v62 = vrot.slane %v4423_v55, %v8637_v15  ;;  %v5165_v2 = vrot.slane %v4423_v55, %v8640_v8 }
 0x461   :  { %v6488_v30 = vrot.slane %v6474_v61, %v8679_v42  ;;  %v6311_v9 = vrot.slane %v6295_v3, %v8679_v42  ;;  %v6318_v18 = vrot.slane %v6296_v28, %v8679_v42  ;;  %v5169_v34 = vrot.slane %v4423_v55, %v8644_v38 }
 0x462   :  { %v6325_v11 = vrot.slane %v6297_v4, %v8679_v42  ;;  %v5173_v12 = vrot.slane %v4423_v55, %v8647_v32  ;;  %v5177_v20 = vrot.slane %v4423_v55, %v8650_v17  ;;  %v5181_v33 = vrot.slane %v4423_v55, %v8655_v14 }
 0x463   :  { %v6489_v51 = vcombine.low %v6481_v60, %v6488_v30  ;;  %v6326_v1 = vcombine.low %v6304_v57, %v6311_v9  ;;  %v5185_v52 = vrot.slane %v4423_v55, %v8661_v47  ;;  %v5189_v22 = vrot.slane %v4423_v55, %v8667_v39 }
 0x464   :  { %v6327_v44 = vcombine.low %v6318_v18, %v6325_v11  ;;  %v6539_v21 = vcombine.low %v5161_v62, %v5165_v2  ;;  %v6540_v24 = vcombine.low %v5169_v34, %v5173_v12  ;;  %v6541_v6 = vcombine.low %v5177_v20, %v5181_v33  ;;  %v4429_v63 = vpop.xlane.xlu1 %4428 }
 0x465   :  { %7136 = vperm.xlu0 %7760, %v6489_v51   ;;  %v6334_v5 = vrot.slane %v6326_v1, %v8679_v42  ;;  %v6542_v41 = vcombine.low %v5185_v52, %v5189_v22  ;;  %v5065_v48 = vrot.slane %v4414_v50, %v8637_v15  ;;  %v5069_v59 = vrot.slane %v4414_v50, %v8640_v8  ;;  %v4420_v52 = vpop.xlane.xlu0 %4419 }
 0x466   :  { %v6341_v0 = vrot.slane %v6327_v44, %v8679_v42  ;;  %v6549_v23 = vrot.slane %v6539_v21, %v8679_v42  ;;  %v6556_v13 = vrot.slane %v6540_v24, %v8679_v42  ;;  %v6563_v55 = vrot.slane %v6541_v6, %v8679_v42 }
 0x467   :  { %v6570_v10 = vrot.slane %v6542_v41, %v8679_v42  ;;  %v5073_v45 = vrot.slane %v4414_v50, %v8644_v38  ;;  %v5077_v61 = vrot.slane %v4414_v50, %v8647_v32  ;;  %v5081_v60 = vrot.slane %v4414_v50, %v8650_v17 }
 0x468   :  { %v6342_v3 = vcombine.low %v6334_v5, %v6341_v0  ;;  %v6571_v28 = vcombine.low %v6549_v23, %v6556_v13  ;;  %v5085_v4 = vrot.slane %v4414_v50, %v8655_v14  ;;  %v5089_v57 = vrot.slane %v4414_v50, %v8661_v47 }
 0x469   :  { %v6572_v62 = vcombine.low %v6563_v55, %v6570_v10  ;;  %v5093_v2 = vrot.slane %v4414_v50, %v8667_v39  ;;  %v6392_v30 = vcombine.low %v5065_v48, %v5069_v59  ;;  %v6393_v9 = vcombine.low %v5073_v45, %v5077_v61 }
 0x46a   :  { %7127 = vperm.xlu1 %7759, %v6342_v3   ;;  %v6579_v18 = vrot.slane %v6571_v28, %v8679_v42  ;;  %v6394_v34 = vcombine.low %v5081_v60, %v5085_v4  ;;  %v5225_v11 = vrot.slane %v4429_v63, %v8637_v15  ;;  %v5229_v12 = vrot.slane %v4429_v63, %v8640_v8 }
 0x46b   :  { %v6586_v20 = vrot.slane %v6572_v62, %v8679_v42  ;;  %v6395_v33 = vcombine.low %v5089_v57, %v5093_v2  ;;  %v6402_v51 = vrot.slane %v6392_v30, %v8679_v42  ;;  %v6409_v1 = vrot.slane %v6393_v9, %v8679_v42 }
 0x46c   :  { %v6416_v50 = vrot.slane %v6394_v34, %v8679_v42  ;;  %v5233_v22 = vrot.slane %v4429_v63, %v8644_v38  ;;  %v5237_v44 = vrot.slane %v4429_v63, %v8647_v32  ;;  %v5241_v21 = vrot.slane %v4429_v63, %v8650_v17 }
 0x46d   :  { %v6587_v24 = vcombine.low %v6579_v18, %v6586_v20  ;;  %v6423_v6 = vrot.slane %v6395_v33, %v8679_v42  ;;  %v6424_v5 = vcombine.low %v6402_v51, %v6409_v1  ;;  %v5245_v41 = vrot.slane %v4429_v63, %v8655_v14 }
 0x46e   :  { %v5249_v48 = vrot.slane %v4429_v63, %v8661_v47  ;;  %v5253_v59 = vrot.slane %v4429_v63, %v8667_v39  ;;  %v6637_v0 = vcombine.low %v5225_v11, %v5229_v12  ;;  %v6638_v23 = vcombine.low %v5233_v22, %v5237_v44 }
 0x46f   :  { %7142 = vperm.xlu0 %7760, %v6587_v24   ;;  %v6425_v13 = vcombine.low %v6416_v50, %v6423_v6  ;;  %v6432_v55 = vrot.slane %v6424_v5, %v8679_v42  ;;  %v6639_v10 = vcombine.low %v5241_v21, %v5245_v41  ;;  %v5129_v45 = vrot.slane %v4420_v52, %v8637_v15 }
 0x470   :  { %v6640_v61 = vcombine.low %v5249_v48, %v5253_v59  ;;  %v6647_v60 = vrot.slane %v6637_v0, %v8679_v42  ;;  %v6654_v3 = vrot.slane %v6638_v23, %v8679_v42  ;;  %v5133_v28 = vrot.slane %v4420_v52, %v8640_v8  ;;  %v4435_v2 = vpop.xlane.xlu1 %4434  ;;  %v4426_v59 = vpop.xlane.xlu0 %4425 }
 0x471   :  { %v6439_v4 = vrot.slane %v6425_v13, %v8679_v42  ;;  %v6661_v63 = vrot.slane %v6639_v10, %v8679_v42  ;;  %v5137_v57 = vrot.slane %v4420_v52, %v8644_v38  ;;  %v5141_v62 = vrot.slane %v4420_v52, %v8647_v32 }
 0x472   :  { %v6668_v30 = vrot.slane %v6640_v61, %v8679_v42  ;;  %v6669_v9 = vcombine.low %v6647_v60, %v6654_v3  ;;  %v5145_v18 = vrot.slane %v4420_v52, %v8650_v17  ;;  %v5149_v34 = vrot.slane %v4420_v52, %v8655_v14 }
 0x473   :  { %v6440_v11 = vcombine.low %v6432_v55, %v6439_v4  ;;  %v5153_v12 = vrot.slane %v4420_v52, %v8661_v47  ;;  %v5157_v20 = vrot.slane %v4420_v52, %v8667_v39  ;;  %v6490_v33 = vcombine.low %v5129_v45, %v5133_v28 }
 0x474   :  { %v6670_v51 = vcombine.low %v6661_v63, %v6668_v30  ;;  %v6677_v1 = vrot.slane %v6669_v9, %v8679_v42  ;;  %v6491_v50 = vcombine.low %v5137_v57, %v5141_v62  ;;  %v6492_v22 = vcombine.low %v5145_v18, %v5149_v34 }
 0x475   :  { %7133 = vperm.xlu1 %7759, %v6440_v11   ;;  %v6493_v44 = vcombine.low %v5153_v12, %v5157_v20  ;;  %v6500_v21 = vrot.slane %v6490_v33, %v8679_v42  ;;  %v5289_v24 = vrot.slane %v4435_v2, %v8637_v15  ;;  %v5293_v6 = vrot.slane %v4435_v2, %v8640_v8 }
 0x476   :  { %v6684_v5 = vrot.slane %v6670_v51, %v8679_v42  ;;  %v6507_v41 = vrot.slane %v6491_v50, %v8679_v42  ;;  %v6514_v52 = vrot.slane %v6492_v22, %v8679_v42  ;;  %v5297_v48 = vrot.slane %v4435_v2, %v8644_v38 }
 0x477   :  { %v6521_v0 = vrot.slane %v6493_v44, %v8679_v42  ;;  %v5301_v23 = vrot.slane %v4435_v2, %v8647_v32  ;;  %v5305_v13 = vrot.slane %v4435_v2, %v8650_v17  ;;  %v5309_v55 = vrot.slane %v4435_v2, %v8655_v14 }
 0x478   :  { %v6685_v10 = vcombine.low %v6677_v1, %v6684_v5  ;;  %v6522_v45 = vcombine.low %v6500_v21, %v6507_v41  ;;  %v5313_v61 = vrot.slane %v4435_v2, %v8661_v47  ;;  %v5317_v60 = vrot.slane %v4435_v2, %v8667_v39 }
 0x479   :  { %v6523_v3 = vcombine.low %v6514_v52, %v6521_v0  ;;  %v6735_v28 = vcombine.low %v5289_v24, %v5293_v6  ;;  %v6736_v4 = vcombine.low %v5297_v48, %v5301_v23  ;;  %v6737_v63 = vcombine.low %v5305_v13, %v5309_v55 }
 0x47a   :  { %7148 = vperm.xlu0 %7760, %v6685_v10   ;;  %v6530_v57 = vrot.slane %v6522_v45, %v8679_v42  ;;  %v6738_v62 = vcombine.low %v5313_v61, %v5317_v60  ;;  %v5193_v30 = vrot.slane %v4426_v59, %v8637_v15  ;;  %v5197_v9 = vrot.slane %v4426_v59, %v8640_v8  ;;  %v4432_v61 = vpop.xlane.xlu0 %4431 }
 0x47b   :  { %v6537_v18 = vrot.slane %v6523_v3, %v8679_v42  ;;  %v6745_v34 = vrot.slane %v6735_v28, %v8679_v42  ;;  %v6752_v11 = vrot.slane %v6736_v4, %v8679_v42  ;;  %v6759_v2 = vrot.slane %v6737_v63, %v8679_v42 }
 0x47c   :  { %v4441_v12 = vpop.xlane.xlu1 %4440  ;;  %v6766_v20 = vrot.slane %v6738_v62, %v8679_v42  ;;  %v5201_v33 = vrot.slane %v4426_v59, %v8644_v38  ;;  %v5205_v51 = vrot.slane %v4426_v59, %v8647_v32  ;;  %v5209_v1 = vrot.slane %v4426_v59, %v8650_v17 }
 0x47d   :  { %v6538_v50 = vcombine.low %v6530_v57, %v6537_v18  ;;  %v6767_v22 = vcombine.low %v6745_v34, %v6752_v11  ;;  %v5213_v44 = vrot.slane %v4426_v59, %v8655_v14  ;;  %v5217_v21 = vrot.slane %v4426_v59, %v8661_v47 }
 0x47e   :  { %v6768_v24 = vcombine.low %v6759_v2, %v6766_v20  ;;  %v5221_v6 = vrot.slane %v4426_v59, %v8667_v39  ;;  %v6588_v5 = vcombine.low %v5193_v30, %v5197_v9  ;;  %v6589_v41 = vcombine.low %v5201_v33, %v5205_v51 }
 0x47f   :  { %7139 = vperm.xlu1 %7759, %v6538_v50   ;;  %v6775_v52 = vrot.slane %v6767_v22, %v8679_v42  ;;  %v6590_v48 = vcombine.low %v5209_v1, %v5213_v44  ;;  %v5353_v0 = vrot.slane %v4441_v12, %v8637_v15  ;;  %v5357_v23 = vrot.slane %v4441_v12, %v8640_v8 }
 0x480   :  { %v6782_v13 = vrot.slane %v6768_v24, %v8679_v42  ;;  %v6591_v55 = vcombine.low %v5217_v21, %v5221_v6  ;;  %v6598_v10 = vrot.slane %v6588_v5, %v8679_v42  ;;  %v6605_v45 = vrot.slane %v6589_v41, %v8679_v42  ;;  %v4438_v6 = vpop.xlane.xlu0 %4437 }
 0x481   :  { %v6612_v59 = vrot.slane %v6590_v48, %v8679_v42  ;;  %v5361_v60 = vrot.slane %v4441_v12, %v8644_v38  ;;  %v5365_v3 = vrot.slane %v4441_v12, %v8647_v32  ;;  %v5369_v28 = vrot.slane %v4441_v12, %v8650_v17 }
 0x482   :  { %v6783_v4 = vcombine.low %v6775_v52, %v6782_v13  ;;  %v6619_v63 = vrot.slane %v6591_v55, %v8679_v42  ;;  %v6620_v57 = vcombine.low %v6598_v10, %v6605_v45  ;;  %v5373_v62 = vrot.slane %v4441_v12, %v8655_v14 }
 0x483   :  { %v5377_v30 = vrot.slane %v4441_v12, %v8661_v47  ;;  %v5381_v9 = vrot.slane %v4441_v12, %v8667_v39  ;;  %v6833_v18 = vcombine.low %v5353_v0, %v5357_v23  ;;  %v6834_v34 = vcombine.low %v5361_v60, %v5365_v3 }
 0x484   :  { %7154 = vperm.xlu0 %7760, %v6783_v4   ;;  %v6621_v11 = vcombine.low %v6612_v59, %v6619_v63  ;;  %v6628_v2 = vrot.slane %v6620_v57, %v8679_v42  ;;  %v6835_v20 = vcombine.low %v5369_v28, %v5373_v62  ;;  %v5257_v33 = vrot.slane %v4432_v61, %v8637_v15 }
 0x485   :  { %v6836_v51 = vcombine.low %v5377_v30, %v5381_v9  ;;  %v6843_v1 = vrot.slane %v6833_v18, %v8679_v42  ;;  %v6850_v50 = vrot.slane %v6834_v34, %v8679_v42  ;;  %v5261_v22 = vrot.slane %v4432_v61, %v8640_v8 }
 0x486   :  { %v6635_v44 = vrot.slane %v6621_v11, %v8679_v42  ;;  %v6857_v12 = vrot.slane %v6835_v20, %v8679_v42  ;;  %v5265_v21 = vrot.slane %v4432_v61, %v8644_v38  ;;  %v5269_v24 = vrot.slane %v4432_v61, %v8647_v32 }
 0x487   :  { %v6864_v5 = vrot.slane %v6836_v51, %v8679_v42  ;;  %v6865_v41 = vcombine.low %v6843_v1, %v6850_v50  ;;  %v5273_v52 = vrot.slane %v4432_v61, %v8650_v17  ;;  %v5277_v48 = vrot.slane %v4432_v61, %v8655_v14 }
 0x488   :  { %v6636_v0 = vcombine.low %v6628_v2, %v6635_v44  ;;  %v5281_v23 = vrot.slane %v4432_v61, %v8661_v47  ;;  %v5285_v13 = vrot.slane %v4432_v61, %v8667_v39  ;;  %v6686_v55 = vcombine.low %v5257_v33, %v5261_v22 }
 0x489   :  { %v6866_v10 = vcombine.low %v6857_v12, %v6864_v5  ;;  %v6873_v45 = vrot.slane %v6865_v41, %v8679_v42  ;;  %v6687_v59 = vcombine.low %v5265_v21, %v5269_v24  ;;  %v6688_v60 = vcombine.low %v5273_v52, %v5277_v48 }
 0x48a   :  { %7145 = vperm.xlu1 %7759, %v6636_v0   ;;  %v6689_v3 = vcombine.low %v5281_v23, %v5285_v13  ;;  %v6696_v28 = vrot.slane %v6686_v55, %v8679_v42  ;;  %v5321_v4 = vrot.slane %v4438_v6, %v8637_v15  ;;  %v5325_v63 = vrot.slane %v4438_v6, %v8640_v8  ;;  %v4447_v0 = vpop.xlane.xlu1 %4446 }
 0x48b   :  { %v6880_v57 = vrot.slane %v6866_v10, %v8679_v42  ;;  %v6703_v62 = vrot.slane %v6687_v59, %v8679_v42  ;;  %v6710_v61 = vrot.slane %v6688_v60, %v8679_v42  ;;  %v5329_v30 = vrot.slane %v4438_v6, %v8644_v38 }
 0x48c   :  { %v6717_v9 = vrot.slane %v6689_v3, %v8679_v42  ;;  %v5333_v18 = vrot.slane %v4438_v6, %v8647_v32  ;;  %v5337_v34 = vrot.slane %v4438_v6, %v8650_v17  ;;  %v5341_v11 = vrot.slane %v4438_v6, %v8655_v14 }
 0x48d   :  { %v6881_v2 = vcombine.low %v6873_v45, %v6880_v57  ;;  %v6718_v20 = vcombine.low %v6696_v28, %v6703_v62  ;;  %v5345_v33 = vrot.slane %v4438_v6, %v8661_v47  ;;  %v5349_v51 = vrot.slane %v4438_v6, %v8667_v39 }
 0x48e   :  { %v6719_v1 = vcombine.low %v6710_v61, %v6717_v9  ;;  %v6784_v50 = vcombine.low %v5321_v4, %v5325_v63  ;;  %v6785_v22 = vcombine.low %v5329_v30, %v5333_v18  ;;  %v6786_v44 = vcombine.low %v5337_v34, %v5341_v11 }
 0x48f   :  { %7160 = vperm.xlu0 %7760, %v6881_v2   ;;  %v6726_v12 = vrot.slane %v6718_v20, %v8679_v42  ;;  %v6787_v21 = vcombine.low %v5345_v33, %v5349_v51  ;;  %v4937_v24 = vrot.slane %v10264_v26, %v8637_v15  ;;  %v4941_v5 = vrot.slane %v10264_v26, %v8640_v8 }
 0x490   :  { %v6733_v41 = vrot.slane %v6719_v1, %v8679_v42  ;;  %v6794_v52 = vrot.slane %v6784_v50, %v8679_v42  ;;  %v6801_v6 = vrot.slane %v6785_v22, %v8679_v42  ;;  %v6808_v48 = vrot.slane %v6786_v44, %v8679_v42 }
 0x491   :  { %v6815_v23 = vrot.slane %v6787_v21, %v8679_v42  ;;  %v4945_v13 = vrot.slane %v10264_v26, %v8644_v38  ;;  %v4949_v55 = vrot.slane %v10264_v26, %v8647_v32  ;;  %v4953_v10 = vrot.slane %v10264_v26, %v8650_v17 }
 0x492   :  { %v6734_v45 = vcombine.low %v6726_v12, %v6733_v41  ;;  %v6816_v59 = vcombine.low %v6794_v52, %v6801_v6  ;;  %v4957_v60 = vrot.slane %v10264_v26, %v8655_v14  ;;  %v4961_v3 = vrot.slane %v10264_v26, %v8661_v47 }
 0x493   :  { %v6817_v28 = vcombine.low %v6808_v48, %v6815_v23  ;;  %v4965_v4 = vrot.slane %v10264_v26, %v8667_v39  ;;  %v6196_v63 = vcombine.low %v4937_v24, %v4941_v5  ;;  %v6197_v57 = vcombine.low %v4945_v13, %v4949_v55 }
 0x494   :  { %7151 = vperm.xlu1 %7759, %v6734_v45   ;;  %v6824_v62 = vrot.slane %v6816_v59, %v8679_v42  ;;  %v6198_v61 = vcombine.low %v4953_v10, %v4957_v60  ;;  %v5417_v30 = vrot.slane %v4447_v0, %v8637_v15  ;;  %v5421_v9 = vrot.slane %v4447_v0, %v8640_v8  ;;  %v4444_v45 = vpop.xlane.xlu0 %4443 }
 0x495   :  { %v6831_v18 = vrot.slane %v6817_v28, %v8679_v42  ;;  %v6199_v34 = vcombine.low %v4961_v3, %v4965_v4  ;;  %v6206_v11 = vrot.slane %v6196_v63, %v8679_v42  ;;  %v6213_v2 = vrot.slane %v6197_v57, %v8679_v42 }
 0x496   :  { %v6220_v20 = vrot.slane %v6198_v61, %v8679_v42  ;;  %v5425_v26 = vrot.slane %v4447_v0, %v8644_v38  ;;  %v5429_v33 = vrot.slane %v4447_v0, %v8647_v32  ;;  %v5433_v51 = vrot.slane %v4447_v0, %v8650_v17 }
 0x497   :  { %v6832_v1 = vcombine.low %v6824_v62, %v6831_v18  ;;  %v6227_v50 = vrot.slane %v6199_v34, %v8679_v42  ;;  %v6228_v22 = vcombine.low %v6206_v11, %v6213_v2  ;;  %v5437_v44 = vrot.slane %v4447_v0, %v8655_v14 }
 0x498   :  { %v5441_v12 = vrot.slane %v4447_v0, %v8661_v47  ;;  %v5445_v21 = vrot.slane %v4447_v0, %v8667_v39  ;;  %v6931_v24 = vcombine.low %v5417_v30, %v5421_v9  ;;  %v6932_v5 = vcombine.low %v5425_v26, %v5429_v33 }
 0x499   :  { %7157 = vperm.xlu0 %7760, %v6832_v1   ;;  %v6229_v41 = vcombine.low %v6220_v20, %v6227_v50  ;;  %v6236_v52 = vrot.slane %v6228_v22, %v8679_v42  ;;  %v6933_v6 = vcombine.low %v5433_v51, %v5437_v44  ;;  %v4969_v48 = vrot.slane %v10215_v27, %v8637_v15  ;;  %v4450_v44 = vpop.xlane.xlu0 %4449 }
 0x49a   :  { %v6934_v23 = vcombine.low %v5441_v12, %v5445_v21  ;;  %v6941_v13 = vrot.slane %v6931_v24, %v8679_v42  ;;  %v6948_v55 = vrot.slane %v6932_v5, %v8679_v42  ;;  %v4973_v10 = vrot.slane %v10215_v27, %v8640_v8 }
 0x49b   :  { %v6243_v0 = vrot.slane %v6229_v41, %v8679_v42  ;;  %v6955_v59 = vrot.slane %v6933_v6, %v8679_v42  ;;  %v4977_v60 = vrot.slane %v10215_v27, %v8644_v38  ;;  %v4981_v3 = vrot.slane %v10215_v27, %v8647_v32 }
 0x49c   :  { %v6962_v28 = vrot.slane %v6934_v23, %v8679_v42  ;;  %v6963_v4 = vcombine.low %v6941_v13, %v6948_v55  ;;  %v4985_v63 = vrot.slane %v10215_v27, %v8650_v17  ;;  %v4989_v57 = vrot.slane %v10215_v27, %v8655_v14 }
 0x49d   :  { %v6244_v62 = vcombine.low %v6236_v52, %v6243_v0  ;;  %v4993_v61 = vrot.slane %v10215_v27, %v8661_v47  ;;  %v4997_v30 = vrot.slane %v10215_v27, %v8667_v39  ;;  %v6245_v9 = vcombine.low %v4969_v48, %v4973_v10 }
 0x49e   :  { %v6964_v18 = vcombine.low %v6955_v59, %v6962_v28  ;;  %v6971_v34 = vrot.slane %v6963_v4, %v8679_v42  ;;  %v6246_v11 = vcombine.low %v4977_v60, %v4981_v3  ;;  %v6247_v2 = vcombine.low %v4985_v63, %v4989_v57  ;;  %v4453_v57 = vpop.xlane.xlu1 %4452 }
 0x49f   :  { %7121 = vperm.xlu1 %7759, %v6244_v62   ;;  %v6248_v20 = vcombine.low %v4993_v61, %v4997_v30  ;;  %v6255_v26 = vrot.slane %v6245_v9, %v8679_v42  ;;  %v5385_v33 = vrot.slane %v4444_v45, %v8637_v15  ;;  %v5389_v51 = vrot.slane %v4444_v45, %v8640_v8 }
 0x4a0   :  { %v6978_v1 = vrot.slane %v6964_v18, %v8679_v42  ;;  %v6262_v50 = vrot.slane %v6246_v11, %v8679_v42  ;;  %v6269_v27 = vrot.slane %v6247_v2, %v8679_v42  ;;  %v5393_v22 = vrot.slane %v4444_v45, %v8644_v38 }
 0x4a1   :  { %v6276_v12 = vrot.slane %v6248_v20, %v8679_v42  ;;  %v5397_v21 = vrot.slane %v4444_v45, %v8647_v32  ;;  %v5401_v24 = vrot.slane %v4444_v45, %v8650_v17  ;;  %v5405_v5 = vrot.slane %v4444_v45, %v8655_v14 }
 0x4a2   :  { %v6979_v41 = vcombine.low %v6971_v34, %v6978_v1  ;;  %v6277_v52 = vcombine.low %v6255_v26, %v6262_v50  ;;  %v5409_v6 = vrot.slane %v4444_v45, %v8661_v47  ;;  %v5413_v48 = vrot.slane %v4444_v45, %v8667_v39 }
 0x4a3   :  { %v6278_v23 = vcombine.low %v6269_v27, %v6276_v12  ;;  %v6882_v13 = vcombine.low %v5385_v33, %v5389_v51  ;;  %v6883_v55 = vcombine.low %v5393_v22, %v5397_v21  ;;  %v6884_v10 = vcombine.low %v5401_v24, %v5405_v5 }
 0x4a4   :  { %7166 = vperm.xlu0 %7760, %v6979_v41   ;;  %v6285_v0 = vrot.slane %v6277_v52, %v8679_v42  ;;  %v6885_v59 = vcombine.low %v5409_v6, %v5413_v48  ;;  %v5449_v60 = vrot.slane %v4450_v44, %v8637_v15  ;;  %v5453_v3 = vrot.slane %v4450_v44, %v8640_v8 }
 0x4a5   :  { %v6292_v28 = vrot.slane %v6278_v23, %v8679_v42  ;;  %v6892_v4 = vrot.slane %v6882_v13, %v8679_v42  ;;  %v6899_v63 = vrot.slane %v6883_v55, %v8679_v42  ;;  %v6906_v45 = vrot.slane %v6884_v10, %v8679_v42 }
 0x4a6   :  { %v6913_v62 = vrot.slane %v6885_v59, %v8679_v42  ;;  %v5457_v61 = vrot.slane %v4450_v44, %v8644_v38  ;;  %v5461_v30 = vrot.slane %v4450_v44, %v8647_v32  ;;  %v5465_v9 = vrot.slane %v4450_v44, %v8650_v17 }
 0x4a7   :  { %v6293_v18 = vcombine.low %v6285_v0, %v6292_v28  ;;  %v6914_v34 = vcombine.low %v6892_v4, %v6899_v63  ;;  %v5469_v11 = vrot.slane %v4450_v44, %v8655_v14  ;;  %v5473_v2 = vrot.slane %v4450_v44, %v8661_v47 }
 0x4a8   :  { %v6915_v20 = vcombine.low %v6906_v45, %v6913_v62  ;;  %v5477_v26 = vrot.slane %v4450_v44, %v8667_v39  ;;  %v6980_v33 = vcombine.low %v5449_v60, %v5453_v3  ;;  %v6981_v51 = vcombine.low %v5457_v61, %v5461_v30 }
 0x4a9   :  { %7124 = vperm.xlu1 %7759, %v6293_v18   ;;  %v6922_v1 = vrot.slane %v6914_v34, %v8679_v42  ;;  %v6982_v50 = vcombine.low %v5465_v9, %v5469_v11  ;;  %v5481_v27 = vrot.slane %v4453_v57, %v8637_v15  ;;  %v5485_v22 = vrot.slane %v4453_v57, %v8640_v8 }
 0x4aa   :  { %v6929_v12 = vrot.slane %v6915_v20, %v8679_v42  ;;  %v6983_v21 = vcombine.low %v5473_v2, %v5477_v26  ;;  %v6990_v24 = vrot.slane %v6980_v33, %v8679_v42  ;;  %v6997_v5 = vrot.slane %v6981_v51, %v8679_v42 }
 0x4ab   :  { %v7004_v41 = vrot.slane %v6982_v50, %v8679_v42  ;;  %v5489_v44 = vrot.slane %v4453_v57, %v8644_v38  ;;  %v5493_v52 = vrot.slane %v4453_v57, %v8647_v32  ;;  %v5497_v6 = vrot.slane %v4453_v57, %v8650_v17 }
 0x4ac   :  { %v6930_v48 = vcombine.low %v6922_v1, %v6929_v12  ;;  %v7011_v15 = vrot.slane %v6983_v21, %v8679_v42  ;;  %v7012_v23 = vcombine.low %v6990_v24, %v6997_v5  ;;  %v5501_v8 = vrot.slane %v4453_v57, %v8655_v14 }
 0x4ad   :  { %v5505_v13 = vrot.slane %v4453_v57, %v8661_v47  ;;  %v5509_v55 = vrot.slane %v4453_v57, %v8667_v39  ;;  %v7029_v10 = vcombine.low %v5481_v27, %v5485_v22  ;;  %v7030_v0 = vcombine.low %v5489_v44, %v5493_v52 }
 0x4ae   :  { %7163 = vperm.xlu0 %7760, %v6930_v48   ;;  %v7013_v59 = vcombine.low %v7004_v41, %v7011_v15  ;;  %v7020_v38 = vrot.slane %v7012_v23, %v8679_v42  ;;  %v7031_v60 = vcombine.low %v5497_v6, %v5501_v8 }
 0x4af   :  { %v7032_v32 = vcombine.low %v5505_v13, %v5509_v55  ;;  %v7039_v17 = vrot.slane %v7029_v10, %v8679_v42  ;;  %v7046_v3 = vrot.slane %v7030_v0, %v8679_v42 }
 0x4b0   :  { %v7027_v28 = vrot.slane %v7013_v59, %v8679_v42  ;;  %v7053_v14 = vrot.slane %v7031_v60, %v8679_v42 }
 0x4b1   :  { %v7060_v47 = vrot.slane %v7032_v32, %v8679_v42  ;;  %v7061_v4 = vcombine.low %v7039_v17, %v7046_v3 }
 0x4b2   :  { %v7028_v39 = vcombine.low %v7020_v38, %v7027_v28 }
 0x4b3   :  { %v7062_v63 = vcombine.low %v7053_v14, %v7060_v47  ;;  %v7069_v45 = vrot.slane %v7061_v4, %v8679_v42 }
 0x4b4   :  { %7169 = vperm.xlu0 %7760, %v7028_v39  }
 0x4b5   :  { %v7076_v57 = vrot.slane %v7062_v63, %v8679_v42 }
 0x4b7   :  { %v7077_v62 = vcombine.low %v7069_v45, %v7076_v57 }
 0x4b9   :  { %7172 = vperm.xlu0 %7760, %v7077_v62  }
 0x4ba   :  { %7804 = shalt.err (!%p7801_p4)
}
 0x4bb   :  { %s7805_s21 = scalar_lea.hbm %s10643_s5, 32 }
 0x4bc   :  { %p7806_p5 = scmp.ne.s32.totalorder %s10643_s5, %s7805_s21  ;;  %p7809_p6 = scmp.lt.u32.totalorder %s7805_s21, %s10643_s5 }
 0x4be   :  { %p7811_p7 = pnand %p7809_p6, %p7806_p5 }
 0x4c0   :  { %7814 = shalt.err (!%p7811_p7)
}
 0x4c1   :  { %7360 = dma.vmem_to_hbm [thread:$0]  %s7358_s4, 32, %s10643_s5, [#allocation3]   ;;  %v7083_v61 = vpop.permute.xlu1 %7082  ;;  %v7080_v9 = vpop.permute.xlu0 %7079  ;;  %vm10697_vm0 = vcmask 851712  }
 0x4c2   :  { %v7181_v23 = vrot.slane %v7083_v61, %v9804_v40  ;;  %v7177_v8 = vrot.slane %v7080_v9, %v9808_v19  ;;  %s7845_s5 = smov [#allocation4]  }
 0x4c3   :  { %s7367_s27 = sshll.u32 %s7845_s5, 4  ;;  %s7368_s27 = int_to_ptr.vmem [resolvable:$true] %s7367_s27 }
 0x4c4   :  { %v7182_v60 = vsel %vm4095_vm7, %v7181_v23, %v7177_v8  ;;  %s7815_s28 = scalar_lea.vmem %s7368_s27, 32  ;;  %p7820_p9 = scmp.lt.s32.totalorder %s7368_s27, %s7368_s27 }
 0x4c5   :  { %v7086_v30 = vpop.permute.xlu1 %7085  ;;  %v7089_v34 = vpop.permute.xlu0 %7088  ;;  %p7816_p8 = scmp.ne.s32.totalorder %s7368_s27, %s7815_s28  ;;  %p7821_p10 = scmp.lt.s32.totalorder %s7815_s28, %s7815_s28 }
 0x4c6   :  { %v7186_v55 = vrot.slane %v7086_v30, %v9813_v31  ;;  %v7191_v32 = vrot.slane %v7089_v34, %v9827_v46 }
 0x4c7   :  { %p7822_p11 = por %p7821_p10, %p7820_p9 }
 0x4c9   :  { %v7092_v18 = vpop.permute.xlu1 %7091  ;;  %v7095_v2 = vpop.permute.xlu0 %7094  ;;  %p7823_p12 = pnand %p7822_p11, %p7816_p8 }
 0x4ca   :  { %v7201_v45 = vrot.slane %v7095_v2, %v9843_v35 }
 0x4cd   :  { %v7098_v11 = vpop.permute.xlu1 %7097  ;;  %v7101_v26 = vpop.permute.xlu0 %7100 }
 0x4d1   :  { %v7104_v20 = vpop.permute.xlu1 %7103  ;;  %v7107_v51 = vpop.permute.xlu0 %7106 }
 0x4d2   :  { %v7216_v34 = vrot.slane %v7104_v20, %v9886_v53 }
 0x4d5   :  { %v10551_v33 = vpop.permute.xlu1 %7112 }
 0x4d9   :  { %v7110_v1 = vpop.permute.xlu1 %7109  ;;  %v7131_v50 = vpop.permute.xlu0 %7130 }
 0x4da   :  { %v7260_v13 = vrot.slane %v7131_v50, %v9804_v40  ;;  %v7196_v40 = vrot.slane %v7092_v18, %v9830_v7  ;;  %v7211_v50 = vrot.slane %v7101_v26, %v9871_v43 }
 0x4dd   :  { %v10553_v27 = vpop.permute.xlu1 %7118 }
 0x4e1   :  { %v10555_v12 = vpop.permute.xlu1 %7115 }
 0x4e4   :  { %v7137_v22 = vpop.permute.xlu0 %7136 }
 0x4e5   :  { %v7270_v17 = vrot.slane %v7137_v22, %v9827_v46  ;;  %v7206_v46 = vrot.slane %v7098_v11, %v9863_v54 }
 0x4e9   :  { %v7128_v24 = vpop.permute.xlu1 %7127 }
 0x4ea   :  { %v7256_v6 = vrot.slane %v7128_v24, %v9808_v19  ;;  %v7187_v19 = vsel %vm4102_vm8, %v7186_v55, %v7182_v60  ;;  %v7226_v24 = vrot.slane %v7110_v1, %v9908_v25  ;;  %v7231_v1 = vrot.slane %v10551_v33, %v9912_v16 }
 0x4eb   :  { %v7192_v47 = vsel %vm4109_vm9, %v7191_v32, %v7187_v19 }
 0x4ec   :  { %v7261_v10 = vsel %vm4095_vm7, %v7260_v13, %v7256_v6  ;;  %v7197_v63 = vsel %vm4116_vm10, %v7196_v40, %v7192_v47  ;;  %vm10698_vm7 = vmmov %vm10697_vm0 }
 0x4ed   :  { %v7202_v30 = vsel %vm4123_vm11, %v7201_v45, %v7197_v63 }
 0x4ee   :  { %v7143_v21 = vpop.permute.xlu0 %7142  ;;  %v7207_v18 = vsel %vm4130_vm12, %v7206_v46, %v7202_v30 }
 0x4ef   :  { %v7280_v4 = vrot.slane %v7143_v21, %v9843_v35  ;;  %v7212_v11 = vsel %vm4137_vm13, %v7211_v50, %v7207_v18 }
 0x4f0   :  { %v7217_v21 = vsel %vm4144_vm14, %v7216_v34, %v7212_v11 }
 0x4f4   :  { %v7134_v41 = vpop.permute.xlu1 %7133 }
 0x4f5   :  { %v7265_v15 = vrot.slane %v7134_v41, %v9813_v31 }
 0x4f7   :  { %v7266_v59 = vsel %vm4102_vm8, %v7265_v15, %v7261_v10 }
 0x4f8   :  { %v7271_v31 = vsel %vm4109_vm9, %v7270_v17, %v7266_v59 }
 0x4f9   :  { %v7149_v5 = vpop.permute.xlu0 %7148 }
 0x4fa   :  { %v7290_v9 = vrot.slane %v7149_v5, %v9871_v43 }
 0x4fe   :  { %v7140_v52 = vpop.permute.xlu1 %7139 }
 0x4ff   :  { %v7275_v38 = vrot.slane %v7140_v52, %v9830_v7  ;;  %v7236_v52 = vrot.slane %v10555_v12, %v9939_v36 }
 0x501   :  { %v7276_v28 = vsel %vm4116_vm10, %v7275_v38, %v7271_v31 }
 0x502   :  { %v7281_v57 = vsel %vm4123_vm11, %v7280_v4, %v7276_v28 }
 0x503   :  { %v7155_v44 = vpop.permute.xlu0 %7154 }
 0x504   :  { %v7300_v2 = vrot.slane %v7155_v44, %v9878_v56 }
 0x509   :  { %v7146_v0 = vpop.permute.xlu1 %7145 }
 0x50a   :  { %v7285_v14 = vrot.slane %v7146_v0, %v9863_v54 }
 0x50c   :  { %v7286_v62 = vsel %vm4130_vm12, %v7285_v14, %v7281_v57 }
 0x50d   :  { %v7291_v54 = vsel %vm4137_vm13, %v7290_v9, %v7286_v62 }
 0x50e   :  { %v7161_v48 = vpop.permute.xlu0 %7160 }
 0x513   :  { %v7152_v39 = vpop.permute.xlu1 %7151 }
 0x514   :  { %v7295_v61 = vrot.slane %v7152_v39, %v9886_v53  ;;  %v7221_v53 = vrot.slane %v7107_v51, %v9878_v56 }
 0x516   :  { %v7296_v35 = vsel %vm4144_vm14, %v7295_v61, %v7291_v54  ;;  %v7222_v20 = vsel %vm4151_vm15, %v7221_v53, %v7217_v21 }
 0x517   :  { %v7301_v43 = vsel %vm4151_vm15, %v7300_v2, %v7296_v35  ;;  %v7227_v26 = vsel %vm4158_vm1, %v7226_v24, %v7222_v20 }
 0x518   :  { %v7158_v3 = vpop.permute.xlu0 %7157  ;;  %v7232_v51 = vsel %vm4165_vm2, %v7231_v1, %v7227_v26 }
 0x519   :  { %v7305_v5 = vrot.slane %v7158_v3, %v9908_v25  ;;  %v7310_v25 = vrot.slane %v7161_v48, %v9912_v16  ;;  %v7237_v8 = vsel %vm10697_vm0, %v7236_v52, %v7232_v51 }
 0x51b   :  { %v7306_v44 = vsel %vm4158_vm1, %v7305_v5, %v7301_v43 }
 0x51c   :  { %v7311_v23 = vsel %vm4165_vm2, %v7310_v25, %v7306_v44 }
 0x51e   :  { %v7122_v41 = vpop.permute.xlu1 %7121 }
 0x51f   :  { %v7246_v13 = vrot.slane %v7122_v41, %v9955_v29 }
 0x523   :  { %v7167_v7 = vpop.permute.xlu0 %7166 }
 0x524   :  { %v7320_v33 = vrot.slane %v7167_v7, %v9960_v37 }
 0x528   :  { %v7125_v56 = vpop.permute.xlu1 %7124 }
 0x529   :  { %v7251_v16 = vrot.slane %v7125_v56, %v9968_v49 }
 0x52d   :  { %v7164_v22 = vpop.permute.xlu0 %7163 }
 0x52e   :  { %v7315_v6 = vrot.slane %v7164_v22, %v9939_v36  ;;  %v7241_v36 = vrot.slane %v10553_v27, %v9960_v37 }
 0x530   :  { %v7316_v12 = vsel %vm10698_vm7, %v7315_v6, %v7311_v23  ;;  %v7242_v10 = vsel %vm4179_vm4, %v7241_v36, %v7237_v8 }
 0x531   :  { %v7321_v0 = vsel %vm4179_vm4, %v7320_v33, %v7316_v12  ;;  %v7247_v38 = vsel %vm4186_vm5, %v7246_v13, %v7242_v10 }
 0x533   :  { %v7170_v15 = vpop.permute.xlu0 %7169 }
 0x534   :  { %v7325_v55 = vrot.slane %v7170_v15, %v9955_v29  ;;  %v7252_v29 = vsel %vm4193_vm6, %v7251_v16, %v7247_v38 }
 0x536   :  { %v7326_v60 = vsel %vm4186_vm5, %v7325_v55, %v7321_v0 }
 0x538   :  { %v7173_v48 = vpop.permute.xlu0 %7172 }
 0x539   :  { %v7330_v59 = vrot.slane %v7173_v48, %v9968_v49 }
 0x53b   :  { %v7331_v32 = vsel %vm4193_vm6, %v7330_v59, %v7326_v60 }
 0x53c   :  { %v7332_v27 = vcombine.low %v7252_v29, %v7331_v32 }
 0x53e   :  { %v7339_v37 = vrot.slane %v7332_v27, %v8679_v42 }
 0x540   :  { %v7346_v17 = vrot.slane %v7339_v37, %v8679_v42 }
 0x542   :  { %7348 = vst.msk [vmem:[#allocation4] sm:$0x3] %vm10006_vm3, %v7346_v17 }
 0x543   :  { %7826 = shalt.err (!%p7823_p12)
}
 0x544   :  { %s7827_s7 = scalar_lea.hbm %s10644_s6, 32 }
 0x545   :  { %p7828_p13 = scmp.ne.s32.totalorder %s10644_s6, %s7827_s7  ;;  %p7831_p0 = scmp.lt.u32.totalorder %s7827_s7, %s10644_s6 }
 0x547   :  { %p7833_p1 = pnand %p7831_p0, %p7828_p13 }
 0x549   :  { %7836 = shalt.err (!%p7833_p1)
}
 0x54a   :  { %7370 = dma.vmem_to_hbm [thread:$0]  %s7368_s27, 32, %s10644_s6, [#allocation5]  }
 0x54b   :  { %7837 = dma.done.wait [#allocation3], 32  }
 0x54c   :  { %7838 = vsyncadd [#allocation3], 4294967264 }
 0x54d   :  { %7839 = dma.done.wait [#allocation5], 32  }
 0x54e   :  { %7840 = vsyncadd [#allocation5], 4294967264 }
 0x54f   :  { %7379 = vsyncpa [#allocation3], 1 }
 0x550   :  { %7380 = vsyncpa [#allocation5], 1 }

</bundles_post_ra>
